<compile_context>
chip_gen: v5e
topology: v5e:2x2
jax: 0.10.0
libtpu: 0.0.40
codegen_flags: <defaults>
</compile_context>

<pallas_src>
import math
import functools
import numpy as np

import jax
import jax.numpy as jnp
from jax import lax
from jax.experimental import pallas as pl
from jax.experimental.pallas import tpu as pltpu


# ----------------------------- helpers -------------------------------------

def _vmem_limit_bytes():
    """Generation-aware scoped-VMEM limit: physical capacity minus headroom."""
    try:
        info = pltpu.get_tpu_info()
        cap = None
        for name in ("vmem_capacity_bytes", "vmem_size_bytes", "vmem_bytes"):
            cap = getattr(info, name, None)
            if cap:
                break
        if cap:
            return int(min(max(cap - (16 << 20), 32 << 20), 112 << 20))
    except Exception:
        pass
    return 48 << 20


_VMEM_LIMIT = _vmem_limit_bytes()
_TM_DEFAULT = 512 if _VMEM_LIMIT >= (96 << 20) else 256   # bigger M tiles on v5e/v6e


def _cparams(*sems):
    return pltpu.CompilerParams(dimension_semantics=tuple(sems),
                                vmem_limit_bytes=_VMEM_LIMIT)


def _pick_tile(dim, target):
    """Largest tile <= target that evenly divides dim (never exceeds target, so
    a non-divisible dim can't degenerate into one giant VMEM block)."""
    if dim <= target:
        return dim
    if dim % target == 0:
        return target
    # TODO(synk): pad + masked remainder instead of tiny divisors for pathological dims.
    for t in range(target, 0, -1):
        if dim % t == 0:
            return t
    return dim


def _layernorm_val(y, g, b, eps, n):
    # matches torch: unbiased std (n-1), divide by (std + eps); f32 math
    mean = jnp.mean(y, axis=-1, keepdims=True)
    d = y - mean
    var = jnp.sum(d * d, axis=-1, keepdims=True) / (n - 1)
    return g * d / (jnp.sqrt(var) + eps) + b


# ----------------------------- Pallas kernels ------------------------------

def _linear_kernel(x_ref, w_ref, b_ref, o_ref, acc_ref, *, relu, nk):
    @pl.when(pl.program_id(2) == 0)
    def _init():
        acc_ref[...] = jnp.zeros_like(acc_ref)

    acc_ref[...] += jnp.dot(x_ref[...].astype(jnp.bfloat16), w_ref[...],
                            preferred_element_type=jnp.float32)

    @pl.when(pl.program_id(2) == nk - 1)
    def _store():
        y = acc_ref[...] + b_ref[...]
        if relu:
            y = jnp.maximum(y, 0.0)
        o_ref[...] = y.astype(o_ref.dtype)


def linear_pallas(x2d, w, b, relu=False, tm=None, tn=256, tk=512):
    """Tiled y = relu?(x @ w + b). bf16 operands/output, f32 accumulation."""
    tm = _TM_DEFAULT if tm is None else tm
    M, K = x2d.shape
    N = w.shape[1]
    tm, tn, tk = _pick_tile(M, tm), _pick_tile(N, tn), _pick_tile(K, tk)
    nk = K // tk
    return pl.pallas_call(
        functools.partial(_linear_kernel, relu=relu, nk=nk),
        grid=(M // tm, N // tn, nk),
        in_specs=[pl.BlockSpec((tm, tk), lambda i, j, k: (i, k)),
                  pl.BlockSpec((tk, tn), lambda i, j, k: (k, j)),
                  pl.BlockSpec((1, tn), lambda i, j, k: (0, j))],
        out_specs=pl.BlockSpec((tm, tn), lambda i, j, k: (i, j)),
        out_shape=jax.ShapeDtypeStruct((M, N), jnp.bfloat16),
        scratch_shapes=[pltpu.VMEM((tm, tn), jnp.float32)],
        compiler_params=_cparams("parallel", "parallel", "arbitrary"),
    )(x2d, w, b.reshape(1, N))


def _layernorm_kernel(x_ref, g_ref, b_ref, o_ref, *, eps, n):
    y = _layernorm_val(x_ref[...].astype(jnp.float32), g_ref[...], b_ref[...], eps, n)
    o_ref[...] = y.astype(o_ref.dtype)


def layernorm_pallas(x, ln, eps=1e-6, tm=None):
    tm = _TM_DEFAULT if tm is None else tm
    B, S, D = x.shape
    M = B * S
    tm = _pick_tile(M, tm)
    out = pl.pallas_call(
        functools.partial(_layernorm_kernel, eps=eps, n=D),
        grid=(M // tm,),
        in_specs=[pl.BlockSpec((tm, D), lambda i: (i, 0)),
                  pl.BlockSpec((1, D), lambda i: (0, 0)),
                  pl.BlockSpec((1, D), lambda i: (0, 0))],
        out_specs=pl.BlockSpec((tm, D), lambda i: (i, 0)),
        out_shape=jax.ShapeDtypeStruct((M, D), jnp.bfloat16),
        compiler_params=_cparams("parallel"),
    )(x.reshape(M, D), ln['g'].reshape(1, D), ln['b'].reshape(1, D))
    return out.reshape(B, S, D)


def _proj_res_ln_kernel(x_ref, w_ref, b_ref, r_ref, g_ref, bln_ref, o_ref, acc_ref,
                        *, eps, n, nk):
    """out = LayerNorm(residual + x @ w + b) — fused epilogue (f32 math, bf16 out)."""
    @pl.when(pl.program_id(1) == 0)
    def _init():
        acc_ref[...] = jnp.zeros_like(acc_ref)

    acc_ref[...] += jnp.dot(x_ref[...].astype(jnp.bfloat16), w_ref[...],
                            preferred_element_type=jnp.float32)

    @pl.when(pl.program_id(1) == nk - 1)
    def _store():
        y = r_ref[...].astype(jnp.float32) + acc_ref[...] + b_ref[...]
        o_ref[...] = _layernorm_val(y, g_ref[...], bln_ref[...], eps, n).astype(o_ref.dtype)


def proj_residual_ln_pallas(x2d, w, b, resid2d, ln, eps=1e-6, tm=None, tk=512):
    tm = _TM_DEFAULT if tm is None else tm
    M, K = x2d.shape
    D = w.shape[1]
    tm, tk = _pick_tile(M, tm), _pick_tile(K, tk)
    nk = K // tk
    return pl.pallas_call(
        functools.partial(_proj_res_ln_kernel, eps=eps, n=D, nk=nk),
        grid=(M // tm, nk),
        in_specs=[pl.BlockSpec((tm, tk), lambda i, k: (i, k)),
                  pl.BlockSpec((tk, D), lambda i, k: (k, 0)),
                  pl.BlockSpec((1, D), lambda i, k: (0, 0)),
                  pl.BlockSpec((tm, D), lambda i, k: (i, 0)),
                  pl.BlockSpec((1, D), lambda i, k: (0, 0)),
                  pl.BlockSpec((1, D), lambda i, k: (0, 0))],
        out_specs=pl.BlockSpec((tm, D), lambda i, k: (i, 0)),
        out_shape=jax.ShapeDtypeStruct((M, D), jnp.bfloat16),
        scratch_shapes=[pltpu.VMEM((tm, D), jnp.float32)],
        compiler_params=_cparams("parallel", "arbitrary"),
    )(x2d, w, b.reshape(1, D), resid2d, ln['g'].reshape(1, D), ln['b'].reshape(1, D))


def _ffn_res_ln_kernel(x_ref, w1_ref, b1_ref, w2_ref, b2_ref, g_ref, bln_ref,
                       o_ref, acc_ref, *, eps, n, nf):
    """out = LayerNorm(x + relu(x@w1+b1)@w2 + b2), tiled over the hidden (F) dim."""
    @pl.when(pl.program_id(1) == 0)
    def _init():
        acc_ref[...] = jnp.zeros_like(acc_ref)

    h = jnp.dot(x_ref[...].astype(jnp.bfloat16), w1_ref[...],
                preferred_element_type=jnp.float32) + b1_ref[...]
    h = jnp.maximum(h, 0.0)
    acc_ref[...] += jnp.dot(h.astype(jnp.bfloat16), w2_ref[...],
                            preferred_element_type=jnp.float32)

    @pl.when(pl.program_id(1) == nf - 1)
    def _store():
        y = x_ref[...].astype(jnp.float32) + acc_ref[...] + b2_ref[...]
        o_ref[...] = _layernorm_val(y, g_ref[...], bln_ref[...], eps, n).astype(o_ref.dtype)


def ffn_residual_ln_pallas(x, p, ln, eps=1e-6, tm=None, tf=512):
    tm = _TM_DEFAULT if tm is None else tm
    B, S, D = x.shape
    M = B * S
    F = p['w1'].shape[1]
    tm, tf = _pick_tile(M, tm), _pick_tile(F, tf)
    nf = F // tf
    out = pl.pallas_call(
        functools.partial(_ffn_res_ln_kernel, eps=eps, n=D, nf=nf),
        grid=(M // tm, nf),
        in_specs=[pl.BlockSpec((tm, D), lambda i, f: (i, 0)),
                  pl.BlockSpec((D, tf), lambda i, f: (0, f)),
                  pl.BlockSpec((1, tf), lambda i, f: (0, f)),
                  pl.BlockSpec((tf, D), lambda i, f: (f, 0)),
                  pl.BlockSpec((1, D), lambda i, f: (0, 0)),
                  pl.BlockSpec((1, D), lambda i, f: (0, 0)),
                  pl.BlockSpec((1, D), lambda i, f: (0, 0))],
        out_specs=pl.BlockSpec((tm, D), lambda i, f: (i, 0)),
        out_shape=jax.ShapeDtypeStruct((M, D), jnp.bfloat16),
        scratch_shapes=[pltpu.VMEM((tm, D), jnp.float32)],
        compiler_params=_cparams("parallel", "arbitrary"),
    )(x.reshape(M, D), p['w1'], p['b1'].reshape(1, F), p['w2'],
      p['b2'].reshape(1, D), ln['g'].reshape(1, D), ln['b'].reshape(1, D))
    return out.reshape(B, S, D)


def _logits_softmax_kernel(x_ref, w_ref, o_ref, acc_ref, *, nk):
    """probs = softmax(x @ w) fused in one kernel (no bias, matches reference)."""
    @pl.when(pl.program_id(1) == 0)
    def _init():
        acc_ref[...] = jnp.zeros_like(acc_ref)

    acc_ref[...] += jnp.dot(x_ref[...].astype(jnp.bfloat16), w_ref[...],
                            preferred_element_type=jnp.float32)

    @pl.when(pl.program_id(1) == nk - 1)
    def _store():
        s = acc_ref[...]
        m = jnp.max(s, axis=-1, keepdims=True)
        p = jnp.exp(s - m)
        o_ref[...] = p / jnp.sum(p, axis=-1, keepdims=True)   # exact: rows sum to 1


def logits_softmax_pallas(x2d, w, tm=None, tk=512):
    # TODO(synk): for realistic vocab sizes (e.g. 32k), tile the vocab axis with a
    # two-pass / online softmax; the fused (tm, V) accumulator only fits small V.
    tm = _TM_DEFAULT if tm is None else tm
    M, K = x2d.shape
    V = w.shape[1]
    tm, tk = _pick_tile(M, tm), _pick_tile(K, tk)
    nk = K // tk
    return pl.pallas_call(
        functools.partial(_logits_softmax_kernel, nk=nk),
        grid=(M // tm, nk),
        in_specs=[pl.BlockSpec((tm, tk), lambda i, k: (i, k)),
                  pl.BlockSpec((tk, V), lambda i, k: (k, 0))],
        out_specs=pl.BlockSpec((tm, V), lambda i, k: (i, 0)),
        out_shape=jax.ShapeDtypeStruct((M, V), jnp.float32),
        scratch_shapes=[pltpu.VMEM((tm, V), jnp.float32)],
        compiler_params=_cparams("parallel", "arbitrary"),
    )(x2d, w)


def _attention_kernel(q_ref, k_ref, v_ref, kb_ref, o_ref, a_ref,
                      *, n_heads, scale, causal):
    """Multi-head attention for one batch element.

    q_ref: (Sq, D) bf16   k_ref/v_ref: (Sk, D) bf16
    kb_ref: (1, Sk) f32 additive key-padding bias (mask built in-kernel)
    o_ref: (Sq, D) bf16 lane-dense output  a_ref: (H, Sq, Sk) f32 attention probs
    """
    Sq, D = q_ref.shape
    Sk = k_ref.shape[0]
    dh = D // n_heads

    # fold the 1/sqrt(dh) scale into q once (O(Sq*D) instead of O(H*Sq*Sk))
    q = (q_ref[...].astype(jnp.float32) * scale).astype(jnp.bfloat16)
    k = k_ref[...].astype(jnp.bfloat16)
    v = v_ref[...].astype(jnp.bfloat16)
    kb = kb_ref[...]                                   # (1, Sk), broadcasts over Sq

    if causal:                                         # built in-kernel, hoisted
        row = lax.broadcasted_iota(jnp.int32, (Sq, Sk), 0)
        col = lax.broadcasted_iota(jnp.int32, (Sq, Sk), 1)
        causal_bias = jnp.where(col > row, jnp.float32(-1e9), jnp.float32(0.0))

    # TODO(synk): for long sequences / many heads, grid over (B, H) with an Sk-tiled
    # online-softmax (flash) accumulator instead of the static head unroll below.
    for h in range(n_heads):                           # static unroll over heads
        sl = slice(h * dh, (h + 1) * dh)
        s = lax.dot_general(q[:, sl], k[:, sl], (((1,), (1,)), ((), ())),
                            preferred_element_type=jnp.float32) + kb
        if causal:
            s = s + causal_bias
        mx = jnp.max(s, axis=-1, keepdims=True)
        p = jnp.exp(s - mx)
        # exact normalization; max-subtraction guarantees sum >= 1 (no NaN on padded rows)
        p = p / jnp.sum(p, axis=-1, keepdims=True)
        a_ref[h] = p
        # direct per-head column store into the output block (static slice; the
        # HBM writeback of the whole (Sq, D) block stays lane-dense)
        o_ref[:, sl] = jnp.dot(p.astype(jnp.bfloat16), v[:, sl],
                               preferred_element_type=jnp.float32).astype(o_ref.dtype)


def attention_pallas(q, k, v, key_bias, n_heads, scale, causal):
    B, Sq, D = q.shape
    Sk = k.shape[1]
    H = n_heads
    return pl.pallas_call(
        functools.partial(_attention_kernel, n_heads=n_heads, scale=scale, causal=causal),
        grid=(B,),
        in_specs=[pl.BlockSpec((None, Sq, D), lambda b: (b, 0, 0)),
                  pl.BlockSpec((None, Sk, D), lambda b: (b, 0, 0)),
                  pl.BlockSpec((None, Sk, D), lambda b: (b, 0, 0)),
                  pl.BlockSpec((None, 1, Sk), lambda b: (b, 0, 0))],
        out_specs=[pl.BlockSpec((None, Sq, D), lambda b: (b, 0, 0)),
                   pl.BlockSpec((None, H, Sq, Sk), lambda b: (b, 0, 0, 0))],
        out_shape=(jax.ShapeDtypeStruct((B, Sq, D), jnp.bfloat16),
                   jax.ShapeDtypeStruct((B, H, Sq, Sk), jnp.float32)),
        compiler_params=_cparams("parallel"),
    )(q, k, v, key_bias)


# ----------------------------- model (glue) --------------------------------

def sinusoid_pos_encoding(max_len, d_model):
    pos = np.arange(max_len)[:, None].astype(np.float64)
    i = np.arange(d_model)[None, :].astype(np.float64)
    angle = pos / np.power(10000.0, (2.0 * (i // 2)) / d_model)
    pe = np.zeros((max_len, d_model), dtype=np.float32)
    pe[:, 0::2] = np.sin(angle[:, 0::2])
    pe[:, 1::2] = np.cos(angle[:, 1::2])
    return jnp.asarray(pe)


def init_params(key, n_layers, d_model, d_ff, v_src, v_tgt, max_len):
    keys = iter(jax.random.split(key, 512))

    def w(shape, scale=0.02, dtype=jnp.bfloat16):
        # matmul weights stored bf16 (MXU-native); accumulation stays f32
        return (scale * jax.random.normal(next(keys), shape)).astype(dtype)

    def self_attn_block():
        # pre-fused QKV weights (no per-forward concatenation)
        return {'wqkv': w((d_model, 3 * d_model)),
                'bqkv': jnp.zeros((3 * d_model,), jnp.float32),
                'wo': w((d_model, d_model)), 'bo': jnp.zeros((d_model,), jnp.float32)}

    def cross_attn_block():
        # separate Q projection + pre-fused KV projection
        return {'wq': w((d_model, d_model)), 'bq': jnp.zeros((d_model,), jnp.float32),
                'wkv': w((d_model, 2 * d_model)),
                'bkv': jnp.zeros((2 * d_model,), jnp.float32),
                'wo': w((d_model, d_model)), 'bo': jnp.zeros((d_model,), jnp.float32)}

    def ffn_block():
        return {'w1': w((d_model, d_ff)), 'b1': jnp.zeros((d_ff,), jnp.float32),
                'w2': w((d_ff, d_model)), 'b2': jnp.zeros((d_model,), jnp.float32)}

    def ln():
        return {'g': jnp.ones((d_model,), jnp.float32),
                'b': jnp.zeros((d_model,), jnp.float32)}

    enc_layers = [{'self': self_attn_block(), 'ffn': ffn_block(), 'ln1': ln(), 'ln2': ln()}
                  for _ in range(n_layers)]
    dec_layers = [{'self': self_attn_block(), 'cross': cross_attn_block(),
                   'ffn': ffn_block(), 'ln1': ln(), 'ln2': ln(), 'ln3': ln()}
                  for _ in range(n_layers)]
    return {'src_emb': w((v_src, d_model), 1.0 / math.sqrt(d_model), jnp.float32),
            'tgt_emb': w((v_tgt, d_model), 1.0 / math.sqrt(d_model), jnp.float32),
            'pe': sinusoid_pos_encoding(max_len, d_model),
            'enc_layers': enc_layers, 'dec_layers': dec_layers,
            'enc_ln': ln(), 'dec_ln': ln(),
            'out_w': w((d_model, v_tgt))}


def self_attention_block(x, key_bias, p, ln, n_heads, causal):
    """LayerNorm(x + MHA(x, x) @ Wo), fused QKV projection + fused epilogue."""
    B, S, D = x.shape
    qkv = linear_pallas(x.reshape(B * S, D), p['wqkv'], p['bqkv'])
    q, k, v = jnp.split(qkv, 3, axis=-1)
    q = q.reshape(B, S, D)
    k = k.reshape(B, S, D)
    v = v.reshape(B, S, D)
    dh = D // n_heads
    attn_out, attn = attention_pallas(q, k, v, key_bias, n_heads,
                                      1.0 / math.sqrt(dh), causal)
    out = proj_residual_ln_pallas(attn_out.reshape(B * S, D), p['wo'], p['bo'],
                                  x.reshape(B * S, D), ln)
    return out.reshape(B, S, D), attn


def cross_attention_block(x_q, memory, key_bias, p, ln, n_heads):
    """LayerNorm(x_q + MHA(x_q, memory) @ Wo), fused KV projection + fused epilogue."""
    B, Sq, D = x_q.shape
    Sk = memory.shape[1]
    q = linear_pallas(x_q.reshape(B * Sq, D), p['wq'], p['bq']).reshape(B, Sq, D)
    kv = linear_pallas(memory.reshape(B * Sk, D), p['wkv'], p['bkv'])
    k, v = jnp.split(kv, 2, axis=-1)
    k = k.reshape(B, Sk, D)
    v = v.reshape(B, Sk, D)
    dh = D // n_heads
    attn_out, attn = attention_pallas(q, k, v, key_bias, n_heads,
                                      1.0 / math.sqrt(dh), causal=False)
    out = proj_residual_ln_pallas(attn_out.reshape(B * Sq, D), p['wo'], p['bo'],
                                  x_q.reshape(B * Sq, D), ln)
    return out.reshape(B, Sq, D), attn


def transformer_forward(params, src_seq, src_len, tgt_seq, tgt_len, n_heads):
    del src_len, tgt_len  # masks are built from the padding token id (0)
    B, Ss = src_seq.shape
    _, St = tgt_seq.shape
    D = params['src_emb'].shape[1]

    NEG = jnp.float32(-1e9)
    # tiny (B, 1, Sk) key-padding biases; the (Sq, Sk) mask is built in-kernel
    src_kb = jnp.where(src_seq == 0, NEG, jnp.float32(0.0)).reshape(B, 1, Ss)
    tgt_kb = jnp.where(tgt_seq == 0, NEG, jnp.float32(0.0)).reshape(B, 1, St)
    # TODO(synk): reference builds paddding_mask(tgt_seq, src_seq) (keys=tgt), which is
    # shape-transposed for cross-attention; standard semantics (mask memory/src padding
    # keys) is used here.

    # --- encoder ---
    x = params['src_emb'][src_seq] * jnp.sqrt(jnp.float32(D)) + params['pe'][:Ss][None]
    x = x.astype(jnp.bfloat16)
    enc_attns = []
    for lp in params['enc_layers']:
        x, attn = self_attention_block(x, src_kb, lp['self'], lp['ln1'], n_heads,
                                       causal=False)
        x = ffn_residual_ln_pallas(x, lp['ffn'], lp['ln2'])
        enc_attns.append(attn)
    memory = layernorm_pallas(x, params['enc_ln'])

    # --- decoder ---
    y = params['tgt_emb'][tgt_seq] * jnp.sqrt(jnp.float32(D)) + params['pe'][:St][None]
    y = y.astype(jnp.bfloat16)
    dec_attns, ctx_attns = [], []
    for lp in params['dec_layers']:
        y, attn = self_attention_block(y, tgt_kb, lp['self'], lp['ln1'], n_heads,
                                       causal=True)
        y, cattn = cross_attention_block(y, memory, src_kb, lp['cross'], lp['ln2'],
                                         n_heads)
        y = ffn_residual_ln_pallas(y, lp['ffn'], lp['ln3'])
        dec_attns.append(attn)
        ctx_attns.append(cattn)
    y = layernorm_pallas(y, params['dec_ln'])

    # --- output projection (no bias) fused with softmax over vocab (dim=2) ---
    V = params['out_w'].shape[1]
    probs = logits_softmax_pallas(y.reshape(B * St, D), params['out_w']).reshape(B, St, V)
    return probs, jnp.stack(enc_attns), jnp.stack(dec_attns), jnp.stack(ctx_attns)


# ----------------------------------- main -----------------------------------

if __name__ == "__main__":
    B, S = 2, 8
    D, H, FFN_D, N_LAYERS = 32, 4, 64, 2
    V_SRC, V_TGT = 16, 16

    key = jax.random.PRNGKey(0)
    k_src, k_tgt = jax.random.split(key)
    src_seq = jax.random.randint(k_src, (B, S), 1, V_SRC)
    tgt_seq = jax.random.randint(k_tgt, (B, S), 1, V_TGT)
    # introduce padding (token id 0) at the tail of the first example
    src_seq = src_seq.at[0, -2:].set(0)
    tgt_seq = tgt_seq.at[0, -1:].set(0)
    src_len = jnp.array([S - 2, S], dtype=jnp.int32)
    tgt_len = jnp.array([S - 1, S], dtype=jnp.int32)

    params = init_params(jax.random.PRNGKey(42), N_LAYERS, D, FFN_D, V_SRC, V_TGT,
                         max_len=S)

    fwd = jax.jit(transformer_forward, static_argnames=('n_heads',))
    out, enc_attn, dec_attn, ctx_attn = fwd(
        params, src_seq, src_len, tgt_seq, tgt_len, n_heads=H)
    jax.block_until_ready(out)

    assert out.shape == (B, S, V_TGT)
    assert enc_attn.shape == (N_LAYERS, B, H, S, S)
    assert dec_attn.shape == (N_LAYERS, B, H, S, S)
    assert ctx_attn.shape == (N_LAYERS, B, H, S, S)
    assert np.allclose(np.asarray(out).sum(-1), 1.0, atol=1e-4)   # softmax rows sum to 1
    assert np.isfinite(np.asarray(dec_attn)).all()                 # no NaN on padded rows
    print("KERNEL_OK")
</pallas_src>

<mosaic_0001>
module attributes {stable_mosaic.version = 11 : i64} {
  func.func @_linear_kernel(%arg0: i32, %arg1: i32, %arg2: i32, %arg3: memref<16x32xbf16, #tpu.memory_space<vmem>>, %arg4: memref<32x96xbf16, #tpu.memory_space<vmem>>, %arg5: memref<1x96xf32, #tpu.memory_space<vmem>>, %arg6: memref<16x96xbf16, #tpu.memory_space<vmem>>, %arg7: memref<16x96xf32, #tpu.memory_space<vmem>>) attributes {dimension_semantics = [#tpu.dimension_semantics<parallel>, #tpu.dimension_semantics<parallel>, #tpu.dimension_semantics<arbitrary>], iteration_bounds = array<i64: 1, 1, 1>, scalar_prefetch = 0 : i64, scratch_operands = 1 : i64, tpu.core_type = #tpu.core_type<tc>, window_params = [{transform_indices = @transform_0, window_bounds = array<i64: 16, 32>}, {transform_indices = @transform_1, window_bounds = array<i64: 32, 96>}, {transform_indices = @transform_2, window_bounds = array<i64: 1, 96>}, {transform_indices = @transform_3, window_bounds = array<i64: 16, 96>}]} {
    %c0_i32 = arith.constant 0 : i32
    %0 = arith.cmpi eq, %arg2, %c0_i32 : i32
    %1 = arith.extui %0 : i1 to i32
    %c0_i32_0 = arith.constant 0 : i32
    %2 = arith.cmpi ne, %1, %c0_i32_0 : i32
    scf.if %2 {
      %cst_10 = arith.constant 0.000000e+00 : f32
      %12 = vector.broadcast %cst_10 : f32 to vector<16x96xf32>
      %c0_11 = arith.constant 0 : index
      %c0_12 = arith.constant 0 : index
      %13 = vector.load %arg7[%c0_11, %c0_12] : memref<16x96xf32, #tpu.memory_space<vmem>>, vector<16x96xf32>
      tpu.vector_store %arg7[%c0_11, %c0_12], %12 {strides = array<i32>} : memref<16x96xf32, #tpu.memory_space<vmem>>, vector<16x96xf32>,
    } else {
    }
    %c0 = arith.constant 0 : index
    %c0_1 = arith.constant 0 : index
    %3 = vector.load %arg7[%c0, %c0_1] : memref<16x96xf32, #tpu.memory_space<vmem>>, vector<16x96xf32>
    %c0_2 = arith.constant 0 : index
    %c0_3 = arith.constant 0 : index
    %4 = vector.load %arg3[%c0_2, %c0_3] : memref<16x32xbf16, #tpu.memory_space<vmem>>, vector<16x32xbf16>
    %c0_4 = arith.constant 0 : index
    %c0_5 = arith.constant 0 : index
    %5 = vector.load %arg4[%c0_4, %c0_5] : memref<32x96xbf16, #tpu.memory_space<vmem>>, vector<32x96xbf16>
    %cst = arith.constant dense<0.000000e+00> : vector<16x96xf32>
    %6 = tpu.matmul %4, %5, %cst {dimension_numbers = #tpu.dot_dimension_numbers<[1], [0], [0], [1], [0, 0, 1, 1], [], []>} : vector<16x32xbf16>, vector<32x96xbf16>, vector<16x96xf32> -> vector<16x96xf32>
    %7 = arith.addf %3, %6 : vector<16x96xf32>
    %c0_6 = arith.constant 0 : index
    %c0_7 = arith.constant 0 : index
    %8 = vector.load %arg7[%c0_6, %c0_7] : memref<16x96xf32, #tpu.memory_space<vmem>>, vector<16x96xf32>
    tpu.vector_store %arg7[%c0_6, %c0_7], %7 {strides = array<i32>} : memref<16x96xf32, #tpu.memory_space<vmem>>, vector<16x96xf32>,
    %c0_i32_8 = arith.constant 0 : i32
    %9 = arith.cmpi eq, %arg2, %c0_i32_8 : i32
    %10 = arith.extui %9 : i1 to i32
    %c0_i32_9 = arith.constant 0 : i32
    %11 = arith.cmpi ne, %10, %c0_i32_9 : i32
    scf.if %11 {
      %c0_10 = arith.constant 0 : index
      %c0_11 = arith.constant 0 : index
      %12 = vector.load %arg7[%c0_10, %c0_11] : memref<16x96xf32, #tpu.memory_space<vmem>>, vector<16x96xf32>
      %c0_12 = arith.constant 0 : index
      %c0_13 = arith.constant 0 : index
      %13 = vector.load %arg5[%c0_12, %c0_13] : memref<1x96xf32, #tpu.memory_space<vmem>>, vector<1x96xf32>
      %14 = vector.broadcast %13 : vector<1x96xf32> to vector<16x96xf32>
      %15 = arith.addf %12, %14 : vector<16x96xf32>
      %16 = arith.truncf %15 : vector<16x96xf32> to vector<16x96xbf16>
      %c0_14 = arith.constant 0 : index
      %c0_15 = arith.constant 0 : index
      %17 = vector.load %arg6[%c0_14, %c0_15] : memref<16x96xbf16, #tpu.memory_space<vmem>>, vector<16x96xbf16>
      tpu.vector_store %arg6[%c0_14, %c0_15], %16 {strides = array<i32>} : memref<16x96xbf16, #tpu.memory_space<vmem>>, vector<16x96xbf16>,
    } else {
    }
    return
  }
  func.func @transform_0(%arg0: i32, %arg1: i32, %arg2: i32) -> (i32, i32) {
    %c0_i32 = arith.constant 0 : i32
    return %arg0, %arg2 : i32, i32
  }
  func.func @transform_1(%arg0: i32, %arg1: i32, %arg2: i32) -> (i32, i32) {
    %c0_i32 = arith.constant 0 : i32
    return %arg2, %arg1 : i32, i32
  }
  func.func @transform_2(%arg0: i32, %arg1: i32, %arg2: i32) -> (i32, i32) {
    %c0_i32 = arith.constant 0 : i32
    %c0_i32_0 = arith.constant 0 : i32
    return %c0_i32, %arg1 : i32, i32
  }
  func.func @transform_3(%arg0: i32, %arg1: i32, %arg2: i32) -> (i32, i32) {
    %c0_i32 = arith.constant 0 : i32
    return %arg0, %arg1 : i32, i32
  }
}

module attributes {stable_mosaic.version = 11 : i64} {
  func.func @_proj_res_ln_kernel(%arg0: i32, %arg1: i32, %arg2: memref<16x32xbf16, #tpu.memory_space<vmem>>, %arg3: memref<32x32xbf16, #tpu.memory_space<vmem>>, %arg4: memref<1x32xf32, #tpu.memory_space<vmem>>, %arg5: memref<16x32xbf16, #tpu.memory_space<vmem>>, %arg6: memref<1x32xf32, #tpu.memory_space<vmem>>, %arg7: memref<1x32xf32, #tpu.memory_space<vmem>>, %arg8: memref<16x32xbf16, #tpu.memory_space<vmem>>, %arg9: memref<16x32xf32, #tpu.memory_space<vmem>>) attributes {dimension_semantics = [#tpu.dimension_semantics<parallel>, #tpu.dimension_semantics<arbitrary>], iteration_bounds = array<i64: 1, 1>, scalar_prefetch = 0 : i64, scratch_operands = 1 : i64, tpu.core_type = #tpu.core_type<tc>, window_params = [{transform_indices = @transform_0, window_bounds = array<i64: 16, 32>}, {transform_indices = @transform_1, window_bounds = array<i64: 32, 32>}, {pipeline_mode = #tpu.pipeline_mode<synchronous>, transform_indices = @transform_2, window_bounds = array<i64: 1, 32>}, {transform_indices = @transform_3, window_bounds = array<i64: 16, 32>}, {pipeline_mode = #tpu.pipeline_mode<synchronous>, transform_indices = @transform_4, window_bounds = array<i64: 1, 32>}, {pipeline_mode = #tpu.pipeline_mode<synchronous>, transform_indices = @transform_5, window_bounds = array<i64: 1, 32>}, {transform_indices = @transform_6, window_bounds = array<i64: 16, 32>}]} {
    %c0_i32 = arith.constant 0 : i32
    %0 = arith.cmpi eq, %arg1, %c0_i32 : i32
    %1 = arith.extui %0 : i1 to i32
    %c0_i32_0 = arith.constant 0 : i32
    %2 = arith.cmpi ne, %1, %c0_i32_0 : i32
    scf.if %2 {
      %cst_10 = arith.constant 0.000000e+00 : f32
      %12 = vector.broadcast %cst_10 : f32 to vector<16x32xf32>
      %c0_11 = arith.constant 0 : index
      %c0_12 = arith.constant 0 : index
      %13 = vector.load %arg9[%c0_11, %c0_12] : memref<16x32xf32, #tpu.memory_space<vmem>>, vector<16x32xf32>
      tpu.vector_store %arg9[%c0_11, %c0_12], %12 {strides = array<i32>} : memref<16x32xf32, #tpu.memory_space<vmem>>, vector<16x32xf32>,
    } else {
    }
    %c0 = arith.constant 0 : index
    %c0_1 = arith.constant 0 : index
    %3 = vector.load %arg9[%c0, %c0_1] : memref<16x32xf32, #tpu.memory_space<vmem>>, vector<16x32xf32>
    %c0_2 = arith.constant 0 : index
    %c0_3 = arith.constant 0 : index
    %4 = vector.load %arg2[%c0_2, %c0_3] : memref<16x32xbf16, #tpu.memory_space<vmem>>, vector<16x32xbf16>
    %c0_4 = arith.constant 0 : index
    %c0_5 = arith.constant 0 : index
    %5 = vector.load %arg3[%c0_4, %c0_5] : memref<32x32xbf16, #tpu.memory_space<vmem>>, vector<32x32xbf16>
    %cst = arith.constant dense<0.000000e+00> : vector<16x32xf32>
    %6 = tpu.matmul %4, %5, %cst {dimension_numbers = #tpu.dot_dimension_numbers<[1], [0], [0], [1], [0, 0, 1, 1], [], []>} : vector<16x32xbf16>, vector<32x32xbf16>, vector<16x32xf32> -> vector<16x32xf32>
    %7 = arith.addf %3, %6 : vector<16x32xf32>
    %c0_6 = arith.constant 0 : index
    %c0_7 = arith.constant 0 : index
    %8 = vector.load %arg9[%c0_6, %c0_7] : memref<16x32xf32, #tpu.memory_space<vmem>>, vector<16x32xf32>
    tpu.vector_store %arg9[%c0_6, %c0_7], %7 {strides = array<i32>} : memref<16x32xf32, #tpu.memory_space<vmem>>, vector<16x32xf32>,
    %c0_i32_8 = arith.constant 0 : i32
    %9 = arith.cmpi eq, %arg1, %c0_i32_8 : i32
    %10 = arith.extui %9 : i1 to i32
    %c0_i32_9 = arith.constant 0 : i32
    %11 = arith.cmpi ne, %10, %c0_i32_9 : i32
    scf.if %11 {
      %c0_10 = arith.constant 0 : index
      %c0_11 = arith.constant 0 : index
      %12 = vector.load %arg5[%c0_10, %c0_11] : memref<16x32xbf16, #tpu.memory_space<vmem>>, vector<16x32xbf16>
      %13 = arith.extf %12 : vector<16x32xbf16> to vector<16x32xf32>
      %c0_12 = arith.constant 0 : index
      %c0_13 = arith.constant 0 : index
      %14 = vector.load %arg9[%c0_12, %c0_13] : memref<16x32xf32, #tpu.memory_space<vmem>>, vector<16x32xf32>
      %15 = arith.addf %13, %14 : vector<16x32xf32>
      %c0_14 = arith.constant 0 : index
      %c0_15 = arith.constant 0 : index
      %16 = vector.load %arg4[%c0_14, %c0_15] : memref<1x32xf32, #tpu.memory_space<vmem>>, vector<1x32xf32>
      %17 = vector.broadcast %16 : vector<1x32xf32> to vector<16x32xf32>
      %18 = arith.addf %15, %17 : vector<16x32xf32>
      %c0_16 = arith.constant 0 : index
      %c0_17 = arith.constant 0 : index
      %19 = vector.load %arg6[%c0_16, %c0_17] : memref<1x32xf32, #tpu.memory_space<vmem>>, vector<1x32xf32>
      %c0_18 = arith.constant 0 : index
      %c0_19 = arith.constant 0 : index
      %20 = vector.load %arg7[%c0_18, %c0_19] : memref<1x32xf32, #tpu.memory_space<vmem>>, vector<1x32xf32>
      %cst_20 = arith.constant dense<0.000000e+00> : vector<16xf32>
      %21 = vector.multi_reduction <add>, %18, %cst_20 [1] : vector<16x32xf32> to vector<16xf32>
      %22 = vector.shape_cast %21 : vector<16xf32> to vector<16x1xf32>
      %cst_21 = arith.constant 3.200000e+01 : f32
      %23 = vector.broadcast %cst_21 : f32 to vector<16x1xf32>
      %24 = arith.divf %22, %23 : vector<16x1xf32>
      %25 = vector.broadcast %24 : vector<16x1xf32> to vector<16x32xf32>
      %26 = arith.subf %18, %25 : vector<16x32xf32>
      %27 = arith.mulf %26, %26 : vector<16x32xf32>
      %cst_22 = arith.constant dense<0.000000e+00> : vector<16xf32>
      %28 = vector.multi_reduction <add>, %27, %cst_22 [1] : vector<16x32xf32> to vector<16xf32>
      %29 = vector.shape_cast %28 : vector<16xf32> to vector<16x1xf32>
      %cst_23 = arith.constant 3.100000e+01 : f32
      %30 = vector.broadcast %cst_23 : f32 to vector<16x1xf32>
      %31 = arith.divf %29, %30 : vector<16x1xf32>
      %32 = vector.broadcast %19 : vector<1x32xf32> to vector<16x32xf32>
      %33 = arith.mulf %32, %26 : vector<16x32xf32>
      %34 = math.sqrt %31 : vector<16x1xf32>
      %cst_24 = arith.constant 9.99999997E-7 : f32
      %35 = vector.broadcast %cst_24 : f32 to vector<16x1xf32>
      %36 = arith.addf %34, %35 : vector<16x1xf32>
      %37 = vector.broadcast %36 : vector<16x1xf32> to vector<16x32xf32>
      %38 = arith.divf %33, %37 : vector<16x32xf32>
      %39 = vector.broadcast %20 : vector<1x32xf32> to vector<16x32xf32>
      %40 = arith.addf %38, %39 : vector<16x32xf32>
      %41 = arith.truncf %40 : vector<16x32xf32> to vector<16x32xbf16>
      %c0_25 = arith.constant 0 : index
      %c0_26 = arith.constant 0 : index
      %42 = vector.load %arg8[%c0_25, %c0_26] : memref<16x32xbf16, #tpu.memory_space<vmem>>, vector<16x32xbf16>
      tpu.vector_store %arg8[%c0_25, %c0_26], %41 {strides = array<i32>} : memref<16x32xbf16, #tpu.memory_space<vmem>>, vector<16x32xbf16>,
    } else {
    }
    return
  }
  func.func @transform_0(%arg0: i32, %arg1: i32) -> (i32, i32) {
    %c0_i32 = arith.constant 0 : i32
    return %arg0, %arg1 : i32, i32
  }
  func.func @transform_1(%arg0: i32, %arg1: i32) -> (i32, i32) {
    %c0_i32 = arith.constant 0 : i32
    %c0_i32_0 = arith.constant 0 : i32
    return %arg1, %c0_i32 : i32, i32
  }
  func.func @transform_2(%arg0: i32, %arg1: i32) -> (i32, i32) {
    %c0_i32 = arith.constant 0 : i32
    %c0_i32_0 = arith.constant 0 : i32
    %c0_i32_1 = arith.constant 0 : i32
    return %c0_i32, %c0_i32_0 : i32, i32
  }
  func.func @transform_3(%arg0: i32, %arg1: i32) -> (i32, i32) {
    %c0_i32 = arith.constant 0 : i32
    %c0_i32_0 = arith.constant 0 : i32
    return %arg0, %c0_i32 : i32, i32
  }
  func.func @transform_4(%arg0: i32, %arg1: i32) -> (i32, i32) {
    %c0_i32 = arith.constant 0 : i32
    %c0_i32_0 = arith.constant 0 : i32
    %c0_i32_1 = arith.constant 0 : i32
    return %c0_i32, %c0_i32_0 : i32, i32
  }
  func.func @transform_5(%arg0: i32, %arg1: i32) -> (i32, i32) {
    %c0_i32 = arith.constant 0 : i32
    %c0_i32_0 = arith.constant 0 : i32
    %c0_i32_1 = arith.constant 0 : i32
    return %c0_i32, %c0_i32_0 : i32, i32
  }
  func.func @transform_6(%arg0: i32, %arg1: i32) -> (i32, i32) {
    %c0_i32 = arith.constant 0 : i32
    %c0_i32_0 = arith.constant 0 : i32
    return %arg0, %c0_i32 : i32, i32
  }
}

module attributes {stable_mosaic.version = 11 : i64} {
  func.func @_attention_kernel(%arg0: i32, %arg1: memref<1x8x32xbf16, #tpu.memory_space<vmem>>, %arg2: memref<1x8x32xbf16, #tpu.memory_space<vmem>>, %arg3: memref<1x8x32xbf16, #tpu.memory_space<vmem>>, %arg4: memref<1x1x8xf32, #tpu.memory_space<vmem>>, %arg5: memref<1x8x32xbf16, #tpu.memory_space<vmem>>, %arg6: memref<1x4x8x8xf32, #tpu.memory_space<vmem>>) attributes {dimension_semantics = [#tpu.dimension_semantics<parallel>], iteration_bounds = array<i64: 2>, scalar_prefetch = 0 : i64, scratch_operands = 0 : i64, tpu.core_type = #tpu.core_type<tc>, window_params = [{transform_indices = @transform_0, window_bounds = array<i64: 1, 8, 32>}, {transform_indices = @transform_1, window_bounds = array<i64: 1, 8, 32>}, {transform_indices = @transform_2, window_bounds = array<i64: 1, 8, 32>}, {transform_indices = @transform_3, window_bounds = array<i64: 1, 1, 8>}, {transform_indices = @transform_4, window_bounds = array<i64: 1, 8, 32>}, {transform_indices = @transform_5, window_bounds = array<i64: 1, 4, 8, 8>}]} {
    %c0 = arith.constant 0 : index
    %c0_0 = arith.constant 0 : index
    %c0_1 = arith.constant 0 : index
    %0 = vector.load %arg1[%c0, %c0_0, %c0_1] : memref<1x8x32xbf16, #tpu.memory_space<vmem>>, vector<1x8x32xbf16>
    %1 = vector.shape_cast %0 : vector<1x8x32xbf16> to vector<8x32xbf16>
    %2 = arith.extf %1 : vector<8x32xbf16> to vector<8x32xf32>
    %cst = arith.constant 0.353553385 : f32
    %3 = vector.broadcast %cst : f32 to vector<8x32xf32>
    %4 = arith.mulf %2, %3 : vector<8x32xf32>
    %5 = arith.truncf %4 : vector<8x32xf32> to vector<8x32xbf16>
    %c0_2 = arith.constant 0 : index
    %c0_3 = arith.constant 0 : index
    %c0_4 = arith.constant 0 : index
    %6 = vector.load %arg2[%c0_2, %c0_3, %c0_4] : memref<1x8x32xbf16, #tpu.memory_space<vmem>>, vector<1x8x32xbf16>
    %7 = vector.shape_cast %6 : vector<1x8x32xbf16> to vector<8x32xbf16>
    %c0_5 = arith.constant 0 : index
    %c0_6 = arith.constant 0 : index
    %c0_7 = arith.constant 0 : index
    %8 = vector.load %arg3[%c0_5, %c0_6, %c0_7] : memref<1x8x32xbf16, #tpu.memory_space<vmem>>, vector<1x8x32xbf16>
    %9 = vector.shape_cast %8 : vector<1x8x32xbf16> to vector<8x32xbf16>
    %c0_8 = arith.constant 0 : index
    %c0_9 = arith.constant 0 : index
    %c0_10 = arith.constant 0 : index
    %10 = vector.load %arg4[%c0_8, %c0_9, %c0_10] : memref<1x1x8xf32, #tpu.memory_space<vmem>>, vector<1x1x8xf32>
    %11 = vector.shape_cast %10 : vector<1x1x8xf32> to vector<1x8xf32>
    %12 = vector.extract_strided_slice %5 {offsets = [0, 0], sizes = [8, 8], strides = [1, 1]} : vector<8x32xbf16> to vector<8x8xbf16>
    %13 = vector.extract_strided_slice %7 {offsets = [0, 0], sizes = [8, 8], strides = [1, 1]} : vector<8x32xbf16> to vector<8x8xbf16>
    %cst_11 = arith.constant dense<0.000000e+00> : vector<8x8xf32>
    %14 = tpu.matmul %12, %13, %cst_11 {dimension_numbers = #tpu.dot_dimension_numbers<[1], [1], [0], [0], [0, 0, 1, 0], [], []>} : vector<8x8xbf16>, vector<8x8xbf16>, vector<8x8xf32> -> vector<8x8xf32>
    %15 = vector.broadcast %11 : vector<1x8xf32> to vector<8x8xf32>
    %16 = arith.addf %14, %15 : vector<8x8xf32>
    %cst_12 = arith.constant dense<0xFF800000> : vector<8xf32>
    %17 = vector.multi_reduction <maximumf>, %16, %cst_12 [1] : vector<8x8xf32> to vector<8xf32>
    %18 = vector.shape_cast %17 : vector<8xf32> to vector<8x1xf32>
    %19 = vector.broadcast %18 : vector<8x1xf32> to vector<8x8xf32>
    %20 = arith.subf %16, %19 : vector<8x8xf32>
    %21 = math.exp %20 : vector<8x8xf32>
    %cst_13 = arith.constant dense<0.000000e+00> : vector<8xf32>
    %22 = vector.multi_reduction <add>, %21, %cst_13 [1] : vector<8x8xf32> to vector<8xf32>
    %23 = vector.shape_cast %22 : vector<8xf32> to vector<8x1xf32>
    %24 = vector.broadcast %23 : vector<8x1xf32> to vector<8x8xf32>
    %25 = arith.divf %21, %24 : vector<8x8xf32>
    %c0_14 = arith.constant 0 : index
    %c0_15 = arith.constant 0 : index
    %c0_16 = arith.constant 0 : index
    %c0_17 = arith.constant 0 : index
    %26 = vector.load %arg6[%c0_14, %c0_15, %c0_16, %c0_17] : memref<1x4x8x8xf32, #tpu.memory_space<vmem>>, vector<1x1x8x8xf32>
    %27 = vector.shape_cast %26 : vector<1x1x8x8xf32> to vector<8x8xf32>
    %28 = vector.shape_cast %25 : vector<8x8xf32> to vector<1x1x8x8xf32>
    tpu.vector_store %arg6[%c0_14, %c0_15, %c0_16, %c0_17], %28 {strides = array<i32>} : memref<1x4x8x8xf32, #tpu.memory_space<vmem>>, vector<1x1x8x8xf32>,
    %29 = arith.truncf %25 : vector<8x8xf32> to vector<8x8xbf16>
    %30 = vector.extract_strided_slice %9 {offsets = [0, 0], sizes = [8, 8], strides = [1, 1]} : vector<8x32xbf16> to vector<8x8xbf16>
    %cst_18 = arith.constant dense<0.000000e+00> : vector<8x8xf32>
    %31 = tpu.matmul %29, %30, %cst_18 {dimension_numbers = #tpu.dot_dimension_numbers<[1], [0], [0], [1], [0, 0, 1, 1], [], []>} : vector<8x8xbf16>, vector<8x8xbf16>, vector<8x8xf32> -> vector<8x8xf32>
    %32 = arith.truncf %31 : vector<8x8xf32> to vector<8x8xbf16>
    %c0_19 = arith.constant 0 : index
    %c0_20 = arith.constant 0 : index
    %c0_21 = arith.constant 0 : index
    %33 = vector.load %arg5[%c0_19, %c0_20, %c0_21] : memref<1x8x32xbf16, #tpu.memory_space<vmem>>, vector<1x8x8xbf16>
    %34 = vector.shape_cast %33 : vector<1x8x8xbf16> to vector<8x8xbf16>
    %35 = vector.shape_cast %32 : vector<8x8xbf16> to vector<1x8x8xbf16>
    tpu.vector_store %arg5[%c0_19, %c0_20, %c0_21], %35 {strides = array<i32>} : memref<1x8x32xbf16, #tpu.memory_space<vmem>>, vector<1x8x8xbf16>,
    %36 = vector.extract_strided_slice %5 {offsets = [0, 8], sizes = [8, 8], strides = [1, 1]} : vector<8x32xbf16> to vector<8x8xbf16>
    %37 = vector.extract_strided_slice %7 {offsets = [0, 8], sizes = [8, 8], strides = [1, 1]} : vector<8x32xbf16> to vector<8x8xbf16>
    %cst_22 = arith.constant dense<0.000000e+00> : vector<8x8xf32>
    %38 = tpu.matmul %36, %37, %cst_22 {dimension_numbers = #tpu.dot_dimension_numbers<[1], [1], [0], [0], [0, 0, 1, 0], [], []>} : vector<8x8xbf16>, vector<8x8xbf16>, vector<8x8xf32> -> vector<8x8xf32>
    %39 = vector.broadcast %11 : vector<1x8xf32> to vector<8x8xf32>
    %40 = arith.addf %38, %39 : vector<8x8xf32>
    %cst_23 = arith.constant dense<0xFF800000> : vector<8xf32>
    %41 = vector.multi_reduction <maximumf>, %40, %cst_23 [1] : vector<8x8xf32> to vector<8xf32>
    %42 = vector.shape_cast %41 : vector<8xf32> to vector<8x1xf32>
    %43 = vector.broadcast %42 : vector<8x1xf32> to vector<8x8xf32>
    %44 = arith.subf %40, %43 : vector<8x8xf32>
    %45 = math.exp %44 : vector<8x8xf32>
    %cst_24 = arith.constant dense<0.000000e+00> : vector<8xf32>
    %46 = vector.multi_reduction <add>, %45, %cst_24 [1] : vector<8x8xf32> to vector<8xf32>
    %47 = vector.shape_cast %46 : vector<8xf32> to vector<8x1xf32>
    %48 = vector.broadcast %47 : vector<8x1xf32> to vector<8x8xf32>
    %49 = arith.divf %45, %48 : vector<8x8xf32>
    %c0_25 = arith.constant 0 : index
    %c1 = arith.constant 1 : index
    %c0_26 = arith.constant 0 : index
    %c0_27 = arith.constant 0 : index
    %50 = vector.load %arg6[%c0_25, %c1, %c0_26, %c0_27] : memref<1x4x8x8xf32, #tpu.memory_space<vmem>>, vector<1x1x8x8xf32>
    %51 = vector.shape_cast %50 : vector<1x1x8x8xf32> to vector<8x8xf32>
    %52 = vector.shape_cast %49 : vector<8x8xf32> to vector<1x1x8x8xf32>
    tpu.vector_store %arg6[%c0_25, %c1, %c0_26, %c0_27], %52 {strides = array<i32>} : memref<1x4x8x8xf32, #tpu.memory_space<vmem>>, vector<1x1x8x8xf32>,
    %53 = arith.truncf %49 : vector<8x8xf32> to vector<8x8xbf16>
    %54 = vector.extract_strided_slice %9 {offsets = [0, 8], sizes = [8, 8], strides = [1, 1]} : vector<8x32xbf16> to vector<8x8xbf16>
    %cst_28 = arith.constant dense<0.000000e+00> : vector<8x8xf32>
    %55 = tpu.matmul %53, %54, %cst_28 {dimension_numbers = #tpu.dot_dimension_numbers<[1], [0], [0], [1], [0, 0, 1, 1], [], []>} : vector<8x8xbf16>, vector<8x8xbf16>, vector<8x8xf32> -> vector<8x8xf32>
    %56 = arith.truncf %55 : vector<8x8xf32> to vector<8x8xbf16>
    %c0_29 = arith.constant 0 : index
    %c0_30 = arith.constant 0 : index
    %c8 = arith.constant 8 : index
    %57 = vector.load %arg5[%c0_29, %c0_30, %c8] : memref<1x8x32xbf16, #tpu.memory_space<vmem>>, vector<1x8x8xbf16>
    %58 = vector.shape_cast %57 : vector<1x8x8xbf16> to vector<8x8xbf16>
    %59 = vector.shape_cast %56 : vector<8x8xbf16> to vector<1x8x8xbf16>
    tpu.vector_store %arg5[%c0_29, %c0_30, %c8], %59 {strides = array<i32>} : memref<1x8x32xbf16, #tpu.memory_space<vmem>>, vector<1x8x8xbf16>,
    %60 = vector.extract_strided_slice %5 {offsets = [0, 16], sizes = [8, 8], strides = [1, 1]} : vector<8x32xbf16> to vector<8x8xbf16>
    %61 = vector.extract_strided_slice %7 {offsets = [0, 16], sizes = [8, 8], strides = [1, 1]} : vector<8x32xbf16> to vector<8x8xbf16>
    %cst_31 = arith.constant dense<0.000000e+00> : vector<8x8xf32>
    %62 = tpu.matmul %60, %61, %cst_31 {dimension_numbers = #tpu.dot_dimension_numbers<[1], [1], [0], [0], [0, 0, 1, 0], [], []>} : vector<8x8xbf16>, vector<8x8xbf16>, vector<8x8xf32> -> vector<8x8xf32>
    %63 = vector.broadcast %11 : vector<1x8xf32> to vector<8x8xf32>
    %64 = arith.addf %62, %63 : vector<8x8xf32>
    %cst_32 = arith.constant dense<0xFF800000> : vector<8xf32>
    %65 = vector.multi_reduction <maximumf>, %64, %cst_32 [1] : vector<8x8xf32> to vector<8xf32>
    %66 = vector.shape_cast %65 : vector<8xf32> to vector<8x1xf32>
    %67 = vector.broadcast %66 : vector<8x1xf32> to vector<8x8xf32>
    %68 = arith.subf %64, %67 : vector<8x8xf32>
    %69 = math.exp %68 : vector<8x8xf32>
    %cst_33 = arith.constant dense<0.000000e+00> : vector<8xf32>
    %70 = vector.multi_reduction <add>, %69, %cst_33 [1] : vector<8x8xf32> to vector<8xf32>
    %71 = vector.shape_cast %70 : vector<8xf32> to vector<8x1xf32>
    %72 = vector.broadcast %71 : vector<8x1xf32> to vector<8x8xf32>
    %73 = arith.divf %69, %72 : vector<8x8xf32>
    %c0_34 = arith.constant 0 : index
    %c2 = arith.constant 2 : index
    %c0_35 = arith.constant 0 : index
    %c0_36 = arith.constant 0 : index
    %74 = vector.load %arg6[%c0_34, %c2, %c0_35, %c0_36] : memref<1x4x8x8xf32, #tpu.memory_space<vmem>>, vector<1x1x8x8xf32>
    %75 = vector.shape_cast %74 : vector<1x1x8x8xf32> to vector<8x8xf32>
    %76 = vector.shape_cast %73 : vector<8x8xf32> to vector<1x1x8x8xf32>
    tpu.vector_store %arg6[%c0_34, %c2, %c0_35, %c0_36], %76 {strides = array<i32>} : memref<1x4x8x8xf32, #tpu.memory_space<vmem>>, vector<1x1x8x8xf32>,
    %77 = arith.truncf %73 : vector<8x8xf32> to vector<8x8xbf16>
    %78 = vector.extract_strided_slice %9 {offsets = [0, 16], sizes = [8, 8], strides = [1, 1]} : vector<8x32xbf16> to vector<8x8xbf16>
    %cst_37 = arith.constant dense<0.000000e+00> : vector<8x8xf32>
    %79 = tpu.matmul %77, %78, %cst_37 {dimension_numbers = #tpu.dot_dimension_numbers<[1], [0], [0], [1], [0, 0, 1, 1], [], []>} : vector<8x8xbf16>, vector<8x8xbf16>, vector<8x8xf32> -> vector<8x8xf32>
    %80 = arith.truncf %79 : vector<8x8xf32> to vector<8x8xbf16>
    %c0_38 = arith.constant 0 : index
    %c0_39 = arith.constant 0 : index
    %c16 = arith.constant 16 : index
    %81 = vector.load %arg5[%c0_38, %c0_39, %c16] : memref<1x8x32xbf16, #tpu.memory_space<vmem>>, vector<1x8x8xbf16>
    %82 = vector.shape_cast %81 : vector<1x8x8xbf16> to vector<8x8xbf16>
    %83 = vector.shape_cast %80 : vector<8x8xbf16> to vector<1x8x8xbf16>
    tpu.vector_store %arg5[%c0_38, %c0_39, %c16], %83 {strides = array<i32>} : memref<1x8x32xbf16, #tpu.memory_space<vmem>>, vector<1x8x8xbf16>,
    %84 = vector.extract_strided_slice %5 {offsets = [0, 24], sizes = [8, 8], strides = [1, 1]} : vector<8x32xbf16> to vector<8x8xbf16>
    %85 = vector.extract_strided_slice %7 {offsets = [0, 24], sizes = [8, 8], strides = [1, 1]} : vector<8x32xbf16> to vector<8x8xbf16>
    %cst_40 = arith.constant dense<0.000000e+00> : vector<8x8xf32>
    %86 = tpu.matmul %84, %85, %cst_40 {dimension_numbers = #tpu.dot_dimension_numbers<[1], [1], [0], [0], [0, 0, 1, 0], [], []>} : vector<8x8xbf16>, vector<8x8xbf16>, vector<8x8xf32> -> vector<8x8xf32>
    %87 = vector.broadcast %11 : vector<1x8xf32> to vector<8x8xf32>
    %88 = arith.addf %86, %87 : vector<8x8xf32>
    %cst_41 = arith.constant dense<0xFF800000> : vector<8xf32>
    %89 = vector.multi_reduction <maximumf>, %88, %cst_41 [1] : vector<8x8xf32> to vector<8xf32>
    %90 = vector.shape_cast %89 : vector<8xf32> to vector<8x1xf32>
    %91 = vector.broadcast %90 : vector<8x1xf32> to vector<8x8xf32>
    %92 = arith.subf %88, %91 : vector<8x8xf32>
    %93 = math.exp %92 : vector<8x8xf32>
    %cst_42 = arith.constant dense<0.000000e+00> : vector<8xf32>
    %94 = vector.multi_reduction <add>, %93, %cst_42 [1] : vector<8x8xf32> to vector<8xf32>
    %95 = vector.shape_cast %94 : vector<8xf32> to vector<8x1xf32>
    %96 = vector.broadcast %95 : vector<8x1xf32> to vector<8x8xf32>
    %97 = arith.divf %93, %96 : vector<8x8xf32>
    %c0_43 = arith.constant 0 : index
    %c3 = arith.constant 3 : index
    %c0_44 = arith.constant 0 : index
    %c0_45 = arith.constant 0 : index
    %98 = vector.load %arg6[%c0_43, %c3, %c0_44, %c0_45] : memref<1x4x8x8xf32, #tpu.memory_space<vmem>>, vector<1x1x8x8xf32>
    %99 = vector.shape_cast %98 : vector<1x1x8x8xf32> to vector<8x8xf32>
    %100 = vector.shape_cast %97 : vector<8x8xf32> to vector<1x1x8x8xf32>
    tpu.vector_store %arg6[%c0_43, %c3, %c0_44, %c0_45], %100 {strides = array<i32>} : memref<1x4x8x8xf32, #tpu.memory_space<vmem>>, vector<1x1x8x8xf32>,
    %101 = arith.truncf %97 : vector<8x8xf32> to vector<8x8xbf16>
    %102 = vector.extract_strided_slice %9 {offsets = [0, 24], sizes = [8, 8], strides = [1, 1]} : vector<8x32xbf16> to vector<8x8xbf16>
    %cst_46 = arith.constant dense<0.000000e+00> : vector<8x8xf32>
    %103 = tpu.matmul %101, %102, %cst_46 {dimension_numbers = #tpu.dot_dimension_numbers<[1], [0], [0], [1], [0, 0, 1, 1], [], []>} : vector<8x8xbf16>, vector<8x8xbf16>, vector<8x8xf32> -> vector<8x8xf32>
    %104 = arith.truncf %103 : vector<8x8xf32> to vector<8x8xbf16>
    %c0_47 = arith.constant 0 : index
    %c0_48 = arith.constant 0 : index
    %c24 = arith.constant 24 : index
    %105 = vector.load %arg5[%c0_47, %c0_48, %c24] : memref<1x8x32xbf16, #tpu.memory_space<vmem>>, vector<1x8x8xbf16>
    %106 = vector.shape_cast %105 : vector<1x8x8xbf16> to vector<8x8xbf16>
    %107 = vector.shape_cast %104 : vector<8x8xbf16> to vector<1x8x8xbf16>
    tpu.vector_store %arg5[%c0_47, %c0_48, %c24], %107 {strides = array<i32>} : memref<1x8x32xbf16, #tpu.memory_space<vmem>>, vector<1x8x8xbf16>,
    return
  }
  func.func @transform_0(%arg0: i32) -> (i32, i32, i32) {
    %c0_i32 = arith.constant 0 : i32
    %c0_i32_0 = arith.constant 0 : i32
    %c0_i32_1 = arith.constant 0 : i32
    return %arg0, %c0_i32, %c0_i32_0 : i32, i32, i32
  }
  func.func @transform_1(%arg0: i32) -> (i32, i32, i32) {
    %c0_i32 = arith.constant 0 : i32
    %c0_i32_0 = arith.constant 0 : i32
    %c0_i32_1 = arith.constant 0 : i32
    return %arg0, %c0_i32, %c0_i32_0 : i32, i32, i32
  }
  func.func @transform_2(%arg0: i32) -> (i32, i32, i32) {
    %c0_i32 = arith.constant 0 : i32
    %c0_i32_0 = arith.constant 0 : i32
    %c0_i32_1 = arith.constant 0 : i32
    return %arg0, %c0_i32, %c0_i32_0 : i32, i32, i32
  }
  func.func @transform_3(%arg0: i32) -> (i32, i32, i32) {
    %c0_i32 = arith.constant 0 : i32
    %c0_i32_0 = arith.constant 0 : i32
    %c0_i32_1 = arith.constant 0 : i32
    return %arg0, %c0_i32, %c0_i32_0 : i32, i32, i32
  }
  func.func @transform_4(%arg0: i32) -> (i32, i32, i32) {
    %c0_i32 = arith.constant 0 : i32
    %c0_i32_0 = arith.constant 0 : i32
    %c0_i32_1 = arith.constant 0 : i32
    return %arg0, %c0_i32, %c0_i32_0 : i32, i32, i32
  }
  func.func @transform_5(%arg0: i32) -> (i32, i32, i32, i32) {
    %c0_i32 = arith.constant 0 : i32
    %c0_i32_0 = arith.constant 0 : i32
    %c0_i32_1 = arith.constant 0 : i32
    %c0_i32_2 = arith.constant 0 : i32
    return %arg0, %c0_i32, %c0_i32_0, %c0_i32_1 : i32, i32, i32, i32
  }
}

module attributes {stable_mosaic.version = 11 : i64} {
  func.func @_ffn_res_ln_kernel(%arg0: i32, %arg1: i32, %arg2: memref<16x32xbf16, #tpu.memory_space<vmem>>, %arg3: memref<32x64xbf16, #tpu.memory_space<vmem>>, %arg4: memref<1x64xf32, #tpu.memory_space<vmem>>, %arg5: memref<64x32xbf16, #tpu.memory_space<vmem>>, %arg6: memref<1x32xf32, #tpu.memory_space<vmem>>, %arg7: memref<1x32xf32, #tpu.memory_space<vmem>>, %arg8: memref<1x32xf32, #tpu.memory_space<vmem>>, %arg9: memref<16x32xbf16, #tpu.memory_space<vmem>>, %arg10: memref<16x32xf32, #tpu.memory_space<vmem>>) attributes {dimension_semantics = [#tpu.dimension_semantics<parallel>, #tpu.dimension_semantics<arbitrary>], iteration_bounds = array<i64: 1, 1>, scalar_prefetch = 0 : i64, scratch_operands = 1 : i64, tpu.core_type = #tpu.core_type<tc>, window_params = [{transform_indices = @transform_0, window_bounds = array<i64: 16, 32>}, {transform_indices = @transform_1, window_bounds = array<i64: 32, 64>}, {transform_indices = @transform_2, window_bounds = array<i64: 1, 64>}, {transform_indices = @transform_3, window_bounds = array<i64: 64, 32>}, {pipeline_mode = #tpu.pipeline_mode<synchronous>, transform_indices = @transform_4, window_bounds = array<i64: 1, 32>}, {pipeline_mode = #tpu.pipeline_mode<synchronous>, transform_indices = @transform_5, window_bounds = array<i64: 1, 32>}, {pipeline_mode = #tpu.pipeline_mode<synchronous>, transform_indices = @transform_6, window_bounds = array<i64: 1, 32>}, {transform_indices = @transform_7, window_bounds = array<i64: 16, 32>}]} {
    %c0_i32 = arith.constant 0 : i32
    %0 = arith.cmpi eq, %arg1, %c0_i32 : i32
    %1 = arith.extui %0 : i1 to i32
    %c0_i32_0 = arith.constant 0 : i32
    %2 = arith.cmpi ne, %1, %c0_i32_0 : i32
    scf.if %2 {
      %cst_16 = arith.constant 0.000000e+00 : f32
      %20 = vector.broadcast %cst_16 : f32 to vector<16x32xf32>
      %c0_17 = arith.constant 0 : index
      %c0_18 = arith.constant 0 : index
      %21 = vector.load %arg10[%c0_17, %c0_18] : memref<16x32xf32, #tpu.memory_space<vmem>>, vector<16x32xf32>
      tpu.vector_store %arg10[%c0_17, %c0_18], %20 {strides = array<i32>} : memref<16x32xf32, #tpu.memory_space<vmem>>, vector<16x32xf32>,
    } else {
    }
    %c0 = arith.constant 0 : index
    %c0_1 = arith.constant 0 : index
    %3 = vector.load %arg2[%c0, %c0_1] : memref<16x32xbf16, #tpu.memory_space<vmem>>, vector<16x32xbf16>
    %c0_2 = arith.constant 0 : index
    %c0_3 = arith.constant 0 : index
    %4 = vector.load %arg3[%c0_2, %c0_3] : memref<32x64xbf16, #tpu.memory_space<vmem>>, vector<32x64xbf16>
    %cst = arith.constant dense<0.000000e+00> : vector<16x64xf32>
    %5 = tpu.matmul %3, %4, %cst {dimension_numbers = #tpu.dot_dimension_numbers<[1], [0], [0], [1], [0, 0, 1, 1], [], []>} : vector<16x32xbf16>, vector<32x64xbf16>, vector<16x64xf32> -> vector<16x64xf32>
    %c0_4 = arith.constant 0 : index
    %c0_5 = arith.constant 0 : index
    %6 = vector.load %arg4[%c0_4, %c0_5] : memref<1x64xf32, #tpu.memory_space<vmem>>, vector<1x64xf32>
    %7 = vector.broadcast %6 : vector<1x64xf32> to vector<16x64xf32>
    %8 = arith.addf %5, %7 : vector<16x64xf32>
    %cst_6 = arith.constant 0.000000e+00 : f32
    %9 = vector.broadcast %cst_6 : f32 to vector<16x64xf32>
    %10 = arith.maximumf %8, %9 : vector<16x64xf32>
    %c0_7 = arith.constant 0 : index
    %c0_8 = arith.constant 0 : index
    %11 = vector.load %arg10[%c0_7, %c0_8] : memref<16x32xf32, #tpu.memory_space<vmem>>, vector<16x32xf32>
    %12 = arith.truncf %10 : vector<16x64xf32> to vector<16x64xbf16>
    %c0_9 = arith.constant 0 : index
    %c0_10 = arith.constant 0 : index
    %13 = vector.load %arg5[%c0_9, %c0_10] : memref<64x32xbf16, #tpu.memory_space<vmem>>, vector<64x32xbf16>
    %cst_11 = arith.constant dense<0.000000e+00> : vector<16x32xf32>
    %14 = tpu.matmul %12, %13, %cst_11 {dimension_numbers = #tpu.dot_dimension_numbers<[1], [0], [0], [1], [0, 0, 1, 1], [], []>} : vector<16x64xbf16>, vector<64x32xbf16>, vector<16x32xf32> -> vector<16x32xf32>
    %15 = arith.addf %11, %14 : vector<16x32xf32>
    %c0_12 = arith.constant 0 : index
    %c0_13 = arith.constant 0 : index
    %16 = vector.load %arg10[%c0_12, %c0_13] : memref<16x32xf32, #tpu.memory_space<vmem>>, vector<16x32xf32>
    tpu.vector_store %arg10[%c0_12, %c0_13], %15 {strides = array<i32>} : memref<16x32xf32, #tpu.memory_space<vmem>>, vector<16x32xf32>,
    %c0_i32_14 = arith.constant 0 : i32
    %17 = arith.cmpi eq, %arg1, %c0_i32_14 : i32
    %18 = arith.extui %17 : i1 to i32
    %c0_i32_15 = arith.constant 0 : i32
    %19 = arith.cmpi ne, %18, %c0_i32_15 : i32
    scf.if %19 {
      %c0_16 = arith.constant 0 : index
      %c0_17 = arith.constant 0 : index
      %20 = vector.load %arg2[%c0_16, %c0_17] : memref<16x32xbf16, #tpu.memory_space<vmem>>, vector<16x32xbf16>
      %21 = arith.extf %20 : vector<16x32xbf16> to vector<16x32xf32>
      %c0_18 = arith.constant 0 : index
      %c0_19 = arith.constant 0 : index
      %22 = vector.load %arg10[%c0_18, %c0_19] : memref<16x32xf32, #tpu.memory_space<vmem>>, vector<16x32xf32>
      %23 = arith.addf %21, %22 : vector<16x32xf32>
      %c0_20 = arith.constant 0 : index
      %c0_21 = arith.constant 0 : index
      %24 = vector.load %arg6[%c0_20, %c0_21] : memref<1x32xf32, #tpu.memory_space<vmem>>, vector<1x32xf32>
      %25 = vector.broadcast %24 : vector<1x32xf32> to vector<16x32xf32>
      %26 = arith.addf %23, %25 : vector<16x32xf32>
      %c0_22 = arith.constant 0 : index
      %c0_23 = arith.constant 0 : index
      %27 = vector.load %arg7[%c0_22, %c0_23] : memref<1x32xf32, #tpu.memory_space<vmem>>, vector<1x32xf32>
      %c0_24 = arith.constant 0 : index
      %c0_25 = arith.constant 0 : index
      %28 = vector.load %arg8[%c0_24, %c0_25] : memref<1x32xf32, #tpu.memory_space<vmem>>, vector<1x32xf32>
      %cst_26 = arith.constant dense<0.000000e+00> : vector<16xf32>
      %29 = vector.multi_reduction <add>, %26, %cst_26 [1] : vector<16x32xf32> to vector<16xf32>
      %30 = vector.shape_cast %29 : vector<16xf32> to vector<16x1xf32>
      %cst_27 = arith.constant 3.200000e+01 : f32
      %31 = vector.broadcast %cst_27 : f32 to vector<16x1xf32>
      %32 = arith.divf %30, %31 : vector<16x1xf32>
      %33 = vector.broadcast %32 : vector<16x1xf32> to vector<16x32xf32>
      %34 = arith.subf %26, %33 : vector<16x32xf32>
      %35 = arith.mulf %34, %34 : vector<16x32xf32>
      %cst_28 = arith.constant dense<0.000000e+00> : vector<16xf32>
      %36 = vector.multi_reduction <add>, %35, %cst_28 [1] : vector<16x32xf32> to vector<16xf32>
      %37 = vector.shape_cast %36 : vector<16xf32> to vector<16x1xf32>
      %cst_29 = arith.constant 3.100000e+01 : f32
      %38 = vector.broadcast %cst_29 : f32 to vector<16x1xf32>
      %39 = arith.divf %37, %38 : vector<16x1xf32>
      %40 = vector.broadcast %27 : vector<1x32xf32> to vector<16x32xf32>
      %41 = arith.mulf %40, %34 : vector<16x32xf32>
      %42 = math.sqrt %39 : vector<16x1xf32>
      %cst_30 = arith.constant 9.99999997E-7 : f32
      %43 = vector.broadcast %cst_30 : f32 to vector<16x1xf32>
      %44 = arith.addf %42, %43 : vector<16x1xf32>
      %45 = vector.broadcast %44 : vector<16x1xf32> to vector<16x32xf32>
      %46 = arith.divf %41, %45 : vector<16x32xf32>
      %47 = vector.broadcast %28 : vector<1x32xf32> to vector<16x32xf32>
      %48 = arith.addf %46, %47 : vector<16x32xf32>
      %49 = arith.truncf %48 : vector<16x32xf32> to vector<16x32xbf16>
      %c0_31 = arith.constant 0 : index
      %c0_32 = arith.constant 0 : index
      %50 = vector.load %arg9[%c0_31, %c0_32] : memref<16x32xbf16, #tpu.memory_space<vmem>>, vector<16x32xbf16>
      tpu.vector_store %arg9[%c0_31, %c0_32], %49 {strides = array<i32>} : memref<16x32xbf16, #tpu.memory_space<vmem>>, vector<16x32xbf16>,
    } else {
    }
    return
  }
  func.func @transform_0(%arg0: i32, %arg1: i32) -> (i32, i32) {
    %c0_i32 = arith.constant 0 : i32
    %c0_i32_0 = arith.constant 0 : i32
    return %arg0, %c0_i32 : i32, i32
  }
  func.func @transform_1(%arg0: i32, %arg1: i32) -> (i32, i32) {
    %c0_i32 = arith.constant 0 : i32
    %c0_i32_0 = arith.constant 0 : i32
    return %c0_i32, %arg1 : i32, i32
  }
  func.func @transform_2(%arg0: i32, %arg1: i32) -> (i32, i32) {
    %c0_i32 = arith.constant 0 : i32
    %c0_i32_0 = arith.constant 0 : i32
    return %c0_i32, %arg1 : i32, i32
  }
  func.func @transform_3(%arg0: i32, %arg1: i32) -> (i32, i32) {
    %c0_i32 = arith.constant 0 : i32
    %c0_i32_0 = arith.constant 0 : i32
    return %arg1, %c0_i32 : i32, i32
  }
  func.func @transform_4(%arg0: i32, %arg1: i32) -> (i32, i32) {
    %c0_i32 = arith.constant 0 : i32
    %c0_i32_0 = arith.constant 0 : i32
    %c0_i32_1 = arith.constant 0 : i32
    return %c0_i32, %c0_i32_0 : i32, i32
  }
  func.func @transform_5(%arg0: i32, %arg1: i32) -> (i32, i32) {
    %c0_i32 = arith.constant 0 : i32
    %c0_i32_0 = arith.constant 0 : i32
    %c0_i32_1 = arith.constant 0 : i32
    return %c0_i32, %c0_i32_0 : i32, i32
  }
  func.func @transform_6(%arg0: i32, %arg1: i32) -> (i32, i32) {
    %c0_i32 = arith.constant 0 : i32
    %c0_i32_0 = arith.constant 0 : i32
    %c0_i32_1 = arith.constant 0 : i32
    return %c0_i32, %c0_i32_0 : i32, i32
  }
  func.func @transform_7(%arg0: i32, %arg1: i32) -> (i32, i32) {
    %c0_i32 = arith.constant 0 : i32
    %c0_i32_0 = arith.constant 0 : i32
    return %arg0, %c0_i32 : i32, i32
  }
}

module attributes {stable_mosaic.version = 11 : i64} {
  func.func @_layernorm_kernel(%arg0: i32, %arg1: memref<16x32xbf16, #tpu.memory_space<vmem>>, %arg2: memref<1x32xf32, #tpu.memory_space<vmem>>, %arg3: memref<1x32xf32, #tpu.memory_space<vmem>>, %arg4: memref<16x32xbf16, #tpu.memory_space<vmem>>) attributes {dimension_semantics = [#tpu.dimension_semantics<parallel>], iteration_bounds = array<i64: 1>, scalar_prefetch = 0 : i64, scratch_operands = 0 : i64, tpu.core_type = #tpu.core_type<tc>, window_params = [{transform_indices = @transform_0, window_bounds = array<i64: 16, 32>}, {pipeline_mode = #tpu.pipeline_mode<synchronous>, transform_indices = @transform_1, window_bounds = array<i64: 1, 32>}, {pipeline_mode = #tpu.pipeline_mode<synchronous>, transform_indices = @transform_2, window_bounds = array<i64: 1, 32>}, {transform_indices = @transform_3, window_bounds = array<i64: 16, 32>}]} {
    %c0 = arith.constant 0 : index
    %c0_0 = arith.constant 0 : index
    %0 = vector.load %arg1[%c0, %c0_0] : memref<16x32xbf16, #tpu.memory_space<vmem>>, vector<16x32xbf16>
    %1 = arith.extf %0 : vector<16x32xbf16> to vector<16x32xf32>
    %c0_1 = arith.constant 0 : index
    %c0_2 = arith.constant 0 : index
    %2 = vector.load %arg2[%c0_1, %c0_2] : memref<1x32xf32, #tpu.memory_space<vmem>>, vector<1x32xf32>
    %c0_3 = arith.constant 0 : index
    %c0_4 = arith.constant 0 : index
    %3 = vector.load %arg3[%c0_3, %c0_4] : memref<1x32xf32, #tpu.memory_space<vmem>>, vector<1x32xf32>
    %cst = arith.constant dense<0.000000e+00> : vector<16xf32>
    %4 = vector.multi_reduction <add>, %1, %cst [1] : vector<16x32xf32> to vector<16xf32>
    %5 = vector.shape_cast %4 : vector<16xf32> to vector<16x1xf32>
    %cst_5 = arith.constant 3.200000e+01 : f32
    %6 = vector.broadcast %cst_5 : f32 to vector<16x1xf32>
    %7 = arith.divf %5, %6 : vector<16x1xf32>
    %8 = vector.broadcast %7 : vector<16x1xf32> to vector<16x32xf32>
    %9 = arith.subf %1, %8 : vector<16x32xf32>
    %10 = arith.mulf %9, %9 : vector<16x32xf32>
    %cst_6 = arith.constant dense<0.000000e+00> : vector<16xf32>
    %11 = vector.multi_reduction <add>, %10, %cst_6 [1] : vector<16x32xf32> to vector<16xf32>
    %12 = vector.shape_cast %11 : vector<16xf32> to vector<16x1xf32>
    %cst_7 = arith.constant 3.100000e+01 : f32
    %13 = vector.broadcast %cst_7 : f32 to vector<16x1xf32>
    %14 = arith.divf %12, %13 : vector<16x1xf32>
    %15 = vector.broadcast %2 : vector<1x32xf32> to vector<16x32xf32>
    %16 = arith.mulf %15, %9 : vector<16x32xf32>
    %17 = math.sqrt %14 : vector<16x1xf32>
    %cst_8 = arith.constant 9.99999997E-7 : f32
    %18 = vector.broadcast %cst_8 : f32 to vector<16x1xf32>
    %19 = arith.addf %17, %18 : vector<16x1xf32>
    %20 = vector.broadcast %19 : vector<16x1xf32> to vector<16x32xf32>
    %21 = arith.divf %16, %20 : vector<16x32xf32>
    %22 = vector.broadcast %3 : vector<1x32xf32> to vector<16x32xf32>
    %23 = arith.addf %21, %22 : vector<16x32xf32>
    %24 = arith.truncf %23 : vector<16x32xf32> to vector<16x32xbf16>
    %c0_9 = arith.constant 0 : index
    %c0_10 = arith.constant 0 : index
    %25 = vector.load %arg4[%c0_9, %c0_10] : memref<16x32xbf16, #tpu.memory_space<vmem>>, vector<16x32xbf16>
    tpu.vector_store %arg4[%c0_9, %c0_10], %24 {strides = array<i32>} : memref<16x32xbf16, #tpu.memory_space<vmem>>, vector<16x32xbf16>,
    return
  }
  func.func @transform_0(%arg0: i32) -> (i32, i32) {
    %c0_i32 = arith.constant 0 : i32
    %c0_i32_0 = arith.constant 0 : i32
    return %arg0, %c0_i32 : i32, i32
  }
  func.func @transform_1(%arg0: i32) -> (i32, i32) {
    %c0_i32 = arith.constant 0 : i32
    %c0_i32_0 = arith.constant 0 : i32
    %c0_i32_1 = arith.constant 0 : i32
    return %c0_i32, %c0_i32_0 : i32, i32
  }
  func.func @transform_2(%arg0: i32) -> (i32, i32) {
    %c0_i32 = arith.constant 0 : i32
    %c0_i32_0 = arith.constant 0 : i32
    %c0_i32_1 = arith.constant 0 : i32
    return %c0_i32, %c0_i32_0 : i32, i32
  }
  func.func @transform_3(%arg0: i32) -> (i32, i32) {
    %c0_i32 = arith.constant 0 : i32
    %c0_i32_0 = arith.constant 0 : i32
    return %arg0, %c0_i32 : i32, i32
  }
}

module attributes {stable_mosaic.version = 11 : i64} {
  func.func @_attention_kernel(%arg0: i32, %arg1: memref<1x8x32xbf16, #tpu.memory_space<vmem>>, %arg2: memref<1x8x32xbf16, #tpu.memory_space<vmem>>, %arg3: memref<1x8x32xbf16, #tpu.memory_space<vmem>>, %arg4: memref<1x1x8xf32, #tpu.memory_space<vmem>>, %arg5: memref<1x8x32xbf16, #tpu.memory_space<vmem>>, %arg6: memref<1x4x8x8xf32, #tpu.memory_space<vmem>>) attributes {dimension_semantics = [#tpu.dimension_semantics<parallel>], iteration_bounds = array<i64: 2>, scalar_prefetch = 0 : i64, scratch_operands = 0 : i64, tpu.core_type = #tpu.core_type<tc>, window_params = [{transform_indices = @transform_0, window_bounds = array<i64: 1, 8, 32>}, {transform_indices = @transform_1, window_bounds = array<i64: 1, 8, 32>}, {transform_indices = @transform_2, window_bounds = array<i64: 1, 8, 32>}, {transform_indices = @transform_3, window_bounds = array<i64: 1, 1, 8>}, {transform_indices = @transform_4, window_bounds = array<i64: 1, 8, 32>}, {transform_indices = @transform_5, window_bounds = array<i64: 1, 4, 8, 8>}]} {
    %c0 = arith.constant 0 : index
    %c0_0 = arith.constant 0 : index
    %c0_1 = arith.constant 0 : index
    %0 = vector.load %arg1[%c0, %c0_0, %c0_1] : memref<1x8x32xbf16, #tpu.memory_space<vmem>>, vector<1x8x32xbf16>
    %1 = vector.shape_cast %0 : vector<1x8x32xbf16> to vector<8x32xbf16>
    %2 = arith.extf %1 : vector<8x32xbf16> to vector<8x32xf32>
    %cst = arith.constant 0.353553385 : f32
    %3 = vector.broadcast %cst : f32 to vector<8x32xf32>
    %4 = arith.mulf %2, %3 : vector<8x32xf32>
    %5 = arith.truncf %4 : vector<8x32xf32> to vector<8x32xbf16>
    %c0_2 = arith.constant 0 : index
    %c0_3 = arith.constant 0 : index
    %c0_4 = arith.constant 0 : index
    %6 = vector.load %arg2[%c0_2, %c0_3, %c0_4] : memref<1x8x32xbf16, #tpu.memory_space<vmem>>, vector<1x8x32xbf16>
    %7 = vector.shape_cast %6 : vector<1x8x32xbf16> to vector<8x32xbf16>
    %c0_5 = arith.constant 0 : index
    %c0_6 = arith.constant 0 : index
    %c0_7 = arith.constant 0 : index
    %8 = vector.load %arg3[%c0_5, %c0_6, %c0_7] : memref<1x8x32xbf16, #tpu.memory_space<vmem>>, vector<1x8x32xbf16>
    %9 = vector.shape_cast %8 : vector<1x8x32xbf16> to vector<8x32xbf16>
    %c0_8 = arith.constant 0 : index
    %c0_9 = arith.constant 0 : index
    %c0_10 = arith.constant 0 : index
    %10 = vector.load %arg4[%c0_8, %c0_9, %c0_10] : memref<1x1x8xf32, #tpu.memory_space<vmem>>, vector<1x1x8xf32>
    %11 = vector.shape_cast %10 : vector<1x1x8xf32> to vector<1x8xf32>
    %12 = tpu.iota {dimensions = array<i32: 0>} : vector<8x8xi32>
    %13 = tpu.iota {dimensions = array<i32: 1>} : vector<8x8xi32>
    %14 = arith.cmpi sgt, %13, %12 : vector<8x8xi32>
    %cst_11 = arith.constant -1.000000e+09 : f32
    %cst_12 = arith.constant 0.000000e+00 : f32
    %15 = vector.broadcast %cst_11 : f32 to vector<8x8xf32>
    %16 = vector.broadcast %cst_12 : f32 to vector<8x8xf32>
    %17 = arith.select %14, %15, %16 : vector<8x8xi1>, vector<8x8xf32>
    %18 = vector.extract_strided_slice %5 {offsets = [0, 0], sizes = [8, 8], strides = [1, 1]} : vector<8x32xbf16> to vector<8x8xbf16>
    %19 = vector.extract_strided_slice %7 {offsets = [0, 0], sizes = [8, 8], strides = [1, 1]} : vector<8x32xbf16> to vector<8x8xbf16>
    %cst_13 = arith.constant dense<0.000000e+00> : vector<8x8xf32>
    %20 = tpu.matmul %18, %19, %cst_13 {dimension_numbers = #tpu.dot_dimension_numbers<[1], [1], [0], [0], [0, 0, 1, 0], [], []>} : vector<8x8xbf16>, vector<8x8xbf16>, vector<8x8xf32> -> vector<8x8xf32>
    %21 = vector.broadcast %11 : vector<1x8xf32> to vector<8x8xf32>
    %22 = arith.addf %20, %21 : vector<8x8xf32>
    %23 = arith.addf %22, %17 : vector<8x8xf32>
    %cst_14 = arith.constant dense<0xFF800000> : vector<8xf32>
    %24 = vector.multi_reduction <maximumf>, %23, %cst_14 [1] : vector<8x8xf32> to vector<8xf32>
    %25 = vector.shape_cast %24 : vector<8xf32> to vector<8x1xf32>
    %26 = vector.broadcast %25 : vector<8x1xf32> to vector<8x8xf32>
    %27 = arith.subf %23, %26 : vector<8x8xf32>
    %28 = math.exp %27 : vector<8x8xf32>
    %cst_15 = arith.constant dense<0.000000e+00> : vector<8xf32>
    %29 = vector.multi_reduction <add>, %28, %cst_15 [1] : vector<8x8xf32> to vector<8xf32>
    %30 = vector.shape_cast %29 : vector<8xf32> to vector<8x1xf32>
    %31 = vector.broadcast %30 : vector<8x1xf32> to vector<8x8xf32>
    %32 = arith.divf %28, %31 : vector<8x8xf32>
    %c0_16 = arith.constant 0 : index
    %c0_17 = arith.constant 0 : index
    %c0_18 = arith.constant 0 : index
    %c0_19 = arith.constant 0 : index
    %33 = vector.load %arg6[%c0_16, %c0_17, %c0_18, %c0_19] : memref<1x4x8x8xf32, #tpu.memory_space<vmem>>, vector<1x1x8x8xf32>
    %34 = vector.shape_cast %33 : vector<1x1x8x8xf32> to vector<8x8xf32>
    %35 = vector.shape_cast %32 : vector<8x8xf32> to vector<1x1x8x8xf32>
    tpu.vector_store %arg6[%c0_16, %c0_17, %c0_18, %c0_19], %35 {strides = array<i32>} : memref<1x4x8x8xf32, #tpu.memory_space<vmem>>, vector<1x1x8x8xf32>,
    %36 = arith.truncf %32 : vector<8x8xf32> to vector<8x8xbf16>
    %37 = vector.extract_strided_slice %9 {offsets = [0, 0], sizes = [8, 8], strides = [1, 1]} : vector<8x32xbf16> to vector<8x8xbf16>
    %cst_20 = arith.constant dense<0.000000e+00> : vector<8x8xf32>
    %38 = tpu.matmul %36, %37, %cst_20 {dimension_numbers = #tpu.dot_dimension_numbers<[1], [0], [0], [1], [0, 0, 1, 1], [], []>} : vector<8x8xbf16>, vector<8x8xbf16>, vector<8x8xf32> -> vector<8x8xf32>
    %39 = arith.truncf %38 : vector<8x8xf32> to vector<8x8xbf16>
    %c0_21 = arith.constant 0 : index
    %c0_22 = arith.constant 0 : index
    %c0_23 = arith.constant 0 : index
    %40 = vector.load %arg5[%c0_21, %c0_22, %c0_23] : memref<1x8x32xbf16, #tpu.memory_space<vmem>>, vector<1x8x8xbf16>
    %41 = vector.shape_cast %40 : vector<1x8x8xbf16> to vector<8x8xbf16>
    %42 = vector.shape_cast %39 : vector<8x8xbf16> to vector<1x8x8xbf16>
    tpu.vector_store %arg5[%c0_21, %c0_22, %c0_23], %42 {strides = array<i32>} : memref<1x8x32xbf16, #tpu.memory_space<vmem>>, vector<1x8x8xbf16>,
    %43 = vector.extract_strided_slice %5 {offsets = [0, 8], sizes = [8, 8], strides = [1, 1]} : vector<8x32xbf16> to vector<8x8xbf16>
    %44 = vector.extract_strided_slice %7 {offsets = [0, 8], sizes = [8, 8], strides = [1, 1]} : vector<8x32xbf16> to vector<8x8xbf16>
    %cst_24 = arith.constant dense<0.000000e+00> : vector<8x8xf32>
    %45 = tpu.matmul %43, %44, %cst_24 {dimension_numbers = #tpu.dot_dimension_numbers<[1], [1], [0], [0], [0, 0, 1, 0], [], []>} : vector<8x8xbf16>, vector<8x8xbf16>, vector<8x8xf32> -> vector<8x8xf32>
    %46 = vector.broadcast %11 : vector<1x8xf32> to vector<8x8xf32>
    %47 = arith.addf %45, %46 : vector<8x8xf32>
    %48 = arith.addf %47, %17 : vector<8x8xf32>
    %cst_25 = arith.constant dense<0xFF800000> : vector<8xf32>
    %49 = vector.multi_reduction <maximumf>, %48, %cst_25 [1] : vector<8x8xf32> to vector<8xf32>
    %50 = vector.shape_cast %49 : vector<8xf32> to vector<8x1xf32>
    %51 = vector.broadcast %50 : vector<8x1xf32> to vector<8x8xf32>
    %52 = arith.subf %48, %51 : vector<8x8xf32>
    %53 = math.exp %52 : vector<8x8xf32>
    %cst_26 = arith.constant dense<0.000000e+00> : vector<8xf32>
    %54 = vector.multi_reduction <add>, %53, %cst_26 [1] : vector<8x8xf32> to vector<8xf32>
    %55 = vector.shape_cast %54 : vector<8xf32> to vector<8x1xf32>
    %56 = vector.broadcast %55 : vector<8x1xf32> to vector<8x8xf32>
    %57 = arith.divf %53, %56 : vector<8x8xf32>
    %c0_27 = arith.constant 0 : index
    %c1 = arith.constant 1 : index
    %c0_28 = arith.constant 0 : index
    %c0_29 = arith.constant 0 : index
    %58 = vector.load %arg6[%c0_27, %c1, %c0_28, %c0_29] : memref<1x4x8x8xf32, #tpu.memory_space<vmem>>, vector<1x1x8x8xf32>
    %59 = vector.shape_cast %58 : vector<1x1x8x8xf32> to vector<8x8xf32>
    %60 = vector.shape_cast %57 : vector<8x8xf32> to vector<1x1x8x8xf32>
    tpu.vector_store %arg6[%c0_27, %c1, %c0_28, %c0_29], %60 {strides = array<i32>} : memref<1x4x8x8xf32, #tpu.memory_space<vmem>>, vector<1x1x8x8xf32>,
    %61 = arith.truncf %57 : vector<8x8xf32> to vector<8x8xbf16>
    %62 = vector.extract_strided_slice %9 {offsets = [0, 8], sizes = [8, 8], strides = [1, 1]} : vector<8x32xbf16> to vector<8x8xbf16>
    %cst_30 = arith.constant dense<0.000000e+00> : vector<8x8xf32>
    %63 = tpu.matmul %61, %62, %cst_30 {dimension_numbers = #tpu.dot_dimension_numbers<[1], [0], [0], [1], [0, 0, 1, 1], [], []>} : vector<8x8xbf16>, vector<8x8xbf16>, vector<8x8xf32> -> vector<8x8xf32>
    %64 = arith.truncf %63 : vector<8x8xf32> to vector<8x8xbf16>
    %c0_31 = arith.constant 0 : index
    %c0_32 = arith.constant 0 : index
    %c8 = arith.constant 8 : index
    %65 = vector.load %arg5[%c0_31, %c0_32, %c8] : memref<1x8x32xbf16, #tpu.memory_space<vmem>>, vector<1x8x8xbf16>
    %66 = vector.shape_cast %65 : vector<1x8x8xbf16> to vector<8x8xbf16>
    %67 = vector.shape_cast %64 : vector<8x8xbf16> to vector<1x8x8xbf16>
    tpu.vector_store %arg5[%c0_31, %c0_32, %c8], %67 {strides = array<i32>} : memref<1x8x32xbf16, #tpu.memory_space<vmem>>, vector<1x8x8xbf16>,
    %68 = vector.extract_strided_slice %5 {offsets = [0, 16], sizes = [8, 8], strides = [1, 1]} : vector<8x32xbf16> to vector<8x8xbf16>
    %69 = vector.extract_strided_slice %7 {offsets = [0, 16], sizes = [8, 8], strides = [1, 1]} : vector<8x32xbf16> to vector<8x8xbf16>
    %cst_33 = arith.constant dense<0.000000e+00> : vector<8x8xf32>
    %70 = tpu.matmul %68, %69, %cst_33 {dimension_numbers = #tpu.dot_dimension_numbers<[1], [1], [0], [0], [0, 0, 1, 0], [], []>} : vector<8x8xbf16>, vector<8x8xbf16>, vector<8x8xf32> -> vector<8x8xf32>
    %71 = vector.broadcast %11 : vector<1x8xf32> to vector<8x8xf32>
    %72 = arith.addf %70, %71 : vector<8x8xf32>
    %73 = arith.addf %72, %17 : vector<8x8xf32>
    %cst_34 = arith.constant dense<0xFF800000> : vector<8xf32>
    %74 = vector.multi_reduction <maximumf>, %73, %cst_34 [1] : vector<8x8xf32> to vector<8xf32>
    %75 = vector.shape_cast %74 : vector<8xf32> to vector<8x1xf32>
    %76 = vector.broadcast %75 : vector<8x1xf32> to vector<8x8xf32>
    %77 = arith.subf %73, %76 : vector<8x8xf32>
    %78 = math.exp %77 : vector<8x8xf32>
    %cst_35 = arith.constant dense<0.000000e+00> : vector<8xf32>
    %79 = vector.multi_reduction <add>, %78, %cst_35 [1] : vector<8x8xf32> to vector<8xf32>
    %80 = vector.shape_cast %79 : vector<8xf32> to vector<8x1xf32>
    %81 = vector.broadcast %80 : vector<8x1xf32> to vector<8x8xf32>
    %82 = arith.divf %78, %81 : vector<8x8xf32>
    %c0_36 = arith.constant 0 : index
    %c2 = arith.constant 2 : index
    %c0_37 = arith.constant 0 : index
    %c0_38 = arith.constant 0 : index
    %83 = vector.load %arg6[%c0_36, %c2, %c0_37, %c0_38] : memref<1x4x8x8xf32, #tpu.memory_space<vmem>>, vector<1x1x8x8xf32>
    %84 = vector.shape_cast %83 : vector<1x1x8x8xf32> to vector<8x8xf32>
    %85 = vector.shape_cast %82 : vector<8x8xf32> to vector<1x1x8x8xf32>
    tpu.vector_store %arg6[%c0_36, %c2, %c0_37, %c0_38], %85 {strides = array<i32>} : memref<1x4x8x8xf32, #tpu.memory_space<vmem>>, vector<1x1x8x8xf32>,
    %86 = arith.truncf %82 : vector<8x8xf32> to vector<8x8xbf16>
    %87 = vector.extract_strided_slice %9 {offsets = [0, 16], sizes = [8, 8], strides = [1, 1]} : vector<8x32xbf16> to vector<8x8xbf16>
    %cst_39 = arith.constant dense<0.000000e+00> : vector<8x8xf32>
    %88 = tpu.matmul %86, %87, %cst_39 {dimension_numbers = #tpu.dot_dimension_numbers<[1], [0], [0], [1], [0, 0, 1, 1], [], []>} : vector<8x8xbf16>, vector<8x8xbf16>, vector<8x8xf32> -> vector<8x8xf32>
    %89 = arith.truncf %88 : vector<8x8xf32> to vector<8x8xbf16>
    %c0_40 = arith.constant 0 : index
    %c0_41 = arith.constant 0 : index
    %c16 = arith.constant 16 : index
    %90 = vector.load %arg5[%c0_40, %c0_41, %c16] : memref<1x8x32xbf16, #tpu.memory_space<vmem>>, vector<1x8x8xbf16>
    %91 = vector.shape_cast %90 : vector<1x8x8xbf16> to vector<8x8xbf16>
    %92 = vector.shape_cast %89 : vector<8x8xbf16> to vector<1x8x8xbf16>
    tpu.vector_store %arg5[%c0_40, %c0_41, %c16], %92 {strides = array<i32>} : memref<1x8x32xbf16, #tpu.memory_space<vmem>>, vector<1x8x8xbf16>,
    %93 = vector.extract_strided_slice %5 {offsets = [0, 24], sizes = [8, 8], strides = [1, 1]} : vector<8x32xbf16> to vector<8x8xbf16>
    %94 = vector.extract_strided_slice %7 {offsets = [0, 24], sizes = [8, 8], strides = [1, 1]} : vector<8x32xbf16> to vector<8x8xbf16>
    %cst_42 = arith.constant dense<0.000000e+00> : vector<8x8xf32>
    %95 = tpu.matmul %93, %94, %cst_42 {dimension_numbers = #tpu.dot_dimension_numbers<[1], [1], [0], [0], [0, 0, 1, 0], [], []>} : vector<8x8xbf16>, vector<8x8xbf16>, vector<8x8xf32> -> vector<8x8xf32>
    %96 = vector.broadcast %11 : vector<1x8xf32> to vector<8x8xf32>
    %97 = arith.addf %95, %96 : vector<8x8xf32>
    %98 = arith.addf %97, %17 : vector<8x8xf32>
    %cst_43 = arith.constant dense<0xFF800000> : vector<8xf32>
    %99 = vector.multi_reduction <maximumf>, %98, %cst_43 [1] : vector<8x8xf32> to vector<8xf32>
    %100 = vector.shape_cast %99 : vector<8xf32> to vector<8x1xf32>
    %101 = vector.broadcast %100 : vector<8x1xf32> to vector<8x8xf32>
    %102 = arith.subf %98, %101 : vector<8x8xf32>
    %103 = math.exp %102 : vector<8x8xf32>
    %cst_44 = arith.constant dense<0.000000e+00> : vector<8xf32>
    %104 = vector.multi_reduction <add>, %103, %cst_44 [1] : vector<8x8xf32> to vector<8xf32>
    %105 = vector.shape_cast %104 : vector<8xf32> to vector<8x1xf32>
    %106 = vector.broadcast %105 : vector<8x1xf32> to vector<8x8xf32>
    %107 = arith.divf %103, %106 : vector<8x8xf32>
    %c0_45 = arith.constant 0 : index
    %c3 = arith.constant 3 : index
    %c0_46 = arith.constant 0 : index
    %c0_47 = arith.constant 0 : index
    %108 = vector.load %arg6[%c0_45, %c3, %c0_46, %c0_47] : memref<1x4x8x8xf32, #tpu.memory_space<vmem>>, vector<1x1x8x8xf32>
    %109 = vector.shape_cast %108 : vector<1x1x8x8xf32> to vector<8x8xf32>
    %110 = vector.shape_cast %107 : vector<8x8xf32> to vector<1x1x8x8xf32>
    tpu.vector_store %arg6[%c0_45, %c3, %c0_46, %c0_47], %110 {strides = array<i32>} : memref<1x4x8x8xf32, #tpu.memory_space<vmem>>, vector<1x1x8x8xf32>,
    %111 = arith.truncf %107 : vector<8x8xf32> to vector<8x8xbf16>
    %112 = vector.extract_strided_slice %9 {offsets = [0, 24], sizes = [8, 8], strides = [1, 1]} : vector<8x32xbf16> to vector<8x8xbf16>
    %cst_48 = arith.constant dense<0.000000e+00> : vector<8x8xf32>
    %113 = tpu.matmul %111, %112, %cst_48 {dimension_numbers = #tpu.dot_dimension_numbers<[1], [0], [0], [1], [0, 0, 1, 1], [], []>} : vector<8x8xbf16>, vector<8x8xbf16>, vector<8x8xf32> -> vector<8x8xf32>
    %114 = arith.truncf %113 : vector<8x8xf32> to vector<8x8xbf16>
    %c0_49 = arith.constant 0 : index
    %c0_50 = arith.constant 0 : index
    %c24 = arith.constant 24 : index
    %115 = vector.load %arg5[%c0_49, %c0_50, %c24] : memref<1x8x32xbf16, #tpu.memory_space<vmem>>, vector<1x8x8xbf16>
    %116 = vector.shape_cast %115 : vector<1x8x8xbf16> to vector<8x8xbf16>
    %117 = vector.shape_cast %114 : vector<8x8xbf16> to vector<1x8x8xbf16>
    tpu.vector_store %arg5[%c0_49, %c0_50, %c24], %117 {strides = array<i32>} : memref<1x8x32xbf16, #tpu.memory_space<vmem>>, vector<1x8x8xbf16>,
    return
  }
  func.func @transform_0(%arg0: i32) -> (i32, i32, i32) {
    %c0_i32 = arith.constant 0 : i32
    %c0_i32_0 = arith.constant 0 : i32
    %c0_i32_1 = arith.constant 0 : i32
    return %arg0, %c0_i32, %c0_i32_0 : i32, i32, i32
  }
  func.func @transform_1(%arg0: i32) -> (i32, i32, i32) {
    %c0_i32 = arith.constant 0 : i32
    %c0_i32_0 = arith.constant 0 : i32
    %c0_i32_1 = arith.constant 0 : i32
    return %arg0, %c0_i32, %c0_i32_0 : i32, i32, i32
  }
  func.func @transform_2(%arg0: i32) -> (i32, i32, i32) {
    %c0_i32 = arith.constant 0 : i32
    %c0_i32_0 = arith.constant 0 : i32
    %c0_i32_1 = arith.constant 0 : i32
    return %arg0, %c0_i32, %c0_i32_0 : i32, i32, i32
  }
  func.func @transform_3(%arg0: i32) -> (i32, i32, i32) {
    %c0_i32 = arith.constant 0 : i32
    %c0_i32_0 = arith.constant 0 : i32
    %c0_i32_1 = arith.constant 0 : i32
    return %arg0, %c0_i32, %c0_i32_0 : i32, i32, i32
  }
  func.func @transform_4(%arg0: i32) -> (i32, i32, i32) {
    %c0_i32 = arith.constant 0 : i32
    %c0_i32_0 = arith.constant 0 : i32
    %c0_i32_1 = arith.constant 0 : i32
    return %arg0, %c0_i32, %c0_i32_0 : i32, i32, i32
  }
  func.func @transform_5(%arg0: i32) -> (i32, i32, i32, i32) {
    %c0_i32 = arith.constant 0 : i32
    %c0_i32_0 = arith.constant 0 : i32
    %c0_i32_1 = arith.constant 0 : i32
    %c0_i32_2 = arith.constant 0 : i32
    return %arg0, %c0_i32, %c0_i32_0, %c0_i32_1 : i32, i32, i32, i32
  }
}

module attributes {stable_mosaic.version = 11 : i64} {
  func.func @_linear_kernel(%arg0: i32, %arg1: i32, %arg2: i32, %arg3: memref<16x32xbf16, #tpu.memory_space<vmem>>, %arg4: memref<32x32xbf16, #tpu.memory_space<vmem>>, %arg5: memref<1x32xf32, #tpu.memory_space<vmem>>, %arg6: memref<16x32xbf16, #tpu.memory_space<vmem>>, %arg7: memref<16x32xf32, #tpu.memory_space<vmem>>) attributes {dimension_semantics = [#tpu.dimension_semantics<parallel>, #tpu.dimension_semantics<parallel>, #tpu.dimension_semantics<arbitrary>], iteration_bounds = array<i64: 1, 1, 1>, scalar_prefetch = 0 : i64, scratch_operands = 1 : i64, tpu.core_type = #tpu.core_type<tc>, window_params = [{transform_indices = @transform_0, window_bounds = array<i64: 16, 32>}, {transform_indices = @transform_1, window_bounds = array<i64: 32, 32>}, {transform_indices = @transform_2, window_bounds = array<i64: 1, 32>}, {transform_indices = @transform_3, window_bounds = array<i64: 16, 32>}]} {
    %c0_i32 = arith.constant 0 : i32
    %0 = arith.cmpi eq, %arg2, %c0_i32 : i32
    %1 = arith.extui %0 : i1 to i32
    %c0_i32_0 = arith.constant 0 : i32
    %2 = arith.cmpi ne, %1, %c0_i32_0 : i32
    scf.if %2 {
      %cst_10 = arith.constant 0.000000e+00 : f32
      %12 = vector.broadcast %cst_10 : f32 to vector<16x32xf32>
      %c0_11 = arith.constant 0 : index
      %c0_12 = arith.constant 0 : index
      %13 = vector.load %arg7[%c0_11, %c0_12] : memref<16x32xf32, #tpu.memory_space<vmem>>, vector<16x32xf32>
      tpu.vector_store %arg7[%c0_11, %c0_12], %12 {strides = array<i32>} : memref<16x32xf32, #tpu.memory_space<vmem>>, vector<16x32xf32>,
    } else {
    }
    %c0 = arith.constant 0 : index
    %c0_1 = arith.constant 0 : index
    %3 = vector.load %arg7[%c0, %c0_1] : memref<16x32xf32, #tpu.memory_space<vmem>>, vector<16x32xf32>
    %c0_2 = arith.constant 0 : index
    %c0_3 = arith.constant 0 : index
    %4 = vector.load %arg3[%c0_2, %c0_3] : memref<16x32xbf16, #tpu.memory_space<vmem>>, vector<16x32xbf16>
    %c0_4 = arith.constant 0 : index
    %c0_5 = arith.constant 0 : index
    %5 = vector.load %arg4[%c0_4, %c0_5] : memref<32x32xbf16, #tpu.memory_space<vmem>>, vector<32x32xbf16>
    %cst = arith.constant dense<0.000000e+00> : vector<16x32xf32>
    %6 = tpu.matmul %4, %5, %cst {dimension_numbers = #tpu.dot_dimension_numbers<[1], [0], [0], [1], [0, 0, 1, 1], [], []>} : vector<16x32xbf16>, vector<32x32xbf16>, vector<16x32xf32> -> vector<16x32xf32>
    %7 = arith.addf %3, %6 : vector<16x32xf32>
    %c0_6 = arith.constant 0 : index
    %c0_7 = arith.constant 0 : index
    %8 = vector.load %arg7[%c0_6, %c0_7] : memref<16x32xf32, #tpu.memory_space<vmem>>, vector<16x32xf32>
    tpu.vector_store %arg7[%c0_6, %c0_7], %7 {strides = array<i32>} : memref<16x32xf32, #tpu.memory_space<vmem>>, vector<16x32xf32>,
    %c0_i32_8 = arith.constant 0 : i32
    %9 = arith.cmpi eq, %arg2, %c0_i32_8 : i32
    %10 = arith.extui %9 : i1 to i32
    %c0_i32_9 = arith.constant 0 : i32
    %11 = arith.cmpi ne, %10, %c0_i32_9 : i32
    scf.if %11 {
      %c0_10 = arith.constant 0 : index
      %c0_11 = arith.constant 0 : index
      %12 = vector.load %arg7[%c0_10, %c0_11] : memref<16x32xf32, #tpu.memory_space<vmem>>, vector<16x32xf32>
      %c0_12 = arith.constant 0 : index
      %c0_13 = arith.constant 0 : index
      %13 = vector.load %arg5[%c0_12, %c0_13] : memref<1x32xf32, #tpu.memory_space<vmem>>, vector<1x32xf32>
      %14 = vector.broadcast %13 : vector<1x32xf32> to vector<16x32xf32>
      %15 = arith.addf %12, %14 : vector<16x32xf32>
      %16 = arith.truncf %15 : vector<16x32xf32> to vector<16x32xbf16>
      %c0_14 = arith.constant 0 : index
      %c0_15 = arith.constant 0 : index
      %17 = vector.load %arg6[%c0_14, %c0_15] : memref<16x32xbf16, #tpu.memory_space<vmem>>, vector<16x32xbf16>
      tpu.vector_store %arg6[%c0_14, %c0_15], %16 {strides = array<i32>} : memref<16x32xbf16, #tpu.memory_space<vmem>>, vector<16x32xbf16>,
    } else {
    }
    return
  }
  func.func @transform_0(%arg0: i32, %arg1: i32, %arg2: i32) -> (i32, i32) {
    %c0_i32 = arith.constant 0 : i32
    return %arg0, %arg2 : i32, i32
  }
  func.func @transform_1(%arg0: i32, %arg1: i32, %arg2: i32) -> (i32, i32) {
    %c0_i32 = arith.constant 0 : i32
    return %arg2, %arg1 : i32, i32
  }
  func.func @transform_2(%arg0: i32, %arg1: i32, %arg2: i32) -> (i32, i32) {
    %c0_i32 = arith.constant 0 : i32
    %c0_i32_0 = arith.constant 0 : i32
    return %c0_i32, %arg1 : i32, i32
  }
  func.func @transform_3(%arg0: i32, %arg1: i32, %arg2: i32) -> (i32, i32) {
    %c0_i32 = arith.constant 0 : i32
    return %arg0, %arg1 : i32, i32
  }
}

module attributes {stable_mosaic.version = 11 : i64} {
  func.func @_logits_softmax_kernel(%arg0: i32, %arg1: i32, %arg2: memref<16x32xbf16, #tpu.memory_space<vmem>>, %arg3: memref<32x16xbf16, #tpu.memory_space<vmem>>, %arg4: memref<16x16xf32, #tpu.memory_space<vmem>>, %arg5: memref<16x16xf32, #tpu.memory_space<vmem>>) attributes {dimension_semantics = [#tpu.dimension_semantics<parallel>, #tpu.dimension_semantics<arbitrary>], iteration_bounds = array<i64: 1, 1>, scalar_prefetch = 0 : i64, scratch_operands = 1 : i64, tpu.core_type = #tpu.core_type<tc>, window_params = [{transform_indices = @transform_0, window_bounds = array<i64: 16, 32>}, {transform_indices = @transform_1, window_bounds = array<i64: 32, 16>}, {transform_indices = @transform_2, window_bounds = array<i64: 16, 16>}]} {
    %c0_i32 = arith.constant 0 : i32
    %0 = arith.cmpi eq, %arg1, %c0_i32 : i32
    %1 = arith.extui %0 : i1 to i32
    %c0_i32_0 = arith.constant 0 : i32
    %2 = arith.cmpi ne, %1, %c0_i32_0 : i32
    scf.if %2 {
      %cst_10 = arith.constant 0.000000e+00 : f32
      %12 = vector.broadcast %cst_10 : f32 to vector<16x16xf32>
      %c0_11 = arith.constant 0 : index
      %c0_12 = arith.constant 0 : index
      %13 = vector.load %arg5[%c0_11, %c0_12] : memref<16x16xf32, #tpu.memory_space<vmem>>, vector<16x16xf32>
      tpu.vector_store %arg5[%c0_11, %c0_12], %12 {strides = array<i32>} : memref<16x16xf32, #tpu.memory_space<vmem>>, vector<16x16xf32>,
    } else {
    }
    %c0 = arith.constant 0 : index
    %c0_1 = arith.constant 0 : index
    %3 = vector.load %arg5[%c0, %c0_1] : memref<16x16xf32, #tpu.memory_space<vmem>>, vector<16x16xf32>
    %c0_2 = arith.constant 0 : index
    %c0_3 = arith.constant 0 : index
    %4 = vector.load %arg2[%c0_2, %c0_3] : memref<16x32xbf16, #tpu.memory_space<vmem>>, vector<16x32xbf16>
    %c0_4 = arith.constant 0 : index
    %c0_5 = arith.constant 0 : index
    %5 = vector.load %arg3[%c0_4, %c0_5] : memref<32x16xbf16, #tpu.memory_space<vmem>>, vector<32x16xbf16>
    %cst = arith.constant dense<0.000000e+00> : vector<16x16xf32>
    %6 = tpu.matmul %4, %5, %cst {dimension_numbers = #tpu.dot_dimension_numbers<[1], [0], [0], [1], [0, 0, 1, 1], [], []>} : vector<16x32xbf16>, vector<32x16xbf16>, vector<16x16xf32> -> vector<16x16xf32>
    %7 = arith.addf %3, %6 : vector<16x16xf32>
    %c0_6 = arith.constant 0 : index
    %c0_7 = arith.constant 0 : index
    %8 = vector.load %arg5[%c0_6, %c0_7] : memref<16x16xf32, #tpu.memory_space<vmem>>, vector<16x16xf32>
    tpu.vector_store %arg5[%c0_6, %c0_7], %7 {strides = array<i32>} : memref<16x16xf32, #tpu.memory_space<vmem>>, vector<16x16xf32>,
    %c0_i32_8 = arith.constant 0 : i32
    %9 = arith.cmpi eq, %arg1, %c0_i32_8 : i32
    %10 = arith.extui %9 : i1 to i32
    %c0_i32_9 = arith.constant 0 : i32
    %11 = arith.cmpi ne, %10, %c0_i32_9 : i32
    scf.if %11 {
      %c0_10 = arith.constant 0 : index
      %c0_11 = arith.constant 0 : index
      %12 = vector.load %arg5[%c0_10, %c0_11] : memref<16x16xf32, #tpu.memory_space<vmem>>, vector<16x16xf32>
      %cst_12 = arith.constant dense<0xFF800000> : vector<16xf32>
      %13 = vector.multi_reduction <maximumf>, %12, %cst_12 [1] : vector<16x16xf32> to vector<16xf32>
      %14 = vector.shape_cast %13 : vector<16xf32> to vector<16x1xf32>
      %15 = vector.broadcast %14 : vector<16x1xf32> to vector<16x16xf32>
      %16 = arith.subf %12, %15 : vector<16x16xf32>
      %17 = math.exp %16 : vector<16x16xf32>
      %cst_13 = arith.constant dense<0.000000e+00> : vector<16xf32>
      %18 = vector.multi_reduction <add>, %17, %cst_13 [1] : vector<16x16xf32> to vector<16xf32>
      %19 = vector.shape_cast %18 : vector<16xf32> to vector<16x1xf32>
      %20 = vector.broadcast %19 : vector<16x1xf32> to vector<16x16xf32>
      %21 = arith.divf %17, %20 : vector<16x16xf32>
      %c0_14 = arith.constant 0 : index
      %c0_15 = arith.constant 0 : index
      %22 = vector.load %arg4[%c0_14, %c0_15] : memref<16x16xf32, #tpu.memory_space<vmem>>, vector<16x16xf32>
      tpu.vector_store %arg4[%c0_14, %c0_15], %21 {strides = array<i32>} : memref<16x16xf32, #tpu.memory_space<vmem>>, vector<16x16xf32>,
    } else {
    }
    return
  }
  func.func @transform_0(%arg0: i32, %arg1: i32) -> (i32, i32) {
    %c0_i32 = arith.constant 0 : i32
    return %arg0, %arg1 : i32, i32
  }
  func.func @transform_1(%arg0: i32, %arg1: i32) -> (i32, i32) {
    %c0_i32 = arith.constant 0 : i32
    %c0_i32_0 = arith.constant 0 : i32
    return %arg1, %c0_i32 : i32, i32
  }
  func.func @transform_2(%arg0: i32, %arg1: i32) -> (i32, i32) {
    %c0_i32 = arith.constant 0 : i32
    %c0_i32_0 = arith.constant 0 : i32
    return %arg0, %c0_i32 : i32, i32
  }
}

module attributes {stable_mosaic.version = 11 : i64} {
  func.func @_linear_kernel(%arg0: i32, %arg1: i32, %arg2: i32, %arg3: memref<16x32xbf16, #tpu.memory_space<vmem>>, %arg4: memref<32x64xbf16, #tpu.memory_space<vmem>>, %arg5: memref<1x64xf32, #tpu.memory_space<vmem>>, %arg6: memref<16x64xbf16, #tpu.memory_space<vmem>>, %arg7: memref<16x64xf32, #tpu.memory_space<vmem>>) attributes {dimension_semantics = [#tpu.dimension_semantics<parallel>, #tpu.dimension_semantics<parallel>, #tpu.dimension_semantics<arbitrary>], iteration_bounds = array<i64: 1, 1, 1>, scalar_prefetch = 0 : i64, scratch_operands = 1 : i64, tpu.core_type = #tpu.core_type<tc>, window_params = [{transform_indices = @transform_0, window_bounds = array<i64: 16, 32>}, {transform_indices = @transform_1, window_bounds = array<i64: 32, 64>}, {transform_indices = @transform_2, window_bounds = array<i64: 1, 64>}, {transform_indices = @transform_3, window_bounds = array<i64: 16, 64>}]} {
    %c0_i32 = arith.constant 0 : i32
    %0 = arith.cmpi eq, %arg2, %c0_i32 : i32
    %1 = arith.extui %0 : i1 to i32
    %c0_i32_0 = arith.constant 0 : i32
    %2 = arith.cmpi ne, %1, %c0_i32_0 : i32
    scf.if %2 {
      %cst_10 = arith.constant 0.000000e+00 : f32
      %12 = vector.broadcast %cst_10 : f32 to vector<16x64xf32>
      %c0_11 = arith.constant 0 : index
      %c0_12 = arith.constant 0 : index
      %13 = vector.load %arg7[%c0_11, %c0_12] : memref<16x64xf32, #tpu.memory_space<vmem>>, vector<16x64xf32>
      tpu.vector_store %arg7[%c0_11, %c0_12], %12 {strides = array<i32>} : memref<16x64xf32, #tpu.memory_space<vmem>>, vector<16x64xf32>,
    } else {
    }
    %c0 = arith.constant 0 : index
    %c0_1 = arith.constant 0 : index
    %3 = vector.load %arg7[%c0, %c0_1] : memref<16x64xf32, #tpu.memory_space<vmem>>, vector<16x64xf32>
    %c0_2 = arith.constant 0 : index
    %c0_3 = arith.constant 0 : index
    %4 = vector.load %arg3[%c0_2, %c0_3] : memref<16x32xbf16, #tpu.memory_space<vmem>>, vector<16x32xbf16>
    %c0_4 = arith.constant 0 : index
    %c0_5 = arith.constant 0 : index
    %5 = vector.load %arg4[%c0_4, %c0_5] : memref<32x64xbf16, #tpu.memory_space<vmem>>, vector<32x64xbf16>
    %cst = arith.constant dense<0.000000e+00> : vector<16x64xf32>
    %6 = tpu.matmul %4, %5, %cst {dimension_numbers = #tpu.dot_dimension_numbers<[1], [0], [0], [1], [0, 0, 1, 1], [], []>} : vector<16x32xbf16>, vector<32x64xbf16>, vector<16x64xf32> -> vector<16x64xf32>
    %7 = arith.addf %3, %6 : vector<16x64xf32>
    %c0_6 = arith.constant 0 : index
    %c0_7 = arith.constant 0 : index
    %8 = vector.load %arg7[%c0_6, %c0_7] : memref<16x64xf32, #tpu.memory_space<vmem>>, vector<16x64xf32>
    tpu.vector_store %arg7[%c0_6, %c0_7], %7 {strides = array<i32>} : memref<16x64xf32, #tpu.memory_space<vmem>>, vector<16x64xf32>,
    %c0_i32_8 = arith.constant 0 : i32
    %9 = arith.cmpi eq, %arg2, %c0_i32_8 : i32
    %10 = arith.extui %9 : i1 to i32
    %c0_i32_9 = arith.constant 0 : i32
    %11 = arith.cmpi ne, %10, %c0_i32_9 : i32
    scf.if %11 {
      %c0_10 = arith.constant 0 : index
      %c0_11 = arith.constant 0 : index
      %12 = vector.load %arg7[%c0_10, %c0_11] : memref<16x64xf32, #tpu.memory_space<vmem>>, vector<16x64xf32>
      %c0_12 = arith.constant 0 : index
      %c0_13 = arith.constant 0 : index
      %13 = vector.load %arg5[%c0_12, %c0_13] : memref<1x64xf32, #tpu.memory_space<vmem>>, vector<1x64xf32>
      %14 = vector.broadcast %13 : vector<1x64xf32> to vector<16x64xf32>
      %15 = arith.addf %12, %14 : vector<16x64xf32>
      %16 = arith.truncf %15 : vector<16x64xf32> to vector<16x64xbf16>
      %c0_14 = arith.constant 0 : index
      %c0_15 = arith.constant 0 : index
      %17 = vector.load %arg6[%c0_14, %c0_15] : memref<16x64xbf16, #tpu.memory_space<vmem>>, vector<16x64xbf16>
      tpu.vector_store %arg6[%c0_14, %c0_15], %16 {strides = array<i32>} : memref<16x64xbf16, #tpu.memory_space<vmem>>, vector<16x64xbf16>,
    } else {
    }
    return
  }
  func.func @transform_0(%arg0: i32, %arg1: i32, %arg2: i32) -> (i32, i32) {
    %c0_i32 = arith.constant 0 : i32
    return %arg0, %arg2 : i32, i32
  }
  func.func @transform_1(%arg0: i32, %arg1: i32, %arg2: i32) -> (i32, i32) {
    %c0_i32 = arith.constant 0 : i32
    return %arg2, %arg1 : i32, i32
  }
  func.func @transform_2(%arg0: i32, %arg1: i32, %arg2: i32) -> (i32, i32) {
    %c0_i32 = arith.constant 0 : i32
    %c0_i32_0 = arith.constant 0 : i32
    return %c0_i32, %arg1 : i32, i32
  }
  func.func @transform_3(%arg0: i32, %arg1: i32, %arg2: i32) -> (i32, i32) {
    %c0_i32 = arith.constant 0 : i32
    return %arg0, %arg1 : i32, i32
  }
}

</mosaic_0001>

<bundles_post_ra>
// kernel: transformer_forward.29
= control target key start
LH: loop header
LB: loop body
LE: loop exit
PB: predicated region body
PF: predicated region fallthrough
CT: control target
= control target key end

     0   :  { %vm28_vm0 = vcmask 261120   ;;  %v244_v1 = vmov 0.0   ;;  %v245_v22 = vmov 32.0   ;;  %v246_v39 = vmov 31.0   ;;  %s330_s1 = inlined_call_operand.vmem [shape: bf16[32,32], index: 1, kind: input, shape index: {}]   ;;  %s331_s0 = inlined_call_operand.vmem [shape: bf16[16,32], index: 0, kind: input, shape index: {}]   ;;  %s332_s2 = inlined_call_operand.vmem [shape: f32[1,32], index: 2, kind: input, shape index: {}]   ;;  %s333_s4 = inlined_call_operand.vmem [shape: f32[1,32], index: 4, kind: input, shape index: {}]   ;;  %s334_s3 = inlined_call_operand.vmem [shape: bf16[16,32], index: 3, kind: input, shape index: {}]   ;;  %s335_s5 = inlined_call_operand.vmem [shape: f32[1,32], index: 5, kind: input, shape index: {}]   ;;  %s336_s6 = inlined_call_operand.vmem [shape: bf16[16,32], index: 6, kind: output, shape index: {}]  }
   0x1   :  { %v221_v0 = vld [vmem:[%s330_s1 + $0x8] sm:$0xff]  ;;  %29 = vst.msk [vmem:[#allocation2] sm:$0xff] %vm28_vm0, %v244_v1  ;;  %v220_v2 = vld [vmem:[%s330_s1] sm:$0xff]  ;;  %232 = vrcp.f32 %v245_v22  ;;  %vm199_vm11 = vcmask 257024  }
   0x2   :  { %30 = vst.msk [vmem:[#allocation2 + $0x8] sm:$0xff] %vm28_vm0, %v244_v1  ;;  %66 = vmatpush.bf16.msra.mxu0 %v221_v0  ;;  %v219_v3 = vld [vmem:[%s331_s0] sm:$0xff]  ;;  %234 = vrcp.f32 %v246_v39 }
   0x3   :  { %v223_v7 = vld [vmem:[%s334_s3] sm:$0xff]  }
   0x4   :  { %v224_v9 = vunpack.c.l.bf16 %v223_v7  ;;  %v229_v12 = vld [vmem:[%s332_s2] ss:$0 sm:$0xff]  ;;  %v225_v17 = vunpack.c.h.bf16 %v223_v7 }
   0x6   :  { %67 = vmatpush.bf16.msra.mxu0 %v220_v2 }
   0x7   :  { %v233_v23 = vpop.eup %232 }
   0x8   :  { %v31_v4 = vld [vmem:[#allocation2] sm:$0xff]  ;;  %v104_v24 = vmul.f32 32.0, %v233_v23  ;;  %vm108_vm1 = vweird.f32 %v233_v23  ;;  %v235_v40 = vpop.eup %234 }
   0x9   :  { %218 = vmatmul.msk.bf16.vlgmr.msra.gmra.mxu0 %vm28_vm0, %v219_v3  ;;  %v32_v8 = vld [vmem:[#allocation2 + $0x8] sm:$0xff]  ;;  %v123_v41 = vmul.f32 31.0, %v235_v40  ;;  %vm127_vm2 = vweird.f32 %v235_v40 }
   0xa   :  { %v105_v25 = vsub.f32 1.0, %v104_v24 }
   0xb   :  { %v124_v42 = vsub.f32 1.0, %v123_v41 }
   0xc   :  { %v106_v26 = vmul.f32 %v233_v23, %v105_v25 }
   0xd   :  { %v125_v43 = vmul.f32 %v235_v40, %v124_v42 }
   0xe   :  { %v107_v27 = vadd.f32 %v233_v23, %v106_v26 }
   0xf   :  { %v126_v44 = vadd.f32 %v235_v40, %v125_v43 }
  0x10   :  { %v109_v28 = vsel %vm108_vm1, %v233_v23, %v107_v27 }
  0x11   :  { %v128_v45 = vsel %vm127_vm2, %v235_v40, %v126_v44 }
  0x86   :  { %v69_v5 = vpop.f32.mrf.mxu0 }
  0x87   :  { %v74_v6 = vadd.f32 %v69_v5, %v31_v4 }
  0x89   :  { %76 = vst.msk [vmem:[#allocation2] sm:$0xff] %vm28_vm0, %v74_v6 }
  0x8e   :  { %v71_v10 = vpop.f32.mrf.mxu0 }
  0x8f   :  { %v75_v11 = vadd.f32 %v71_v10, %v32_v8 }
  0x90   :  { %v85_v13 = vld [vmem:[#allocation2] sm:$0xff] }
  0x91   :  { %77 = vst.msk [vmem:[#allocation2 + $0x8] sm:$0xff] %vm28_vm0, %v75_v11  ;;  %v87_v14 = vadd.f32 %v224_v9, %v85_v13 }
  0x93   :  { %v93_v15 = vadd.f32 %v229_v12, %v87_v14 }
  0x95   :  { %v97_v16 = vsel %vm28_vm0, %v93_v15, 0.0 }
  0x96   :  { %98 = vadd.xlane.f32.xlu0 %v97_v16 }
  0x98   :  { %v86_v18 = vld [vmem:[#allocation2 + $0x8] sm:$0xff] }
  0x99   :  { %v88_v19 = vadd.f32 %v225_v17, %v86_v18 }
  0x9b   :  { %v94_v20 = vadd.f32 %v229_v12, %v88_v19  ;;  %v230_v12 = vld [vmem:[%s333_s4] ss:$0 sm:$0xff] }
  0x9c   :  { %v231_v19 = vld [vmem:[%s335_s5] ss:$0 sm:$0xff] }
  0x9d   :  { %v100_v21 = vsel %vm28_vm0, %v94_v20, 0.0 }
  0x9e   :  { %101 = vadd.xlane.f32.xlu0 %v100_v21 }
 0x109   :  { %v99_v29 = vpop.xlane.xlu0 %98 }
 0x10a   :  { %v110_v30 = vmul.f32 %v109_v28, %v99_v29 }
 0x10c   :  { %v304_v31 = vsub.f32 %v93_v15, %v110_v30 }
 0x10e   :  { %v114_v32 = vmul.f32 %v304_v31, %v304_v31  ;;  %v134_v18 = vmul.f32 %v230_v12, %v304_v31 }
 0x110   :  { %v116_v33 = vsel %vm28_vm0, %v114_v32, 0.0 }
 0x111   :  { %117 = vadd.xlane.f32.xlu1 %v116_v33  ;;  %v102_v34 = vpop.xlane.xlu0 %101 }
 0x112   :  { %v111_v35 = vmul.f32 %v109_v28, %v102_v34 }
 0x114   :  { %v309_v36 = vsub.f32 %v94_v20, %v111_v35 }
 0x116   :  { %v115_v37 = vmul.f32 %v309_v36, %v309_v36  ;;  %v135_v32 = vmul.f32 %v230_v12, %v309_v36 }
 0x118   :  { %v119_v38 = vsel %vm28_vm0, %v115_v37, 0.0 }
 0x119   :  { %120 = vadd.xlane.f32.xlu1 %v119_v38 }
 0x184   :  { %v118_v46 = vpop.xlane.xlu1 %117 }
 0x185   :  { %v129_v47 = vmul.f32 %v128_v45, %v118_v46 }
 0x187   :  { %236 = vrsqrt.f32 %v129_v47  ;;  %vm143_vm3 = vcmp.eq.f32.partialorder %v129_v47, inf  ;;  %v146_v60 = vand.u32 2147483648, %v129_v47  ;;  %vm145_vm4 = vcmp.eq.f32.partialorder %v129_v47, 0.0 }
 0x18c   :  { %v121_v48 = vpop.xlane.xlu1 %120 }
 0x18d   :  { %v237_v49 = vpop.eup %236  ;;  %v130_v50 = vmul.f32 %v128_v45, %v121_v48 }
 0x18e   :  { %v137_v51 = vmul.f32 %v237_v49, %v129_v47 }
 0x18f   :  { %238 = vrsqrt.f32 %v130_v50  ;;  %vm155_vm5 = vcmp.eq.f32.partialorder %v130_v50, inf  ;;  %v158_v4 = vand.u32 2147483648, %v130_v50  ;;  %vm157_vm6 = vcmp.eq.f32.partialorder %v130_v50, 0.0 }
 0x190   :  { %v138_v52 = vmul.f32 %v237_v49, %v137_v51 }
 0x192   :  { %v139_v53 = vmul.f32 0.5, %v138_v52 }
 0x194   :  { %v140_v54 = vsub.f32 1.5, %v139_v53 }
 0x195   :  { %v239_v55 = vpop.eup %238 }
 0x196   :  { %v141_v56 = vmul.f32 %v237_v49, %v140_v54  ;;  %v149_v57 = vmul.f32 %v239_v55, %v130_v50 }
 0x198   :  { %v142_v58 = vmul.f32 %v141_v56, %v129_v47  ;;  %v150_v59 = vmul.f32 %v239_v55, %v149_v57 }
 0x19a   :  { %v144_v61 = vsel %vm143_vm3, %v129_v47, %v142_v58  ;;  %v151_v62 = vmul.f32 0.5, %v150_v59 }
 0x19b   :  { %v147_v63 = vsel %vm145_vm4, %v146_v60, %v144_v61 }
 0x19c   :  { %v160_v0 = vadd.f32 1e-06, %v147_v63  ;;  %v152_v1 = vsub.f32 1.5, %v151_v62 }
 0x19e   :  { %240 = vrcp.f32 %v160_v0  ;;  %v153_v2 = vmul.f32 %v239_v55, %v152_v1  ;;  %v173_v11 = vand.u32 2147483648, %v160_v0  ;;  %v171_v14 = vand.u32 2147483647, %v160_v0 }
 0x19f   :  { %vm167_vm8 = vweird.f32 %v160_v0 }
 0x1a0   :  { %v154_v3 = vmul.f32 %v153_v2, %v130_v50  ;;  %v174_v16 = vor.u32 1.1754944e-38, %v173_v11  ;;  %vm172_vm10 = vcmp.eq.f32.partialorder %v171_v14, 8.507059e+37 }
 0x1a2   :  { %v156_v5 = vsel %vm155_vm5, %v130_v50, %v154_v3 }
 0x1a3   :  { %v159_v7 = vsel %vm157_vm6, %v158_v4, %v156_v5 }
 0x1a4   :  { %v241_v6 = vpop.eup %240  ;;  %v161_v9 = vadd.f32 1e-06, %v159_v7 }
 0x1a5   :  { %v163_v8 = vmul.f32 %v241_v6, %v160_v0  ;;  %vm168_vm7 = vweird.f32 %v241_v6 }
 0x1a6   :  { %242 = vrcp.f32 %v161_v9  ;;  %vm169_vm9 = vmor %vm167_vm8, %vm168_vm7  ;;  %v188_v26 = vand.u32 2147483648, %v161_v9  ;;  %v186_v28 = vand.u32 2147483647, %v161_v9  ;;  %vm182_vm13 = vweird.f32 %v161_v9 }
 0x1a7   :  { %v164_v10 = vsub.f32 1.0, %v163_v8 }
 0x1a8   :  { %v189_v31 = vor.u32 1.1754944e-38, %v188_v26  ;;  %vm187_vm15 = vcmp.eq.f32.partialorder %v186_v28, 8.507059e+37 }
 0x1a9   :  { %v165_v13 = vmul.f32 %v241_v6, %v164_v10 }
 0x1ab   :  { %v166_v15 = vadd.f32 %v241_v6, %v165_v13 }
 0x1ac   :  { %v243_v17 = vpop.eup %242 }
 0x1ad   :  { %v170_v20 = vsel %vm169_vm9, %v241_v6, %v166_v15  ;;  %v178_v22 = vmul.f32 %v243_v17, %v161_v9  ;;  %vm183_vm12 = vweird.f32 %v243_v17 }
 0x1ae   :  { %v175_v21 = vsel %vm172_vm10, %v174_v16, %v170_v20  ;;  %vm184_vm14 = vmor %vm182_vm13, %vm183_vm12 }
 0x1af   :  { %v176_v23 = vmul.f32 %v175_v21, %v134_v18  ;;  %v179_v24 = vsub.f32 1.0, %v178_v22 }
 0x1b1   :  { %v195_v25 = vadd.f32 %v231_v19, %v176_v23  ;;  %v180_v27 = vmul.f32 %v243_v17, %v179_v24 }
 0x1b3   :  { %v197_v29 = vpack.c.bf16 %v195_v25, %v195_v25  ;;  %v181_v30 = vadd.f32 %v243_v17, %v180_v27 }
 0x1b5   :  { %200 = vst.msk [vmem:[%s336_s6] sm:$0xf] %vm199_vm11, %v197_v29  ;;  %v185_v33 = vsel %vm184_vm14, %v243_v17, %v181_v30 }
 0x1b6   :  { %v190_v34 = vsel %vm187_vm15, %v189_v31, %v185_v33 }
 0x1b7   :  { %v191_v35 = vmul.f32 %v190_v34, %v135_v32 }
 0x1b9   :  { %v196_v37 = vadd.f32 %v231_v19, %v191_v35 }
 0x1bb   :  { %v198_v38 = vpack.c.bf16 %v196_v37, %v196_v37 }
 0x1bd   :  { %201 = vst.msk [vmem:[%s336_s6 + $0x4] sm:$0xf] %vm199_vm11, %v198_v38 }

// kernel: transformer_forward.27
= control target key start
LH: loop header
LB: loop body
LE: loop exit
PB: predicated region body
PF: predicated region fallthrough
CT: control target
= control target key end

     0   :  { %vm19_vm0 = vcmask 785408   ;;  %v108_v1 = vmov 0.0   ;;  %vm47_vm1 = vcmask 261120   ;;  %vm83_vm2 = vcmask 781312   ;;  %s151_s1 = inlined_call_operand.vmem [shape: bf16[32,96], index: 1, kind: input, shape index: {}]   ;;  %s152_s2 = inlined_call_operand.vmem [shape: f32[1,96], index: 2, kind: input, shape index: {}]   ;;  %s153_s0 = inlined_call_operand.vmem [shape: bf16[16,32], index: 0, kind: input, shape index: {}]   ;;  %s154_s3 = inlined_call_operand.vmem [shape: bf16[16,96], index: 3, kind: output, shape index: {}]  }
   0x1   :  { %v105_v0 = vld [vmem:[%s151_s1 + $0x8] sm:$0xff]  ;;  %20 = vst.msk [vmem:[#allocation2] sm:$0xff] %vm19_vm0, %v108_v1  ;;  %v104_v2 = vld [vmem:[%s151_s1] sm:$0xff] }
   0x2   :  { %21 = vst.msk [vmem:[#allocation2 + $0x8] sm:$0xff] %vm19_vm0, %v108_v1  ;;  %57 = vmatpush.bf16.msra.mxu0 %v105_v0  ;;  %v103_v3 = vld [vmem:[%s153_s0] sm:$0xff] }
   0x3   :  { %v107_v8 = vld [vmem:[%s152_s2] ss:$0 sm:$0xff] }
   0x6   :  { %58 = vmatpush.bf16.msra.mxu0 %v104_v2 }
   0x8   :  { %v22_v4 = vld [vmem:[#allocation2] sm:$0xff] }
   0x9   :  { %102 = vmatmul.msk.bf16.vlgmr.msra.gmra.mxu0 %vm47_vm1, %v103_v3  ;;  %v23_v7 = vld [vmem:[#allocation2 + $0x8] sm:$0xff] }
  0x86   :  { %v60_v5 = vpop.f32.mrf.mxu0 }
  0x87   :  { %v65_v6 = vadd.f32 %v60_v5, %v22_v4 }
  0x89   :  { %68 = vst.msk [vmem:[#allocation2] sm:$0xff] %vm19_vm0, %v65_v6 }
  0x8e   :  { %v62_v9 = vpop.f32.mrf.mxu0 }
  0x8f   :  { %v66_v10 = vadd.f32 %v62_v9, %v23_v7 }
  0x90   :  { %v73_v11 = vld [vmem:[#allocation2] sm:$0xff] }
  0x91   :  { %v79_v12 = vadd.f32 %v107_v8, %v73_v11  ;;  %69 = vst.msk [vmem:[#allocation2 + $0x8] sm:$0xff] %vm19_vm0, %v66_v10 }
  0x93   :  { %v81_v13 = vpack.c.bf16 %v79_v12, %v79_v12 }
  0x95   :  { %84 = vst.msk [vmem:[%s154_s3] sm:$0xf] %vm83_vm2, %v81_v13 }
  0x98   :  { %v74_v14 = vld [vmem:[#allocation2 + $0x8] sm:$0xff] }
  0x99   :  { %v80_v15 = vadd.f32 %v107_v8, %v74_v14 }
  0x9b   :  { %v82_v16 = vpack.c.bf16 %v80_v15, %v80_v15 }
  0x9d   :  { %85 = vst.msk [vmem:[%s154_s3 + $0x4] sm:$0xf] %vm83_vm2, %v82_v16 }

// kernel: transformer_forward.28
= control target key start
LH: loop header
LB: loop body
LE: loop exit
PB: predicated region body
PF: predicated region fallthrough
CT: control target
= control target key end

     0   :  { %s823_s18 = smov 0   ;;  %s932_s0 = inlined_call_operand.vmem [shape: bf16[2,8,32], index: 0, kind: input, shape index: {}]   ;;  %s933_s1 = inlined_call_operand.vmem [shape: bf16[2,8,32], index: 1, kind: input, shape index: {}]   ;;  %s934_s2 = inlined_call_operand.vmem [shape: bf16[2,8,32], index: 2, kind: input, shape index: {}]   ;;  %s935_s3 = inlined_call_operand.vmem [shape: f32[2,1,8], index: 3, kind: input, shape index: {}]   ;;  %s936_s4 = inlined_call_operand.vmem [shape: bf16[2,8,32], index: 4, kind: output, shape index: {0}]   ;;  %s937_s5 = inlined_call_operand.vmem [shape: f32[2,4,8,8], index: 5, kind: output, shape index: {1}]  }
   0x1 LB: > { %s723_s19 = sadd.s32 4294967295, %s785_s18   ;;  %p727_p0 = scmp.ge.s32.totalorder %s785_s18, 1  ;;  %s785_s18 = sphi %s823_s18, %s16_s18  }
   0x2   : > { %p215_p1 = scmp.lt.s32.totalorder %s785_s18, 3 }
   0x4   : > { %p216_p2 = pnand %p727_p0, %p215_p1 }
   0x5   : > { %p257_p3 = scmp.lt.s32.totalorder (!%p216_p2), %s723_s19, 1  ;;  %s787_s30 = smov (!%p216_p2), 120  }
   0x6   : > { %219 = sbr.rel (%p216_p2) target bundleno = 1085 (0x43d), region = 36  ;;  %s788_s6 = smov (!%p216_p2), 112  }
   0x7   : > { %s789_s7 = smov (!%p216_p2), 104   ;;  %s792_s21 = smov (!%p216_p2), 16  }
   0xb   : > { %s939_s19 = smov (!%p257_p3, %s723_s19), 1  ;;  %vm292_vm0 = vcmask 64512   ;;  %vm341_vm1 = vcmask 1043456   ;;  %vm359_vm10 = vcmask 60416  }
   0xc   : > { %s834_s20 = sshll.u32 %s939_s19, 2  ;;  %s271_s29 = scalar_lea.vmem %s935_s3, %s939_s19 }
   0xd   : > { %s264_s23 = scalar_lea.vmem %s933_s1, %s834_s20  ;;  %s260_s26 = scalar_lea.vmem %s932_s0, %s834_s20  ;;  %v857_v13 = vld [vmem:[%s271_s29] ss:$0 sm:$0xff] }
   0xe   : > { %v286_v0 = vld [vmem:[%s264_s23] sm:$0xf]  ;;  %s268_s10 = scalar_lea.vmem %s934_s2, %s834_s20  ;;  %s747_s11 = sshll.u32 %s939_s19, 5 }
   0xf   : > { %v297_v1 = vsel %vm292_vm0, %v286_v0, 0  ;;  %v367_v2 = vunpack.c.l.b16 %v286_v0  ;;  %v282_v3 = vld [vmem:[%s260_s26] sm:$0xf]  ;;  %s885_s14 = scalar_lea.vmem %s937_s5, %s747_s11  ;;  %s902_s17 = scalar_lea.vmem %s936_s4, %s834_s20 }
  0x10   : > { %306 = vmatpush.bf16.xpose.msra.mxu0 %v297_v1  ;;  %v283_v4 = vunpack.c.l.bf16 %v282_v3  ;;  %v287_v31 = vld [vmem:[%s268_s10] sm:$0xf]  ;;  %s790_s19 = smov 24   ;;  %s791_s20 = smov 8  }
  0x11   : > { %v368_v5 = vpack.c.b16 %v367_v2, %v367_v2  ;;  %v343_v33 = vsel %vm341_vm1, %v287_v31, 0  ;;  %v418_v48 = vunpack.c.l.b16 %v287_v31 }
  0x12   : > { %v284_v6 = vmul.f32 0.35355338, %v283_v4  ;;  %352 = vmatpush.bf16.msra.mxu1 %v343_v33 }
  0x13   : > { %369 = vrot.lane.b32.xlu1 %v368_v5, %s787_s30  ;;  %450 = vrot.lane.b32.xlu2 %v368_v5, %s788_s6  ;;  %v880_v53 = vpack.c.b16 %v418_v48, %v418_v48 }
  0x14   : > { %v285_v7 = vpack.c.bf16 %v284_v6, %v284_v6 }
  0x16   : > { %v362_v8 = vunpack.c.l.b16 %v285_v7 }
  0x17   : > { %734 = vmatmul.msk.bf16.vlgmr.msra.gmra.mxu0 %vm292_vm0, %v285_v7 }
  0x18   : > { %v363_v9 = vpack.c.b16 %v362_v8, %v362_v8 }
  0x1b   : > { %364 = vrot.lane.b32.xlu1 %v363_v9, %s787_s30  ;;  %528 = vrot.lane.b32.xlu2 %v368_v5, %s789_s7 }
  0x23   : > { %526 = vrot.lane.b32.xlu1 %v363_v9, %s789_s7 }
  0x6d   : > { %v451_v18 = vpop.permute.xlu2 %450 }
  0x6e   : > { %v456_v32 = vsel %vm292_vm0, %v451_v18, 0 }
  0x6f   : > { %465 = vmatpush.bf16.xpose.msrb.mxu1 %v456_v32 }
  0x75   : > { %v529_v19 = vpop.permute.xlu2 %528 }
  0x76   : > { %v534_v20 = vsel %vm292_vm0, %v529_v19, 0 }
  0x77   : > { %543 = vmatpush.bf16.xpose.msrb.mxu0 %v534_v20 }
  0x85   : > { %v370_v10 = vpop.permute.xlu1 %369 }
  0x86   : > { %v375_v11 = vsel %vm292_vm0, %v370_v10, 0 }
  0x87   : > { %384 = vmatpush.bf16.xpose.msra.mxu2 %v375_v11 }
  0x8d   : > { %v365_v12 = vpop.permute.xlu1 %364 }
  0x8e   : > { %736 = vmatmul.msk.bf16.vlgmr.msra.gmra.mxu2 %vm292_vm0, %v365_v12 }
  0x94   : > { %v308_v14 = vpop.f32.mrf.mxu0 }
  0x95   : > { %v309_v15 = vadd.f32 %v857_v13, %v308_v14  ;;  %v527_v21 = vpop.permute.xlu1 %526 }
  0x96   : > { %742 = vmatmul.msk.bf16.vlgmr.msrb.gmra.mxu0 %vm292_vm0, %v527_v21 }
  0x97   : > { %v312_v16 = vsel %vm292_vm0, %v309_v15, -inf }
  0x98   : > { %313 = vmax.xlane.f32.xlu0 %v312_v16 }
  0x9c   : > { %v310_v17 = vpop.f32.mrf.mxu0 }
 0x10b   : > { %v314_v22 = vpop.xlane.xlu0 %313 }
 0x10c   : > { %v315_v23 = vsub.f32 %v309_v15, %v314_v22 }
 0x10e   : > { %v316_v24 = vmul.f32 1.442695, %v315_v23 }
 0x110   : > { %763 = vpow2.f32 %v316_v24 }
 0x111   : > { %v386_v25 = vpop.f32.mrf.mxu2 }
 0x112   : > { %v387_v26 = vadd.f32 %v857_v13, %v386_v25 }
 0x113   : > { %v545_v34 = vpop.f32.mrf.mxu0 }
 0x114   : > { %v390_v27 = vsel %vm292_vm0, %v387_v26, -inf  ;;  %v874_v35 = vadd.f32 %v857_v13, %v545_v34 }
 0x115   : > { %391 = vmax.xlane.f32.xlu2 %v390_v27 }
 0x116   : > { %v764_v28 = vpop.eup %763  ;;  %v549_v38 = vsel %vm292_vm0, %v874_v35, -inf }
 0x117   : > { %v318_v29 = vsel %vm292_vm0, %v764_v28, 0.0 }
 0x118   : > { %319 = vadd.xlane.f32.xlu0 %v318_v29 }
 0x119   : > { %v388_v30 = vpop.f32.mrf.mxu2 }
 0x11b   : > { %v547_v41 = vpop.f32.mrf.mxu0 }
 0x12c   : > { %448 = vrot.lane.b32.xlu0 %v363_v9, %s788_s6 }
 0x156   : > { %550 = vmax.xlane.f32.xlu0 %v549_v38 }
 0x16a   : > { %576 = vrot.lane.b32.xlu0 %v880_v53, %s789_s7 }
 0x188   : > { %v392_v36 = vpop.xlane.xlu2 %391 }
 0x189   : > { %v393_v37 = vsub.f32 %v387_v26, %v392_v36 }
 0x18b   : > { %v320_v39 = vpop.xlane.xlu0 %319  ;;  %v394_v40 = vmul.f32 1.442695, %v393_v37 }
 0x18c   : > { %765 = vrcp.f32 %v320_v39  ;;  %v332_v47 = vand.u32 2147483648, %v320_v39  ;;  %v330_v50 = vand.u32 2147483647, %v320_v39  ;;  %vm326_vm3 = vweird.f32 %v320_v39 }
 0x18d   : > { %767 = vpow2.f32 %v394_v40 }
 0x18e   : > { %v333_v52 = vor.u32 1.1754944e-38, %v332_v47  ;;  %vm331_vm5 = vcmp.eq.f32.partialorder %v330_v50, 8.507059e+37 }
 0x192   : > { %v766_v42 = vpop.eup %765 }
 0x193   : > { %v768_v43 = vpop.eup %767  ;;  %v322_v44 = vmul.f32 %v766_v42, %v320_v39  ;;  %vm327_vm2 = vweird.f32 %v766_v42 }
 0x194   : > { %v396_v45 = vsel %vm292_vm0, %v768_v43, 0.0  ;;  %vm328_vm4 = vmor %vm326_vm3, %vm327_vm2 }
 0x195   : > { %v323_v46 = vsub.f32 1.0, %v322_v44  ;;  %397 = vadd.xlane.f32.xlu2 %v396_v45 }
 0x197   : > { %v324_v49 = vmul.f32 %v766_v42, %v323_v46 }
 0x199   : > { %v325_v51 = vadd.f32 %v766_v42, %v324_v49 }
 0x19b   : > { %v329_v54 = vsel %vm328_vm4, %v766_v42, %v325_v51 }
 0x19c   : > { %v334_v55 = vsel %vm331_vm5, %v333_v52, %v329_v54  ;;  %vm602_vm5 = vcmask 257216  }
 0x19d   : > { %v335_v56 = vmul.f32 %v764_v28, %v334_v55 }
 0x19e   : > { %v449_v58 = vpop.permute.xlu0 %448 }
 0x19f   : > { %336 = vst.msk [vmem:[%s885_s14] sm:$0xff] %vm292_vm0, %v335_v56  ;;  %v337_v57 = vpack.c.bf16 %v335_v56, %v335_v56 }
 0x1a1   : > { %735 = vmatmul.msk.bf16.vlgmr.msra.gmra.mxu1 %vm292_vm0, %v337_v57 }
 0x1b1   : > { %739 = vmatmul.msk.bf16.vlgmr.msrb.gmra.mxu1 %vm292_vm0, %v449_v58 }
 0x1c9   : > { %v551_v9 = vpop.xlane.xlu0 %550 }
 0x1ca   : > { %v552_v10 = vsub.f32 %v874_v35, %v551_v9 }
 0x1cc   : > { %v553_v12 = vmul.f32 1.442695, %v552_v10 }
 0x1dc   : > { %v577_v20 = vpop.permute.xlu0 %576 }
 0x1dd   : > { %v582_v21 = vsel %vm341_vm1, %v577_v20, 0 }
 0x1de   : > { %591 = vmatpush.bf16.msrb.mxu2 %v582_v21 }
 0x208   : > { %v398_v59 = vpop.xlane.xlu2 %397 }
 0x209   : > { %769 = vrcp.f32 %v398_v59  ;;  %v410_v62 = vand.u32 2147483648, %v398_v59  ;;  %vm404_vm6 = vweird.f32 %v398_v59  ;;  %v408_v0 = vand.u32 2147483647, %v398_v59 }
 0x20a   : > { %771 = vpow2.f32 %v553_v12 }
 0x20b   : > { %v411_v2 = vor.u32 1.1754944e-38, %v410_v62  ;;  %vm409_vm9 = vcmp.eq.f32.partialorder %v408_v0, 8.507059e+37 }
 0x20f   : > { %v770_v60 = vpop.eup %769 }
 0x210   : > { %v400_v61 = vmul.f32 %v770_v60, %v398_v59  ;;  %vm405_vm7 = vweird.f32 %v770_v60  ;;  %v772_v17 = vpop.eup %771 }
 0x211   : > { %vm406_vm8 = vmor %vm404_vm6, %vm405_vm7  ;;  %v555_v19 = vsel %vm292_vm0, %v772_v17, 0.0 }
 0x212   : > { %v401_v63 = vsub.f32 1.0, %v400_v61 }
 0x214   : > { %v402_v1 = vmul.f32 %v770_v60, %v401_v63 }
 0x216   : > { %v403_v3 = vadd.f32 %v770_v60, %v402_v1 }
 0x218   : > { %v407_v4 = vsel %vm406_vm8, %v770_v60, %v403_v3 }
 0x219   : > { %v412_v5 = vsel %vm409_vm9, %v411_v2, %v407_v4 }
 0x21a   : > { %v893_v6 = vmul.f32 %v768_v43, %v412_v5 }
 0x21c   : > { %737 = vst.msk [vmem:[%s885_s14 + $0x8] sm:$0xff] %vm292_vm0, %v893_v6  ;;  %v416_v48 = vpack.c.bf16 %v893_v6, %v893_v6 }
 0x21e   : > { %v354_v7 = vpop.f32.mrf.mxu1 }
 0x21f   : > { %v358_v8 = vpack.c.bf16 %v354_v7, %v354_v7 }
 0x221   : > { %360 = vst.msk [vmem:[%s902_s17] sm:$0xf] %vm359_vm10, %v358_v8 }
 0x226   : > { %v356_v11 = vpop.f32.mrf.mxu1 }
 0x22e   : > { %v467_v14 = vpop.f32.mrf.mxu1 }
 0x22f   : > { %v468_v15 = vadd.f32 %v857_v13, %v467_v14 }
 0x231   : > { %v471_v16 = vsel %vm292_vm0, %v468_v15, -inf }
 0x232   : > { %472 = vmax.xlane.f32.xlu1 %v471_v16 }
 0x236   : > { %v469_v18 = vpop.f32.mrf.mxu1 }
 0x23a   : > { %556 = vadd.xlane.f32.xlu1 %v555_v19 }
 0x253   : > { %498 = vrot.lane.b32.xlu1 %v880_v53, %s788_s6 }
 0x2a5   : > { %v473_v22 = vpop.xlane.xlu1 %472 }
 0x2a6   : > { %v474_v23 = vsub.f32 %v468_v15, %v473_v22 }
 0x2a8   : > { %v475_v24 = vmul.f32 1.442695, %v474_v23 }
 0x2aa   : > { %773 = vpow2.f32 %v475_v24 }
 0x2ad   : > { %v557_v13 = vpop.xlane.xlu1 %556 }
 0x2ae   : > { %775 = vrcp.f32 %v557_v13  ;;  %v569_v30 = vand.u32 2147483648, %v557_v13  ;;  %v567_v32 = vand.u32 2147483647, %v557_v13  ;;  %vm563_vm12 = vweird.f32 %v557_v13 }
 0x2b0   : > { %v774_v25 = vpop.eup %773  ;;  %v570_v34 = vor.u32 1.1754944e-38, %v569_v30  ;;  %vm568_vm14 = vcmp.eq.f32.partialorder %v567_v32, 8.507059e+37 }
 0x2b1   : > { %v477_v26 = vsel %vm292_vm0, %v774_v25, 0.0 }
 0x2b2   : > { %478 = vadd.xlane.f32.xlu2 %v477_v26 }
 0x2b4   : > { %v776_v27 = vpop.eup %775 }
 0x2b5   : > { %v559_v28 = vmul.f32 %v776_v27, %v557_v13  ;;  %vm564_vm11 = vweird.f32 %v776_v27 }
 0x2b6   : > { %vm565_vm13 = vmor %vm563_vm12, %vm564_vm11 }
 0x2b7   : > { %v560_v29 = vsub.f32 1.0, %v559_v28 }
 0x2b9   : > { %v561_v31 = vmul.f32 %v776_v27, %v560_v29 }
 0x2bb   : > { %v562_v33 = vadd.f32 %v776_v27, %v561_v31 }
 0x2bd   : > { %v566_v35 = vsel %vm565_vm13, %v776_v27, %v562_v33 }
 0x2be   : > { %v571_v36 = vsel %vm568_vm14, %v570_v34, %v566_v35 }
 0x2bf   : > { %v572_v37 = vmul.f32 %v772_v17, %v571_v36 }
 0x2c1   : > { %743 = vst.msk [vmem:[%s885_s14 + $0x18] sm:$0xff] %vm292_vm0, %v572_v37  ;;  %v575_v38 = vpack.c.bf16 %v572_v37, %v572_v37 }
 0x2c3   : > { %744 = vmatmul.msk.bf16.vlgmr.msrb.gmra.mxu2 %vm292_vm0, %v575_v38 }
 0x2c5   : > { %v499_v40 = vpop.permute.xlu1 %498 }
 0x2c6   : > { %v504_v44 = vsel %vm341_vm1, %v499_v40, 0 }
 0x2ca   : > { %420 = vrot.lane.b32.xlu2 %v880_v53, %s787_s30 }
 0x325   : > { %v479_v39 = vpop.xlane.xlu2 %478 }
 0x326   : > { %777 = vrcp.f32 %v479_v39  ;;  %v491_v47 = vand.u32 2147483648, %v479_v39  ;;  %v489_v50 = vand.u32 2147483647, %v479_v39  ;;  %vm485_vm2 = vweird.f32 %v479_v39 }
 0x328   : > { %v492_v52 = vor.u32 1.1754944e-38, %v491_v47  ;;  %vm490_vm4 = vcmp.eq.f32.partialorder %v489_v50, 8.507059e+37 }
 0x32c   : > { %v778_v41 = vpop.eup %777 }
 0x32d   : > { %v481_v42 = vmul.f32 %v778_v41, %v479_v39  ;;  %v421_v43 = vpop.permute.xlu2 %420  ;;  %vm486_vm15 = vweird.f32 %v778_v41 }
 0x32e   : > { %v426_v45 = vsel %vm341_vm1, %v421_v43, 0  ;;  %vm487_vm3 = vmor %vm485_vm2, %vm486_vm15  ;;  %vm446_vm1 = vcmask 126016  }
 0x32f   : > { %v482_v46 = vsub.f32 1.0, %v481_v42  ;;  %435 = vmatpush.bf16.msra.mxu3 %v426_v45 }
 0x331   : > { %v483_v49 = vmul.f32 %v778_v41, %v482_v46 }
 0x332   : > { %738 = vmatmul.msk.bf16.vlgmr.msra.gmra.mxu3 %vm292_vm0, %v416_v48 }
 0x333   : > { %513 = vmatpush.bf16.msrb.mxu3 %v504_v44  ;;  %v484_v51 = vadd.f32 %v778_v41, %v483_v49 }
 0x335   : > { %v488_v53 = vsel %vm487_vm3, %v778_v41, %v484_v51 }
 0x336   : > { %v493_v54 = vsel %vm490_vm4, %v492_v52, %v488_v53 }
 0x337   : > { %v494_v55 = vmul.f32 %v774_v25, %v493_v54 }
 0x339   : > { %740 = vst.msk [vmem:[%s885_s14 + $0x10] sm:$0xff] %vm292_vm0, %v494_v55  ;;  %v497_v56 = vpack.c.bf16 %v494_v55, %v494_v55 }
 0x342   : > { %741 = vmatmul.msk.bf16.vlgmr.msrb.gmra.mxu3 %vm292_vm0, %v497_v56  ;;  %vm524_vm0 = vcmask 191616  }
 0x346   : > { %v593_v57 = vpop.f32.mrf.mxu2 }
 0x347   : > { %v597_v58 = vpack.c.bf16 %v593_v57, %v593_v57 }
 0x349   : > { %599 = vrot.lane.b32.xlu1 %v597_v58, %s790_s19 }
 0x34e   : > { %v595_v59 = vpop.f32.mrf.mxu2 }
 0x3b5   : > { %v437_v60 = vpop.f32.mrf.mxu3 }
 0x3b6   : > { %v441_v61 = vpack.c.bf16 %v437_v60, %v437_v60 }
 0x3b8   : > { %443 = vrot.lane.b32.xlu2 %v441_v61, %s791_s20 }
 0x3bb   : > { %v600_v4 = vpop.permute.xlu1 %599 }
 0x3bd   : > { %v439_v62 = vpop.f32.mrf.mxu3 }
 0x3c5   : > { %v515_v63 = vpop.f32.mrf.mxu3 }
 0x3c6   : > { %v519_v0 = vpack.c.bf16 %v515_v63, %v515_v63 }
 0x3c8   : > { %521 = vrot.lane.b32.xlu0 %v519_v0, %s792_s21 }
 0x3cd   : > { %v517_v1 = vpop.f32.mrf.mxu3 }
 0x412   : > { %v444_v2 = vpop.permute.xlu2 %443 }
 0x413   : > { %447 = vst.msk [vmem:[%s902_s17] sm:$0xf] %vm446_vm1, %v444_v2 }
 0x43a   : > { %v522_v3 = vpop.permute.xlu0 %521 }
 0x43b   : > { %525 = vst.msk [vmem:[%s902_s17] sm:$0xf] %vm524_vm0, %v522_v3 }
 0x43c   : > { %603 = vst.msk [vmem:[%s902_s17] sm:$0xf] %vm602_vm5, %v600_v4 }
 0x43d PF: > { %s16_s18 = sadd.s32 1, %s785_s18  }
 0x43e   : > { %p13_p4 = scmp.ge.s32.totalorder %s16_s18, 4  }
 0x440   :  { %15 = sbr.rel (!%p13_p4) target bundleno = 1 (0x1), region = 90 }

// kernel: transformer_forward.30
= control target key start
LH: loop header
LB: loop body
LE: loop exit
PB: predicated region body
PF: predicated region fallthrough
CT: control target
= control target key end

     0   :  { %vm31_vm0 = vcmask 261120   ;;  %v326_v7 = vmov 0.0   ;;  %vm116_vm1 = vcmask 523264   ;;  %v327_v34 = vmov 32.0   ;;  %s432_s1 = inlined_call_operand.vmem [shape: bf16[32,64], index: 1, kind: input, shape index: {}]   ;;  %s433_s2 = inlined_call_operand.vmem [shape: f32[1,64], index: 2, kind: input, shape index: {}]   ;;  %s434_s0 = inlined_call_operand.vmem [shape: bf16[16,32], index: 0, kind: input, shape index: {}]   ;;  %s435_s3 = inlined_call_operand.vmem [shape: bf16[64,32], index: 3, kind: input, shape index: {}]   ;;  %s436_s4 = inlined_call_operand.vmem [shape: f32[1,32], index: 4, kind: input, shape index: {}]   ;;  %s437_s5 = inlined_call_operand.vmem [shape: f32[1,32], index: 5, kind: input, shape index: {}]   ;;  %s438_s6 = inlined_call_operand.vmem [shape: f32[1,32], index: 6, kind: input, shape index: {}]   ;;  %s439_s7 = inlined_call_operand.vmem [shape: bf16[16,32], index: 7, kind: output, shape index: {}]  }
   0x1   :  { %v298_v0 = vld [vmem:[%s432_s1 + $0x8] sm:$0xff]  ;;  %v297_v1 = vld [vmem:[%s432_s1] sm:$0xff]  ;;  %v302_v3 = vld [vmem:[%s435_s3 + $0x18] sm:$0xff]  ;;  %32 = vst.msk [vmem:[#allocation2] sm:$0xff] %vm31_vm0, %v326_v7  ;;  %314 = vrcp.f32 %v327_v34  ;;  %v328_v51 = vmov 31.0   ;;  %vm259_vm12 = vcmask 257024  }
   0x2   :  { %71 = vmatpush.bf16.msra.mxu0 %v298_v0  ;;  %v296_v2 = vld [vmem:[%s434_s0] sm:$0xff]  ;;  %124 = vmatpush.bf16.msra.mxu1 %v302_v3  ;;  %v301_v4 = vld [vmem:[%s435_s3 + $0x10] sm:$0xff]  ;;  %v300_v5 = vld [vmem:[%s435_s3 + $0x8] sm:$0xff]  ;;  %33 = vst.msk [vmem:[#allocation2 + $0x8] sm:$0xff] %vm31_vm0, %v326_v7  ;;  %316 = vrcp.f32 %v328_v51 }
   0x3   :  { %v299_v6 = vld [vmem:[%s435_s3] sm:$0xff] }
   0x4   :  { %v310_v9 = vld [vmem:[%s433_s2] ss:$0 sm:$0xff] }
   0x5   :  { %v304_v19 = vld [vmem:[%s434_s0] sm:$0xff]  }
   0x6   :  { %72 = vmatpush.bf16.msra.mxu0 %v297_v1  ;;  %125 = vmatpush.bf16.msra.mxu1 %v301_v4  ;;  %v305_v21 = vunpack.c.l.bf16 %v304_v19  ;;  %v311_v24 = vld [vmem:[%s436_s4] ss:$0 sm:$0xff]  ;;  %v306_v29 = vunpack.c.h.bf16 %v304_v19 }
   0x7   :  { %v315_v35 = vpop.eup %314 }
   0x8   :  { %v81_v16 = vld [vmem:[#allocation2] sm:$0xff]  ;;  %v164_v36 = vmul.f32 32.0, %v315_v35  ;;  %vm168_vm2 = vweird.f32 %v315_v35  ;;  %v317_v52 = vpop.eup %316 }
   0x9   :  { %278 = vmatmul.msk.bf16.vlgmr.msra.gmra.mxu0 %vm31_vm0, %v296_v2  ;;  %v82_v20 = vld [vmem:[#allocation2 + $0x8] sm:$0xff]  ;;  %v183_v53 = vmul.f32 31.0, %v317_v52  ;;  %vm187_vm3 = vweird.f32 %v317_v52 }
   0xa   :  { %126 = vmatpush.bf16.msra.mxu1 %v300_v5  ;;  %v165_v37 = vsub.f32 1.0, %v164_v36 }
   0xb   :  { %v184_v54 = vsub.f32 1.0, %v183_v53 }
   0xc   :  { %v166_v38 = vmul.f32 %v315_v35, %v165_v37 }
   0xd   :  { %v185_v55 = vmul.f32 %v317_v52, %v184_v54 }
   0xe   :  { %127 = vmatpush.bf16.msra.mxu1 %v299_v6  ;;  %v167_v39 = vadd.f32 %v315_v35, %v166_v38 }
   0xf   :  { %v186_v56 = vadd.f32 %v317_v52, %v185_v55 }
  0x10   :  { %v169_v40 = vsel %vm168_vm2, %v315_v35, %v167_v39 }
  0x11   :  { %v188_v57 = vsel %vm187_vm3, %v317_v52, %v186_v56 }
  0x86   :  { %v74_v8 = vpop.f32.mrf.mxu0 }
  0x87   :  { %v75_v10 = vadd.f32 %v310_v9, %v74_v8 }
  0x89   :  { %v79_v13 = vmax.f32 %v75_v10, 0.0 }
  0x8e   :  { %v76_v11 = vpop.f32.mrf.mxu0 }
  0x8f   :  { %v77_v12 = vadd.f32 %v310_v9, %v76_v11 }
  0x91   :  { %v80_v14 = vmax.f32 %v77_v12, 0.0 }
  0x93   :  { %v83_v15 = vpack.c.bf16 %v80_v14, %v79_v13 }
  0x95   :  { %295 = vmatmul.msk.bf16.vlgmr.msra.gmra.mxu1 %vm116_vm1, %v83_v15 }
 0x112   :  { %v129_v17 = vpop.f32.mrf.mxu1 }
 0x113   :  { %v134_v18 = vadd.f32 %v129_v17, %v81_v16 }
 0x115   :  { %136 = vst.msk [vmem:[#allocation2] sm:$0xff] %vm31_vm0, %v134_v18 }
 0x11a   :  { %v131_v22 = vpop.f32.mrf.mxu1 }
 0x11b   :  { %v135_v23 = vadd.f32 %v131_v22, %v82_v20 }
 0x11c   :  { %v145_v25 = vld [vmem:[#allocation2] sm:$0xff] }
 0x11d   :  { %137 = vst.msk [vmem:[#allocation2 + $0x8] sm:$0xff] %vm31_vm0, %v135_v23  ;;  %v147_v26 = vadd.f32 %v305_v21, %v145_v25 }
 0x11f   :  { %v153_v27 = vadd.f32 %v311_v24, %v147_v26 }
 0x121   :  { %v157_v28 = vsel %vm31_vm0, %v153_v27, 0.0 }
 0x122   :  { %158 = vadd.xlane.f32.xlu0 %v157_v28 }
 0x124   :  { %v146_v30 = vld [vmem:[#allocation2 + $0x8] sm:$0xff] }
 0x125   :  { %v148_v31 = vadd.f32 %v306_v29, %v146_v30 }
 0x127   :  { %v154_v32 = vadd.f32 %v311_v24, %v148_v31  ;;  %v312_v24 = vld [vmem:[%s437_s5] ss:$0 sm:$0xff] }
 0x128   :  { %v313_v31 = vld [vmem:[%s438_s6] ss:$0 sm:$0xff] }
 0x129   :  { %v160_v33 = vsel %vm31_vm0, %v154_v32, 0.0 }
 0x12a   :  { %161 = vadd.xlane.f32.xlu0 %v160_v33 }
 0x195   :  { %v159_v41 = vpop.xlane.xlu0 %158 }
 0x196   :  { %v170_v42 = vmul.f32 %v169_v40, %v159_v41 }
 0x198   :  { %v406_v43 = vsub.f32 %v153_v27, %v170_v42 }
 0x19a   :  { %v174_v44 = vmul.f32 %v406_v43, %v406_v43  ;;  %v194_v30 = vmul.f32 %v312_v24, %v406_v43 }
 0x19c   :  { %v176_v45 = vsel %vm31_vm0, %v174_v44, 0.0 }
 0x19d   :  { %177 = vadd.xlane.f32.xlu1 %v176_v45  ;;  %v162_v46 = vpop.xlane.xlu0 %161 }
 0x19e   :  { %v171_v47 = vmul.f32 %v169_v40, %v162_v46 }
 0x1a0   :  { %v411_v48 = vsub.f32 %v154_v32, %v171_v47 }
 0x1a2   :  { %v175_v49 = vmul.f32 %v411_v48, %v411_v48  ;;  %v195_v44 = vmul.f32 %v312_v24, %v411_v48 }
 0x1a4   :  { %v179_v50 = vsel %vm31_vm0, %v175_v49, 0.0 }
 0x1a5   :  { %180 = vadd.xlane.f32.xlu1 %v179_v50 }
 0x210   :  { %v178_v58 = vpop.xlane.xlu1 %177 }
 0x211   :  { %v189_v59 = vmul.f32 %v188_v57, %v178_v58 }
 0x213   :  { %318 = vrsqrt.f32 %v189_v59  ;;  %vm203_vm4 = vcmp.eq.f32.partialorder %v189_v59, inf  ;;  %v206_v8 = vand.u32 2147483648, %v189_v59  ;;  %vm205_vm5 = vcmp.eq.f32.partialorder %v189_v59, 0.0 }
 0x218   :  { %v181_v60 = vpop.xlane.xlu1 %180 }
 0x219   :  { %v319_v61 = vpop.eup %318  ;;  %v190_v62 = vmul.f32 %v188_v57, %v181_v60 }
 0x21a   :  { %v197_v63 = vmul.f32 %v319_v61, %v189_v59 }
 0x21b   :  { %320 = vrsqrt.f32 %v190_v62  ;;  %vm215_vm6 = vcmp.eq.f32.partialorder %v190_v62, inf  ;;  %v218_v16 = vand.u32 2147483648, %v190_v62  ;;  %vm217_vm7 = vcmp.eq.f32.partialorder %v190_v62, 0.0 }
 0x21c   :  { %v198_v0 = vmul.f32 %v319_v61, %v197_v63 }
 0x21e   :  { %v199_v1 = vmul.f32 0.5, %v198_v0 }
 0x220   :  { %v200_v2 = vsub.f32 1.5, %v199_v1 }
 0x221   :  { %v321_v3 = vpop.eup %320 }
 0x222   :  { %v201_v4 = vmul.f32 %v319_v61, %v200_v2  ;;  %v209_v5 = vmul.f32 %v321_v3, %v190_v62 }
 0x224   :  { %v202_v6 = vmul.f32 %v201_v4, %v189_v59  ;;  %v210_v7 = vmul.f32 %v321_v3, %v209_v5 }
 0x226   :  { %v204_v9 = vsel %vm203_vm4, %v189_v59, %v202_v6  ;;  %v211_v10 = vmul.f32 0.5, %v210_v7 }
 0x227   :  { %v207_v11 = vsel %vm205_vm5, %v206_v8, %v204_v9 }
 0x228   :  { %v220_v12 = vadd.f32 1e-06, %v207_v11  ;;  %v212_v13 = vsub.f32 1.5, %v211_v10 }
 0x22a   :  { %322 = vrcp.f32 %v220_v12  ;;  %v213_v14 = vmul.f32 %v321_v3, %v212_v13  ;;  %v233_v23 = vand.u32 2147483648, %v220_v12  ;;  %v231_v26 = vand.u32 2147483647, %v220_v12 }
 0x22b   :  { %vm227_vm9 = vweird.f32 %v220_v12 }
 0x22c   :  { %v214_v15 = vmul.f32 %v213_v14, %v190_v62  ;;  %v234_v28 = vor.u32 1.1754944e-38, %v233_v23  ;;  %vm232_vm11 = vcmp.eq.f32.partialorder %v231_v26, 8.507059e+37 }
 0x22e   :  { %v216_v17 = vsel %vm215_vm6, %v190_v62, %v214_v15 }
 0x22f   :  { %v219_v19 = vsel %vm217_vm7, %v218_v16, %v216_v17 }
 0x230   :  { %v323_v18 = vpop.eup %322  ;;  %v221_v21 = vadd.f32 1e-06, %v219_v19 }
 0x231   :  { %v223_v20 = vmul.f32 %v323_v18, %v220_v12  ;;  %vm228_vm8 = vweird.f32 %v323_v18 }
 0x232   :  { %324 = vrcp.f32 %v221_v21  ;;  %vm229_vm10 = vmor %vm227_vm9, %vm228_vm8  ;;  %v248_v38 = vand.u32 2147483648, %v221_v21  ;;  %v246_v40 = vand.u32 2147483647, %v221_v21  ;;  %vm242_vm14 = vweird.f32 %v221_v21 }
 0x233   :  { %v224_v22 = vsub.f32 1.0, %v223_v20 }
 0x234   :  { %v249_v43 = vor.u32 1.1754944e-38, %v248_v38  ;;  %vm247_vm0 = vcmp.eq.f32.partialorder %v246_v40, 8.507059e+37 }
 0x235   :  { %v225_v25 = vmul.f32 %v323_v18, %v224_v22 }
 0x237   :  { %v226_v27 = vadd.f32 %v323_v18, %v225_v25 }
 0x238   :  { %v325_v29 = vpop.eup %324 }
 0x239   :  { %v230_v32 = vsel %vm229_vm10, %v323_v18, %v226_v27  ;;  %v238_v34 = vmul.f32 %v325_v29, %v221_v21  ;;  %vm243_vm13 = vweird.f32 %v325_v29 }
 0x23a   :  { %v235_v33 = vsel %vm232_vm11, %v234_v28, %v230_v32  ;;  %vm244_vm15 = vmor %vm242_vm14, %vm243_vm13 }
 0x23b   :  { %v236_v35 = vmul.f32 %v235_v33, %v194_v30  ;;  %v239_v36 = vsub.f32 1.0, %v238_v34 }
 0x23d   :  { %v255_v37 = vadd.f32 %v313_v31, %v236_v35  ;;  %v240_v39 = vmul.f32 %v325_v29, %v239_v36 }
 0x23f   :  { %v257_v41 = vpack.c.bf16 %v255_v37, %v255_v37  ;;  %v241_v42 = vadd.f32 %v325_v29, %v240_v39 }
 0x241   :  { %260 = vst.msk [vmem:[%s439_s7] sm:$0xf] %vm259_vm12, %v257_v41  ;;  %v245_v45 = vsel %vm244_vm15, %v325_v29, %v241_v42 }
 0x242   :  { %v250_v46 = vsel %vm247_vm0, %v249_v43, %v245_v45 }
 0x243   :  { %v251_v47 = vmul.f32 %v250_v46, %v195_v44 }
 0x245   :  { %v256_v49 = vadd.f32 %v313_v31, %v251_v47 }
 0x247   :  { %v258_v50 = vpack.c.bf16 %v256_v49, %v256_v49 }
 0x249   :  { %261 = vst.msk [vmem:[%s439_s7 + $0x4] sm:$0xf] %vm259_vm12, %v258_v50 }

// kernel: transformer_forward.35
= control target key start
LH: loop header
LB: loop body
LE: loop exit
PB: predicated region body
PF: predicated region fallthrough
CT: control target
= control target key end

     0   :  { %vm20_vm0 = vcmask 261120   ;;  %v150_v5 = vmov 32.0   ;;  %v151_v25 = vmov 31.0   ;;  %vm123_vm11 = vcmask 257024   ;;  %s199_s0 = inlined_call_operand.vmem [shape: bf16[16,32], index: 0, kind: input, shape index: {}]   ;;  %s200_s1 = inlined_call_operand.vmem [shape: f32[1,32], index: 1, kind: input, shape index: {}]   ;;  %s201_s2 = inlined_call_operand.vmem [shape: f32[1,32], index: 2, kind: input, shape index: {}]   ;;  %s202_s3 = inlined_call_operand.vmem [shape: bf16[16,32], index: 3, kind: output, shape index: {}]  }
   0x1   :  { %v131_v0 = vld [vmem:[%s199_s0] sm:$0xff]   ;;  %138 = vrcp.f32 %v150_v5 }
   0x2   :  { %v132_v1 = vunpack.c.l.bf16 %v131_v0  ;;  %v133_v3 = vunpack.c.h.bf16 %v131_v0  ;;  %v136_v13 = vld [vmem:[%s200_s1] ss:$0 sm:$0xff]  ;;  %140 = vrcp.f32 %v151_v25 }
   0x4   :  { %v21_v2 = vsel %vm20_vm0, %v132_v1, 0.0  ;;  %v24_v4 = vsel %vm20_vm0, %v133_v3, 0.0 }
   0x5   :  { %22 = vadd.xlane.f32.xlu0 %v21_v2 }
   0x7   :  { %v139_v6 = vpop.eup %138 }
   0x8   :  { %v28_v7 = vmul.f32 32.0, %v139_v6  ;;  %vm32_vm1 = vweird.f32 %v139_v6  ;;  %v141_v26 = vpop.eup %140 }
   0x9   :  { %v47_v27 = vmul.f32 31.0, %v141_v26  ;;  %vm51_vm2 = vweird.f32 %v141_v26 }
   0xa   :  { %v29_v8 = vsub.f32 1.0, %v28_v7 }
   0xb   :  { %v48_v28 = vsub.f32 1.0, %v47_v27 }
   0xc   :  { %v30_v9 = vmul.f32 %v139_v6, %v29_v8 }
   0xd   :  { %25 = vadd.xlane.f32.xlu0 %v24_v4  ;;  %v49_v29 = vmul.f32 %v141_v26, %v48_v28 }
   0xe   :  { %v31_v10 = vadd.f32 %v139_v6, %v30_v9 }
   0xf   :  { %v50_v30 = vadd.f32 %v141_v26, %v49_v29 }
  0x10   :  { %v33_v11 = vsel %vm32_vm1, %v139_v6, %v31_v10 }
  0x11   :  { %v52_v31 = vsel %vm51_vm2, %v141_v26, %v50_v30 }
  0x78   :  { %v23_v12 = vpop.xlane.xlu0 %22 }
  0x79   :  { %v34_v14 = vmul.f32 %v33_v11, %v23_v12 }
  0x7b   :  { %v36_v15 = vsub.f32 %v132_v1, %v34_v14 }
  0x7d   :  { %v180_v16 = vmul.f32 %v136_v13, %v36_v15  ;;  %v38_v17 = vmul.f32 %v36_v15, %v36_v15 }
  0x7f   :  { %v40_v18 = vsel %vm20_vm0, %v38_v17, 0.0 }
  0x80   :  { %41 = vadd.xlane.f32.xlu1 %v40_v18  ;;  %v26_v19 = vpop.xlane.xlu0 %25 }
  0x81   :  { %v35_v20 = vmul.f32 %v33_v11, %v26_v19 }
  0x83   :  { %v37_v21 = vsub.f32 %v133_v3, %v35_v20  ;;  %v137_v3 = vld [vmem:[%s201_s2] ss:$0 sm:$0xff] }
  0x85   :  { %v183_v22 = vmul.f32 %v136_v13, %v37_v21  ;;  %v39_v23 = vmul.f32 %v37_v21, %v37_v21 }
  0x87   :  { %v43_v24 = vsel %vm20_vm0, %v39_v23, 0.0 }
  0x88   :  { %44 = vadd.xlane.f32.xlu1 %v43_v24 }
  0xf3   :  { %v42_v32 = vpop.xlane.xlu1 %41 }
  0xf4   :  { %v53_v33 = vmul.f32 %v52_v31, %v42_v32 }
  0xf6   :  { %142 = vrsqrt.f32 %v53_v33  ;;  %vm67_vm3 = vcmp.eq.f32.partialorder %v53_v33, inf  ;;  %v70_v46 = vand.u32 2147483648, %v53_v33  ;;  %vm69_vm4 = vcmp.eq.f32.partialorder %v53_v33, 0.0 }
  0xfb   :  { %v45_v34 = vpop.xlane.xlu1 %44 }
  0xfc   :  { %v143_v35 = vpop.eup %142  ;;  %v54_v36 = vmul.f32 %v52_v31, %v45_v34 }
  0xfd   :  { %v61_v37 = vmul.f32 %v143_v35, %v53_v33 }
  0xfe   :  { %144 = vrsqrt.f32 %v54_v36  ;;  %vm79_vm5 = vcmp.eq.f32.partialorder %v54_v36, inf  ;;  %v82_v54 = vand.u32 2147483648, %v54_v36  ;;  %vm81_vm6 = vcmp.eq.f32.partialorder %v54_v36, 0.0 }
  0xff   :  { %v62_v38 = vmul.f32 %v143_v35, %v61_v37 }
 0x101   :  { %v63_v39 = vmul.f32 0.5, %v62_v38 }
 0x103   :  { %v64_v40 = vsub.f32 1.5, %v63_v39 }
 0x104   :  { %v145_v41 = vpop.eup %144 }
 0x105   :  { %v65_v42 = vmul.f32 %v143_v35, %v64_v40  ;;  %v73_v43 = vmul.f32 %v145_v41, %v54_v36 }
 0x107   :  { %v66_v44 = vmul.f32 %v65_v42, %v53_v33  ;;  %v74_v45 = vmul.f32 %v145_v41, %v73_v43 }
 0x109   :  { %v68_v47 = vsel %vm67_vm3, %v53_v33, %v66_v44  ;;  %v75_v48 = vmul.f32 0.5, %v74_v45 }
 0x10a   :  { %v71_v49 = vsel %vm69_vm4, %v70_v46, %v68_v47 }
 0x10b   :  { %v84_v50 = vadd.f32 1e-06, %v71_v49  ;;  %v76_v51 = vsub.f32 1.5, %v75_v48 }
 0x10d   :  { %146 = vrcp.f32 %v84_v50  ;;  %v77_v52 = vmul.f32 %v145_v41, %v76_v51  ;;  %v97_v61 = vand.u32 2147483648, %v84_v50  ;;  %v95_v63 = vand.u32 2147483647, %v84_v50 }
 0x10e   :  { %vm91_vm8 = vweird.f32 %v84_v50 }
 0x10f   :  { %v78_v53 = vmul.f32 %v77_v52, %v54_v36  ;;  %v98_v1 = vor.u32 1.1754944e-38, %v97_v61  ;;  %vm96_vm10 = vcmp.eq.f32.partialorder %v95_v63, 8.507059e+37 }
 0x111   :  { %v80_v55 = vsel %vm79_vm5, %v54_v36, %v78_v53 }
 0x112   :  { %v83_v57 = vsel %vm81_vm6, %v82_v54, %v80_v55 }
 0x113   :  { %v147_v56 = vpop.eup %146  ;;  %v85_v59 = vadd.f32 1e-06, %v83_v57 }
 0x114   :  { %v87_v58 = vmul.f32 %v147_v56, %v84_v50  ;;  %vm92_vm7 = vweird.f32 %v147_v56 }
 0x115   :  { %148 = vrcp.f32 %v85_v59  ;;  %vm93_vm9 = vmor %vm91_vm8, %vm92_vm7  ;;  %v112_v10 = vand.u32 2147483648, %v85_v59  ;;  %v110_v12 = vand.u32 2147483647, %v85_v59  ;;  %vm106_vm13 = vweird.f32 %v85_v59 }
 0x116   :  { %v88_v60 = vsub.f32 1.0, %v87_v58 }
 0x117   :  { %v113_v15 = vor.u32 1.1754944e-38, %v112_v10  ;;  %vm111_vm15 = vcmp.eq.f32.partialorder %v110_v12, 8.507059e+37 }
 0x118   :  { %v89_v62 = vmul.f32 %v147_v56, %v88_v60 }
 0x11a   :  { %v90_v0 = vadd.f32 %v147_v56, %v89_v62 }
 0x11b   :  { %v149_v2 = vpop.eup %148 }
 0x11c   :  { %v94_v4 = vsel %vm93_vm9, %v147_v56, %v90_v0  ;;  %v102_v6 = vmul.f32 %v149_v2, %v85_v59  ;;  %vm107_vm12 = vweird.f32 %v149_v2 }
 0x11d   :  { %v99_v5 = vsel %vm96_vm10, %v98_v1, %v94_v4  ;;  %vm108_vm14 = vmor %vm106_vm13, %vm107_vm12 }
 0x11e   :  { %v100_v7 = vmul.f32 %v99_v5, %v180_v16  ;;  %v103_v8 = vsub.f32 1.0, %v102_v6 }
 0x120   :  { %v119_v9 = vadd.f32 %v137_v3, %v100_v7  ;;  %v104_v11 = vmul.f32 %v149_v2, %v103_v8 }
 0x122   :  { %v121_v13 = vpack.c.bf16 %v119_v9, %v119_v9  ;;  %v105_v14 = vadd.f32 %v149_v2, %v104_v11 }
 0x124   :  { %124 = vst.msk [vmem:[%s202_s3] sm:$0xf] %vm123_vm11, %v121_v13  ;;  %v109_v17 = vsel %vm108_vm14, %v149_v2, %v105_v14 }
 0x125   :  { %v114_v16 = vsel %vm111_vm15, %v113_v15, %v109_v17 }
 0x126   :  { %v115_v18 = vmul.f32 %v114_v16, %v183_v22 }
 0x128   :  { %v120_v19 = vadd.f32 %v137_v3, %v115_v18 }
 0x12a   :  { %v122_v20 = vpack.c.bf16 %v120_v19, %v120_v19 }
 0x12c   :  { %125 = vst.msk [vmem:[%s202_s3 + $0x4] sm:$0xf] %vm123_vm11, %v122_v20 }

// kernel: transformer_forward.39
= control target key start
LH: loop header
LB: loop body
LE: loop exit
PB: predicated region body
PF: predicated region fallthrough
CT: control target
= control target key end

     0   :  { %vm19_vm0 = vcmask 261120   ;;  %v107_v1 = vmov 0.0   ;;  %vm82_vm1 = vcmask 257024   ;;  %s151_s1 = inlined_call_operand.vmem [shape: bf16[32,32], index: 1, kind: input, shape index: {}]   ;;  %s152_s2 = inlined_call_operand.vmem [shape: f32[1,32], index: 2, kind: input, shape index: {}]   ;;  %s153_s0 = inlined_call_operand.vmem [shape: bf16[16,32], index: 0, kind: input, shape index: {}]   ;;  %s154_s3 = inlined_call_operand.vmem [shape: bf16[16,32], index: 3, kind: output, shape index: {}]  }
   0x1   :  { %v104_v0 = vld [vmem:[%s151_s1 + $0x8] sm:$0xff]  ;;  %20 = vst.msk [vmem:[#allocation2] sm:$0xff] %vm19_vm0, %v107_v1  ;;  %v103_v2 = vld [vmem:[%s151_s1] sm:$0xff] }
   0x2   :  { %21 = vst.msk [vmem:[#allocation2 + $0x8] sm:$0xff] %vm19_vm0, %v107_v1  ;;  %57 = vmatpush.bf16.msra.mxu0 %v104_v0  ;;  %v102_v3 = vld [vmem:[%s153_s0] sm:$0xff] }
   0x3   :  { %v106_v8 = vld [vmem:[%s152_s2] ss:$0 sm:$0xff] }
   0x6   :  { %58 = vmatpush.bf16.msra.mxu0 %v103_v2 }
   0x8   :  { %v22_v4 = vld [vmem:[#allocation2] sm:$0xff] }
   0x9   :  { %101 = vmatmul.msk.bf16.vlgmr.msra.gmra.mxu0 %vm19_vm0, %v102_v3  ;;  %v23_v7 = vld [vmem:[#allocation2 + $0x8] sm:$0xff] }
  0x86   :  { %v60_v5 = vpop.f32.mrf.mxu0 }
  0x87   :  { %v65_v6 = vadd.f32 %v60_v5, %v22_v4 }
  0x89   :  { %67 = vst.msk [vmem:[#allocation2] sm:$0xff] %vm19_vm0, %v65_v6 }
  0x8e   :  { %v62_v9 = vpop.f32.mrf.mxu0 }
  0x8f   :  { %v66_v10 = vadd.f32 %v62_v9, %v23_v7 }
  0x90   :  { %v72_v11 = vld [vmem:[#allocation2] sm:$0xff] }
  0x91   :  { %v78_v12 = vadd.f32 %v106_v8, %v72_v11  ;;  %68 = vst.msk [vmem:[#allocation2 + $0x8] sm:$0xff] %vm19_vm0, %v66_v10 }
  0x93   :  { %v80_v13 = vpack.c.bf16 %v78_v12, %v78_v12 }
  0x95   :  { %83 = vst.msk [vmem:[%s154_s3] sm:$0xf] %vm82_vm1, %v80_v13 }
  0x98   :  { %v73_v14 = vld [vmem:[#allocation2 + $0x8] sm:$0xff] }
  0x99   :  { %v79_v15 = vadd.f32 %v106_v8, %v73_v14 }
  0x9b   :  { %v81_v16 = vpack.c.bf16 %v79_v15, %v79_v15 }
  0x9d   :  { %84 = vst.msk [vmem:[%s154_s3 + $0x4] sm:$0xf] %vm82_vm1, %v81_v16 }

// kernel: transformer_forward.37
= control target key start
LH: loop header
LB: loop body
LE: loop exit
PB: predicated region body
PF: predicated region fallthrough
CT: control target
= control target key end

     0   :  { %s835_s18 = smov 0   ;;  %s946_s0 = inlined_call_operand.vmem [shape: bf16[2,8,32], index: 0, kind: input, shape index: {}]   ;;  %s947_s1 = inlined_call_operand.vmem [shape: bf16[2,8,32], index: 1, kind: input, shape index: {}]   ;;  %s948_s2 = inlined_call_operand.vmem [shape: bf16[2,8,32], index: 2, kind: input, shape index: {}]   ;;  %s949_s3 = inlined_call_operand.vmem [shape: f32[2,1,8], index: 3, kind: input, shape index: {}]   ;;  %s950_s4 = inlined_call_operand.vmem [shape: bf16[2,8,32], index: 4, kind: output, shape index: {0}]   ;;  %s951_s5 = inlined_call_operand.vmem [shape: f32[2,4,8,8], index: 5, kind: output, shape index: {1}]  }
   0x1 LB: > { %s733_s19 = sadd.s32 4294967295, %s796_s18   ;;  %p737_p0 = scmp.ge.s32.totalorder %s796_s18, 1  ;;  %s796_s18 = sphi %s835_s18, %s16_s18  }
   0x2   : > { %p215_p1 = scmp.lt.s32.totalorder %s796_s18, 3 }
   0x4   : > { %p216_p2 = pnand %p737_p0, %p215_p1 }
   0x5   : > { %p257_p3 = scmp.lt.s32.totalorder (!%p216_p2), %s733_s19, 1  ;;  %s798_s30 = smov (!%p216_p2), 120  }
   0x6   : > { %219 = sbr.rel (%p216_p2) target bundleno = 1089 (0x441), region = 36  ;;  %s799_s6 = smov (!%p216_p2), 112  }
   0x7   : > { %s800_s7 = smov (!%p216_p2), 104   ;;  %s804_s21 = smov (!%p216_p2), 16  }
   0xb   : > { %s953_s19 = smov (!%p257_p3, %s733_s19), 1  ;;  %vm298_vm0 = vcmask 64512   ;;  %v289_v12 = vlaneseq  ;;  %v801_v18 = vmov 0.0   ;;  %vm348_vm2 = vcmask 1043456  }
   0xc   : > { %s846_s20 = sshll.u32 %s953_s19, 2  ;;  %s271_s29 = scalar_lea.vmem %s949_s3, %s953_s19  ;;  %vm366_vm11 = vcmask 60416  }
   0xd   : > { %s264_s23 = scalar_lea.vmem %s947_s1, %s846_s20  ;;  %s260_s26 = scalar_lea.vmem %s946_s0, %s846_s20  ;;  %v290_v13 = vshrl.u32 %v289_v12, 7  ;;  %v292_v14 = vand.u32 127, %v289_v12  ;;  %v869_v16 = vld [vmem:[%s271_s29] ss:$0 sm:$0xff] }
   0xe   : > { %v286_v0 = vld [vmem:[%s264_s23] sm:$0xf]  ;;  %s268_s10 = scalar_lea.vmem %s948_s2, %s846_s20  ;;  %s757_s11 = sshll.u32 %s953_s19, 5 }
   0xf   : > { %v303_v1 = vsel %vm298_vm0, %v286_v0, 0  ;;  %v374_v2 = vunpack.c.l.b16 %v286_v0  ;;  %v282_v3 = vld [vmem:[%s260_s26] sm:$0xf]  ;;  %vm293_vm1 = vcmp.gt.s32.totalorder %v292_v14, %v290_v13  ;;  %s897_s14 = scalar_lea.vmem %s951_s5, %s757_s11  ;;  %s916_s17 = scalar_lea.vmem %s950_s4, %s846_s20 }
  0x10   : > { %312 = vmatpush.bf16.xpose.msra.mxu0 %v303_v1  ;;  %v283_v4 = vunpack.c.l.bf16 %v282_v3  ;;  %v871_v19 = vsel %vm293_vm1, -1e+09, %v801_v18  ;;  %v287_v38 = vld [vmem:[%s268_s10] sm:$0xf]  ;;  %s802_s19 = smov 24   ;;  %s803_s20 = smov 8  }
  0x11   : > { %v375_v5 = vpack.c.b16 %v374_v2, %v374_v2  ;;  %v350_v40 = vsel %vm348_vm2, %v287_v38, 0  ;;  %v426_v0 = vunpack.c.l.b16 %v287_v38 }
  0x12   : > { %v284_v6 = vmul.f32 0.35355338, %v283_v4  ;;  %359 = vmatpush.bf16.msra.mxu1 %v350_v40 }
  0x13   : > { %376 = vrot.lane.b32.xlu1 %v375_v5, %s798_s30  ;;  %458 = vrot.lane.b32.xlu2 %v375_v5, %s799_s6  ;;  %v902_v1 = vpack.c.b16 %v426_v0, %v426_v0 }
  0x14   : > { %v285_v7 = vpack.c.bf16 %v284_v6, %v284_v6 }
  0x16   : > { %v369_v8 = vunpack.c.l.b16 %v285_v7 }
  0x17   : > { %744 = vmatmul.msk.bf16.vlgmr.msra.gmra.mxu0 %vm298_vm0, %v285_v7 }
  0x18   : > { %v370_v9 = vpack.c.b16 %v369_v8, %v369_v8 }
  0x1b   : > { %371 = vrot.lane.b32.xlu1 %v370_v9, %s798_s30  ;;  %537 = vrot.lane.b32.xlu2 %v375_v5, %s800_s7 }
  0x23   : > { %535 = vrot.lane.b32.xlu1 %v370_v9, %s800_s7 }
  0x6d   : > { %v459_v24 = vpop.permute.xlu2 %458 }
  0x6e   : > { %v464_v39 = vsel %vm298_vm0, %v459_v24, 0 }
  0x6f   : > { %473 = vmatpush.bf16.xpose.msrb.mxu1 %v464_v39 }
  0x75   : > { %v538_v25 = vpop.permute.xlu2 %537 }
  0x76   : > { %v543_v26 = vsel %vm298_vm0, %v538_v25, 0 }
  0x77   : > { %552 = vmatpush.bf16.xpose.msrb.mxu0 %v543_v26 }
  0x85   : > { %v377_v10 = vpop.permute.xlu1 %376 }
  0x86   : > { %v382_v11 = vsel %vm298_vm0, %v377_v10, 0 }
  0x87   : > { %391 = vmatpush.bf16.xpose.msra.mxu2 %v382_v11 }
  0x8d   : > { %v372_v15 = vpop.permute.xlu1 %371 }
  0x8e   : > { %746 = vmatmul.msk.bf16.vlgmr.msra.gmra.mxu2 %vm298_vm0, %v372_v15 }
  0x94   : > { %v314_v17 = vpop.f32.mrf.mxu0 }
  0x95   : > { %v315_v20 = vadd.f32 %v869_v16, %v314_v17  ;;  %v536_v27 = vpop.permute.xlu1 %535 }
  0x96   : > { %752 = vmatmul.msk.bf16.vlgmr.msrb.gmra.mxu0 %vm298_vm0, %v536_v27 }
  0x97   : > { %v318_v21 = vadd.f32 %v315_v20, %v871_v19 }
  0x99   : > { %v319_v22 = vsel %vm298_vm0, %v318_v21, -inf }
  0x9a   : > { %320 = vmax.xlane.f32.xlu0 %v319_v22 }
  0x9c   : > { %v316_v23 = vpop.f32.mrf.mxu0 }
 0x10d   : > { %v321_v28 = vpop.xlane.xlu0 %320 }
 0x10e   : > { %v322_v29 = vsub.f32 %v318_v21, %v321_v28 }
 0x110   : > { %v323_v30 = vmul.f32 1.442695, %v322_v29 }
 0x111   : > { %v393_v31 = vpop.f32.mrf.mxu2 }
 0x112   : > { %774 = vpow2.f32 %v323_v30  ;;  %v394_v32 = vadd.f32 %v869_v16, %v393_v31 }
 0x113   : > { %v554_v41 = vpop.f32.mrf.mxu0 }
 0x114   : > { %v397_v33 = vadd.f32 %v394_v32, %v871_v19  ;;  %v555_v46 = vadd.f32 %v869_v16, %v554_v41 }
 0x116   : > { %v398_v34 = vsel %vm298_vm0, %v397_v33, -inf  ;;  %v558_v48 = vadd.f32 %v555_v46, %v871_v19 }
 0x117   : > { %399 = vmax.xlane.f32.xlu2 %v398_v34 }
 0x118   : > { %v775_v35 = vpop.eup %774  ;;  %v559_v52 = vsel %vm298_vm0, %v558_v48, -inf }
 0x119   : > { %v325_v36 = vsel %vm298_vm0, %v775_v35, 0.0  ;;  %v395_v37 = vpop.f32.mrf.mxu2 }
 0x11a   : > { %326 = vadd.xlane.f32.xlu0 %v325_v36 }
 0x11b   : > { %v556_v47 = vpop.f32.mrf.mxu0 }
 0x12e   : > { %456 = vrot.lane.b32.xlu0 %v370_v9, %s799_s6 }
 0x158   : > { %560 = vmax.xlane.f32.xlu0 %v559_v52 }
 0x16c   : > { %586 = vrot.lane.b32.xlu0 %v902_v1, %s800_s7 }
 0x18a   : > { %v400_v42 = vpop.xlane.xlu2 %399 }
 0x18b   : > { %v401_v43 = vsub.f32 %v397_v33, %v400_v42 }
 0x18d   : > { %v327_v44 = vpop.xlane.xlu0 %326  ;;  %v402_v45 = vmul.f32 1.442695, %v401_v43 }
 0x18e   : > { %776 = vrcp.f32 %v327_v44  ;;  %v339_v55 = vand.u32 2147483648, %v327_v44  ;;  %v337_v57 = vand.u32 2147483647, %v327_v44  ;;  %vm333_vm4 = vweird.f32 %v327_v44 }
 0x18f   : > { %778 = vpow2.f32 %v402_v45 }
 0x190   : > { %v340_v59 = vor.u32 1.1754944e-38, %v339_v55  ;;  %vm338_vm6 = vcmp.eq.f32.partialorder %v337_v57, 8.507059e+37 }
 0x194   : > { %v777_v49 = vpop.eup %776 }
 0x195   : > { %v779_v50 = vpop.eup %778  ;;  %v329_v51 = vmul.f32 %v777_v49, %v327_v44  ;;  %vm334_vm3 = vweird.f32 %v777_v49 }
 0x196   : > { %v404_v53 = vsel %vm298_vm0, %v779_v50, 0.0  ;;  %vm335_vm5 = vmor %vm333_vm4, %vm334_vm3 }
 0x197   : > { %v330_v54 = vsub.f32 1.0, %v329_v51  ;;  %405 = vadd.xlane.f32.xlu2 %v404_v53 }
 0x199   : > { %v331_v56 = vmul.f32 %v777_v49, %v330_v54 }
 0x19b   : > { %v332_v58 = vadd.f32 %v777_v49, %v331_v56 }
 0x19d   : > { %v336_v60 = vsel %vm335_vm5, %v777_v49, %v332_v58 }
 0x19e   : > { %v341_v61 = vsel %vm338_vm6, %v340_v59, %v336_v60  ;;  %vm612_vm6 = vcmask 257216  }
 0x19f   : > { %v342_v62 = vmul.f32 %v775_v35, %v341_v61 }
 0x1a0   : > { %v457_v2 = vpop.permute.xlu0 %456 }
 0x1a1   : > { %343 = vst.msk [vmem:[%s897_s14] sm:$0xff] %vm298_vm0, %v342_v62  ;;  %v344_v63 = vpack.c.bf16 %v342_v62, %v342_v62 }
 0x1a3   : > { %745 = vmatmul.msk.bf16.vlgmr.msra.gmra.mxu1 %vm298_vm0, %v344_v63 }
 0x1b3   : > { %749 = vmatmul.msk.bf16.vlgmr.msrb.gmra.mxu1 %vm298_vm0, %v457_v2 }
 0x1cb   : > { %v561_v18 = vpop.xlane.xlu0 %560 }
 0x1cc   : > { %v562_v21 = vsub.f32 %v558_v48, %v561_v18 }
 0x1ce   : > { %v563_v22 = vmul.f32 1.442695, %v562_v21 }
 0x1de   : > { %v587_v30 = vpop.permute.xlu0 %586 }
 0x1df   : > { %v592_v31 = vsel %vm348_vm2, %v587_v30, 0 }
 0x1e0   : > { %601 = vmatpush.bf16.msrb.mxu2 %v592_v31 }
 0x20a   : > { %v406_v3 = vpop.xlane.xlu2 %405 }
 0x20b   : > { %780 = vrcp.f32 %v406_v3  ;;  %v418_v6 = vand.u32 2147483648, %v406_v3  ;;  %vm412_vm7 = vweird.f32 %v406_v3  ;;  %v416_v8 = vand.u32 2147483647, %v406_v3 }
 0x20c   : > { %782 = vpow2.f32 %v563_v22 }
 0x20d   : > { %v419_v10 = vor.u32 1.1754944e-38, %v418_v6  ;;  %vm417_vm10 = vcmp.eq.f32.partialorder %v416_v8, 8.507059e+37 }
 0x211   : > { %v781_v4 = vpop.eup %780 }
 0x212   : > { %v408_v5 = vmul.f32 %v781_v4, %v406_v3  ;;  %vm413_vm8 = vweird.f32 %v781_v4  ;;  %v783_v27 = vpop.eup %782 }
 0x213   : > { %vm414_vm9 = vmor %vm412_vm7, %vm413_vm8  ;;  %v565_v29 = vsel %vm298_vm0, %v783_v27, 0.0 }
 0x214   : > { %v409_v7 = vsub.f32 1.0, %v408_v5 }
 0x216   : > { %v410_v9 = vmul.f32 %v781_v4, %v409_v7 }
 0x218   : > { %v411_v11 = vadd.f32 %v781_v4, %v410_v9 }
 0x21a   : > { %v415_v12 = vsel %vm414_vm9, %v781_v4, %v411_v11 }
 0x21b   : > { %v420_v13 = vsel %vm417_vm10, %v419_v10, %v415_v12 }
 0x21c   : > { %v907_v14 = vmul.f32 %v779_v50, %v420_v13 }
 0x21e   : > { %747 = vst.msk [vmem:[%s897_s14 + $0x8] sm:$0xff] %vm298_vm0, %v907_v14  ;;  %v424_v57 = vpack.c.bf16 %v907_v14, %v907_v14 }
 0x220   : > { %v361_v15 = vpop.f32.mrf.mxu1 }
 0x221   : > { %v365_v17 = vpack.c.bf16 %v361_v15, %v361_v15 }
 0x223   : > { %367 = vst.msk [vmem:[%s916_s17] sm:$0xf] %vm366_vm11, %v365_v17 }
 0x228   : > { %v363_v20 = vpop.f32.mrf.mxu1 }
 0x230   : > { %v475_v23 = vpop.f32.mrf.mxu1 }
 0x231   : > { %v476_v24 = vadd.f32 %v869_v16, %v475_v23 }
 0x233   : > { %v479_v25 = vadd.f32 %v476_v24, %v871_v19 }
 0x235   : > { %v480_v26 = vsel %vm298_vm0, %v479_v25, -inf }
 0x236   : > { %481 = vmax.xlane.f32.xlu1 %v480_v26 }
 0x238   : > { %v477_v28 = vpop.f32.mrf.mxu1 }
 0x23e   : > { %566 = vadd.xlane.f32.xlu1 %v565_v29 }
 0x257   : > { %507 = vrot.lane.b32.xlu1 %v902_v1, %s799_s6 }
 0x2a9   : > { %v482_v32 = vpop.xlane.xlu1 %481 }
 0x2aa   : > { %v483_v16 = vsub.f32 %v479_v25, %v482_v32 }
 0x2ac   : > { %v484_v33 = vmul.f32 1.442695, %v483_v16 }
 0x2ae   : > { %784 = vpow2.f32 %v484_v33 }
 0x2b1   : > { %v567_v19 = vpop.xlane.xlu1 %566 }
 0x2b2   : > { %786 = vrcp.f32 %v567_v19  ;;  %v579_v39 = vand.u32 2147483648, %v567_v19  ;;  %v577_v41 = vand.u32 2147483647, %v567_v19  ;;  %vm573_vm13 = vweird.f32 %v567_v19 }
 0x2b4   : > { %v785_v34 = vpop.eup %784  ;;  %v580_v43 = vor.u32 1.1754944e-38, %v579_v39  ;;  %vm578_vm15 = vcmp.eq.f32.partialorder %v577_v41, 8.507059e+37 }
 0x2b5   : > { %v486_v35 = vsel %vm298_vm0, %v785_v34, 0.0 }
 0x2b6   : > { %487 = vadd.xlane.f32.xlu2 %v486_v35 }
 0x2b8   : > { %v787_v36 = vpop.eup %786 }
 0x2b9   : > { %v569_v37 = vmul.f32 %v787_v36, %v567_v19  ;;  %vm574_vm12 = vweird.f32 %v787_v36 }
 0x2ba   : > { %vm575_vm14 = vmor %vm573_vm13, %vm574_vm12 }
 0x2bb   : > { %v570_v38 = vsub.f32 1.0, %v569_v37 }
 0x2bd   : > { %v571_v40 = vmul.f32 %v787_v36, %v570_v38 }
 0x2bf   : > { %v572_v42 = vadd.f32 %v787_v36, %v571_v40 }
 0x2c1   : > { %v576_v44 = vsel %vm575_vm14, %v787_v36, %v572_v42 }
 0x2c2   : > { %v581_v45 = vsel %vm578_vm15, %v580_v43, %v576_v44 }
 0x2c3   : > { %v582_v46 = vmul.f32 %v783_v27, %v581_v45 }
 0x2c5   : > { %753 = vst.msk [vmem:[%s897_s14 + $0x18] sm:$0xff] %vm298_vm0, %v582_v46  ;;  %v585_v47 = vpack.c.bf16 %v582_v46, %v582_v46 }
 0x2c7   : > { %754 = vmatmul.msk.bf16.vlgmr.msrb.gmra.mxu2 %vm298_vm0, %v585_v47 }
 0x2c9   : > { %v508_v49 = vpop.permute.xlu1 %507 }
 0x2ca   : > { %v513_v53 = vsel %vm348_vm2, %v508_v49, 0 }
 0x2ce   : > { %428 = vrot.lane.b32.xlu2 %v902_v1, %s798_s30 }
 0x329   : > { %v488_v48 = vpop.xlane.xlu2 %487 }
 0x32a   : > { %788 = vrcp.f32 %v488_v48  ;;  %v500_v56 = vand.u32 2147483648, %v488_v48  ;;  %v498_v59 = vand.u32 2147483647, %v488_v48  ;;  %vm494_vm3 = vweird.f32 %v488_v48 }
 0x32c   : > { %v501_v61 = vor.u32 1.1754944e-38, %v500_v56  ;;  %vm499_vm5 = vcmp.eq.f32.partialorder %v498_v59, 8.507059e+37 }
 0x330   : > { %v789_v50 = vpop.eup %788 }
 0x331   : > { %v490_v51 = vmul.f32 %v789_v50, %v488_v48  ;;  %v429_v52 = vpop.permute.xlu2 %428  ;;  %vm495_vm1 = vweird.f32 %v789_v50 }
 0x332   : > { %v434_v54 = vsel %vm348_vm2, %v429_v52, 0  ;;  %vm496_vm4 = vmor %vm494_vm3, %vm495_vm1  ;;  %vm454_vm2 = vcmask 126016  }
 0x333   : > { %v491_v55 = vsub.f32 1.0, %v490_v51  ;;  %443 = vmatpush.bf16.msra.mxu3 %v434_v54 }
 0x335   : > { %v492_v58 = vmul.f32 %v789_v50, %v491_v55 }
 0x336   : > { %748 = vmatmul.msk.bf16.vlgmr.msra.gmra.mxu3 %vm298_vm0, %v424_v57 }
 0x337   : > { %522 = vmatpush.bf16.msrb.mxu3 %v513_v53  ;;  %v493_v60 = vadd.f32 %v789_v50, %v492_v58 }
 0x339   : > { %v497_v62 = vsel %vm496_vm4, %v789_v50, %v493_v60 }
 0x33a   : > { %v502_v63 = vsel %vm499_vm5, %v501_v61, %v497_v62 }
 0x33b   : > { %v503_v0 = vmul.f32 %v785_v34, %v502_v63 }
 0x33d   : > { %750 = vst.msk [vmem:[%s897_s14 + $0x10] sm:$0xff] %vm298_vm0, %v503_v0  ;;  %v506_v1 = vpack.c.bf16 %v503_v0, %v503_v0 }
 0x346   : > { %751 = vmatmul.msk.bf16.vlgmr.msrb.gmra.mxu3 %vm298_vm0, %v506_v1  ;;  %vm533_vm0 = vcmask 191616  }
 0x34a   : > { %v603_v2 = vpop.f32.mrf.mxu2 }
 0x34b   : > { %v607_v3 = vpack.c.bf16 %v603_v2, %v603_v2 }
 0x34d   : > { %609 = vrot.lane.b32.xlu1 %v607_v3, %s802_s19 }
 0x352   : > { %v605_v4 = vpop.f32.mrf.mxu2 }
 0x3b9   : > { %v445_v5 = vpop.f32.mrf.mxu3 }
 0x3ba   : > { %v449_v6 = vpack.c.bf16 %v445_v5, %v445_v5 }
 0x3bc   : > { %451 = vrot.lane.b32.xlu2 %v449_v6, %s803_s20 }
 0x3bf   : > { %v610_v13 = vpop.permute.xlu1 %609 }
 0x3c1   : > { %v447_v7 = vpop.f32.mrf.mxu3 }
 0x3c9   : > { %v524_v8 = vpop.f32.mrf.mxu3 }
 0x3ca   : > { %v528_v9 = vpack.c.bf16 %v524_v8, %v524_v8 }
 0x3cc   : > { %530 = vrot.lane.b32.xlu0 %v528_v9, %s804_s21 }
 0x3d1   : > { %v526_v10 = vpop.f32.mrf.mxu3 }
 0x416   : > { %v452_v11 = vpop.permute.xlu2 %451 }
 0x417   : > { %455 = vst.msk [vmem:[%s916_s17] sm:$0xf] %vm454_vm2, %v452_v11 }
 0x43e   : > { %v531_v12 = vpop.permute.xlu0 %530 }
 0x43f   : > { %534 = vst.msk [vmem:[%s916_s17] sm:$0xf] %vm533_vm0, %v531_v12 }
 0x440   : > { %613 = vst.msk [vmem:[%s916_s17] sm:$0xf] %vm612_vm6, %v610_v13 }
 0x441 PF: > { %s16_s18 = sadd.s32 1, %s796_s18  }
 0x442   : > { %p13_p4 = scmp.ge.s32.totalorder %s16_s18, 4  }
 0x444   :  { %15 = sbr.rel (!%p13_p4) target bundleno = 1 (0x1), region = 90 }

// kernel: transformer_forward.53
= control target key start
LH: loop header
LB: loop body
LE: loop exit
PB: predicated region body
PF: predicated region fallthrough
CT: control target
= control target key end

     0   :  { %vm17_vm0 = vcmask 130048   ;;  %v195_v1 = vmov 0.0   ;;  %s236_s0 = inlined_call_operand.vmem [shape: bf16[16,32], index: 0, kind: input, shape index: {}]   ;;  %s237_s1 = inlined_call_operand.vmem [shape: bf16[32,16], index: 1, kind: input, shape index: {}]   ;;  %s238_s2 = inlined_call_operand.hbm [shape: f32[16,16], index: 2, kind: output, shape index: {}]  }
   0x1   :  { %v156_v0 = vld [vmem:[%s237_s1 + $0x8] sm:$0xff]  ;;  %18 = vst.msk [vmem:[#allocation2] sm:$0xff] %vm17_vm0, %v195_v1 }
   0x2   :  { %7 = vsyncpa [#allocation4], 0  ;;  %55 = vmatpush.bf16.msra.mxu0 %v156_v0  ;;  %v155_v2 = vld [vmem:[%s237_s1] sm:$0xff]  ;;  %19 = vst.msk [vmem:[#allocation2 + $0x8] sm:$0xff] %vm17_vm0, %v195_v1  ;;  %vm45_vm1 = vcmask 261120   ;;  %s129_s17 = sshll.u32 %s238_s2, 4  ;;  %s130_s17 = int_to_ptr.hbm [resolvable:$true] %s129_s17 }
   0x3   :  { %v154_v3 = vld [vmem:[%s236_s0] sm:$0xff]  ;;  %s196_s0 = smov [#allocation3]   ;;  %s197_s18 = smov 128  }
   0x4   :  { %s127_s1 = sshll.u32 %s196_s0, 4  ;;  %s198_s19 = smov 8   ;;  %s128_s1 = int_to_ptr.vmem [resolvable:$true] %s127_s1 }
   0x6   :  { %56 = vmatpush.bf16.msra.mxu0 %v155_v2 }
   0x8   :  { %v20_v4 = vld [vmem:[#allocation2] sm:$0xff] }
   0x9   :  { %153 = vmatmul.msk.bf16.vlgmr.msra.gmra.mxu0 %vm45_vm1, %v154_v3  ;;  %v21_v7 = vld [vmem:[#allocation2 + $0x8] sm:$0xff] }
  0x86   :  { %v58_v5 = vpop.f32.mrf.mxu0 }
  0x87   :  { %v63_v6 = vadd.f32 %v58_v5, %v20_v4 }
  0x89   :  { %66 = vst.msk [vmem:[#allocation2] sm:$0xff] %vm17_vm0, %v63_v6 }
  0x8e   :  { %v60_v8 = vpop.f32.mrf.mxu0 }
  0x8f   :  { %v64_v9 = vadd.f32 %v60_v8, %v21_v7 }
  0x90   :  { %v71_v10 = vld [vmem:[#allocation2] sm:$0xff] }
  0x91   :  { %67 = vst.msk [vmem:[#allocation2 + $0x8] sm:$0xff] %vm17_vm0, %v64_v9  ;;  %v73_v11 = vsel %vm17_vm0, %v71_v10, -inf }
  0x92   :  { %74 = vmax.xlane.f32.xlu0 %v73_v11 }
  0x98   :  { %v72_v12 = vld [vmem:[#allocation2 + $0x8] sm:$0xff] }
  0x99   :  { %v76_v13 = vsel %vm17_vm0, %v72_v12, -inf }
  0x9a   :  { %77 = vmax.xlane.f32.xlu0 %v76_v13 }
 0x105   :  { %v75_v14 = vpop.xlane.xlu0 %74 }
 0x106   :  { %v79_v15 = vsub.f32 %v71_v10, %v75_v14 }
 0x108   :  { %v81_v16 = vmul.f32 1.442695, %v79_v15 }
 0x10a   :  { %161 = vpow2.f32 %v81_v16 }
 0x10d   :  { %v78_v17 = vpop.xlane.xlu0 %77 }
 0x10e   :  { %v80_v18 = vsub.f32 %v72_v12, %v78_v17 }
 0x110   :  { %v162_v19 = vpop.eup %161  ;;  %v83_v20 = vmul.f32 1.442695, %v80_v18 }
 0x111   :  { %v85_v21 = vsel %vm17_vm0, %v162_v19, 0.0 }
 0x112   :  { %163 = vpow2.f32 %v83_v20  ;;  %86 = vadd.xlane.f32.xlu1 %v85_v21 }
 0x118   :  { %v164_v22 = vpop.eup %163 }
 0x119   :  { %v88_v23 = vsel %vm17_vm0, %v164_v22, 0.0 }
 0x11a   :  { %89 = vadd.xlane.f32.xlu1 %v88_v23 }
 0x185   :  { %v87_v24 = vpop.xlane.xlu1 %86 }
 0x186   :  { %165 = vrcp.f32 %v87_v24  ;;  %v102_v29 = vand.u32 2147483648, %v87_v24  ;;  %v100_v31 = vand.u32 2147483647, %v87_v24  ;;  %vm96_vm3 = vweird.f32 %v87_v24 }
 0x188   :  { %v103_v34 = vor.u32 1.1754944e-38, %v102_v29  ;;  %vm101_vm5 = vcmp.eq.f32.partialorder %v100_v31, 8.507059e+37 }
 0x18c   :  { %v166_v25 = vpop.eup %165 }
 0x18d   :  { %v92_v26 = vmul.f32 %v166_v25, %v87_v24  ;;  %v90_v27 = vpop.xlane.xlu1 %89  ;;  %vm97_vm2 = vweird.f32 %v166_v25 }
 0x18e   :  { %167 = vrcp.f32 %v90_v27  ;;  %vm98_vm4 = vmor %vm96_vm3, %vm97_vm2  ;;  %v117_v40 = vand.u32 2147483648, %v90_v27  ;;  %v115_v42 = vand.u32 2147483647, %v90_v27  ;;  %vm111_vm7 = vweird.f32 %v90_v27 }
 0x18f   :  { %v93_v28 = vsub.f32 1.0, %v92_v26 }
 0x190   :  { %v118_v44 = vor.u32 1.1754944e-38, %v117_v40  ;;  %vm116_vm9 = vcmp.eq.f32.partialorder %v115_v42, 8.507059e+37 }
 0x191   :  { %v94_v30 = vmul.f32 %v166_v25, %v93_v28 }
 0x193   :  { %v95_v32 = vadd.f32 %v166_v25, %v94_v30 }
 0x194   :  { %v168_v33 = vpop.eup %167 }
 0x195   :  { %v99_v35 = vsel %vm98_vm4, %v166_v25, %v95_v32  ;;  %v107_v36 = vmul.f32 %v168_v33, %v90_v27  ;;  %vm112_vm6 = vweird.f32 %v168_v33 }
 0x196   :  { %v104_v37 = vsel %vm101_vm5, %v103_v34, %v99_v35  ;;  %vm113_vm8 = vmor %vm111_vm7, %vm112_vm6 }
 0x197   :  { %v105_v38 = vmul.f32 %v162_v19, %v104_v37  ;;  %v108_v39 = vsub.f32 1.0, %v107_v36 }
 0x199   :  { %121 = vst.msk [vmem:[#allocation3] sm:$0xff] %vm17_vm0, %v105_v38  ;;  %v109_v41 = vmul.f32 %v168_v33, %v108_v39 }
 0x19b   :  { %v110_v43 = vadd.f32 %v168_v33, %v109_v41 }
 0x19d   :  { %v114_v45 = vsel %vm113_vm8, %v168_v33, %v110_v43 }
 0x19e   :  { %v119_v46 = vsel %vm116_vm9, %v118_v44, %v114_v45 }
 0x19f   :  { %v120_v47 = vmul.f32 %v164_v22, %v119_v46 }
 0x1a1   :  { %122 = vst.msk [vmem:[#allocation3 + $0x8] sm:$0xff] %vm17_vm0, %v120_v47 }
 0x1a2   :  { %135 = dma.vmem_to_hbm [thread:$0]  %s128_s1, 256, %s130_s17, [#allocation4], %s197_s18, %s197_s18, %s198_s19  }
 0x1a3   :  { %193 = dma.done.wait [#allocation4], 256  }
 0x1a4   :  { %194 = vsyncadd [#allocation4], 4294967040 }
 0x1a5   :  { %140 = vsyncpa [#allocation4], 1 }

// kernel: transformer_forward.48
= control target key start
LH: loop header
LB: loop body
LE: loop exit
PB: predicated region body
PF: predicated region fallthrough
CT: control target
= control target key end

     0   :  { %vm19_vm0 = vcmask 523264   ;;  %v108_v1 = vmov 0.0   ;;  %vm47_vm1 = vcmask 261120   ;;  %vm83_vm2 = vcmask 519168   ;;  %s151_s1 = inlined_call_operand.vmem [shape: bf16[32,64], index: 1, kind: input, shape index: {}]   ;;  %s152_s2 = inlined_call_operand.vmem [shape: f32[1,64], index: 2, kind: input, shape index: {}]   ;;  %s153_s0 = inlined_call_operand.vmem [shape: bf16[16,32], index: 0, kind: input, shape index: {}]   ;;  %s154_s3 = inlined_call_operand.vmem [shape: bf16[16,64], index: 3, kind: output, shape index: {}]  }
   0x1   :  { %v105_v0 = vld [vmem:[%s151_s1 + $0x8] sm:$0xff]  ;;  %20 = vst.msk [vmem:[#allocation2] sm:$0xff] %vm19_vm0, %v108_v1  ;;  %v104_v2 = vld [vmem:[%s151_s1] sm:$0xff] }
   0x2   :  { %21 = vst.msk [vmem:[#allocation2 + $0x8] sm:$0xff] %vm19_vm0, %v108_v1  ;;  %57 = vmatpush.bf16.msra.mxu0 %v105_v0  ;;  %v103_v3 = vld [vmem:[%s153_s0] sm:$0xff] }
   0x3   :  { %v107_v8 = vld [vmem:[%s152_s2] ss:$0 sm:$0xff] }
   0x6   :  { %58 = vmatpush.bf16.msra.mxu0 %v104_v2 }
   0x8   :  { %v22_v4 = vld [vmem:[#allocation2] sm:$0xff] }
   0x9   :  { %102 = vmatmul.msk.bf16.vlgmr.msra.gmra.mxu0 %vm47_vm1, %v103_v3  ;;  %v23_v7 = vld [vmem:[#allocation2 + $0x8] sm:$0xff] }
  0x86   :  { %v60_v5 = vpop.f32.mrf.mxu0 }
  0x87   :  { %v65_v6 = vadd.f32 %v60_v5, %v22_v4 }
  0x89   :  { %68 = vst.msk [vmem:[#allocation2] sm:$0xff] %vm19_vm0, %v65_v6 }
  0x8e   :  { %v62_v9 = vpop.f32.mrf.mxu0 }
  0x8f   :  { %v66_v10 = vadd.f32 %v62_v9, %v23_v7 }
  0x90   :  { %v73_v11 = vld [vmem:[#allocation2] sm:$0xff] }
  0x91   :  { %v79_v12 = vadd.f32 %v107_v8, %v73_v11  ;;  %69 = vst.msk [vmem:[#allocation2 + $0x8] sm:$0xff] %vm19_vm0, %v66_v10 }
  0x93   :  { %v81_v13 = vpack.c.bf16 %v79_v12, %v79_v12 }
  0x95   :  { %84 = vst.msk [vmem:[%s154_s3] sm:$0xf] %vm83_vm2, %v81_v13 }
  0x98   :  { %v74_v14 = vld [vmem:[#allocation2 + $0x8] sm:$0xff] }
  0x99   :  { %v80_v15 = vadd.f32 %v107_v8, %v74_v14 }
  0x9b   :  { %v82_v16 = vpack.c.bf16 %v80_v15, %v80_v15 }
  0x9d   :  { %85 = vst.msk [vmem:[%s154_s3 + $0x4] sm:$0xf] %vm83_vm2, %v82_v16 }

</bundles_post_ra>
